<compile_context>
chip_gen: v7x
topology: tpu7x:2x2x1
jax: 0.10.0
libtpu: 0.0.40
codegen_flags: <defaults>
</compile_context>

<pallas_src>
import jax
import jax.numpy as jnp
from jax import lax
from jax.experimental import pallas as pl
from jax.experimental.pallas import tpu as pltpu


def _round_up(x, m):
    return (x + m - 1) // m * m


# ----------------------------------------------------------------------------
# Fused multi-layer LSTM kernel, gridded over time chunks
# ----------------------------------------------------------------------------

def _make_lstm_stack_kernel(num_layers, hp, time_chunk, mm_dtype):
    """Kernel running `num_layers` LSTM layers over one time chunk per grid step.

    Ref layout (all padded):
      x_ref:     (TC, Bp, Ep)            current chunk of inputs
      per layer: wih (F_in, 4Hp) mm_dtype, whh (Hp, 4Hp) mm_dtype, bias (1, 4Hp) f32
      out_ref:   (TC, Bp, Hp) mm_dtype   last layer's hidden states for this chunk
      scratch:   gx (TC,Bp,4Hp) f32, hseq (TC,Bp,Hp) f32,
                 h_state (L,Bp,Hp) f32, c_state (L,Bp,Hp) f32   (persist across chunks)
    """

    def kernel(*refs):
        x_ref = refs[0]
        w_refs = refs[1:1 + 3 * num_layers]
        out_ref = refs[1 + 3 * num_layers]
        gx_scr, hseq_scr, h_state, c_state = refs[2 + 3 * num_layers:]

        bp = x_ref.shape[1]

        @pl.when(pl.program_id(0) == 0)
        def _init():
            h_state[...] = jnp.zeros_like(h_state)
            c_state[...] = jnp.zeros_like(c_state)

        for layer in range(num_layers):
            wih_ref, whh_ref, b_ref = w_refs[3 * layer:3 * layer + 3]
            inp_ref = x_ref if layer == 0 else hseq_scr
            dst_ref = out_ref if layer == num_layers - 1 else hseq_scr
            dst_dtype = mm_dtype if layer == num_layers - 1 else jnp.float32
            f_in = inp_ref.shape[-1]

            # Hoisted input projection + bias for the whole chunk:
            # one (TC*Bp, F_in) @ (F_in, 4Hp) MXU matmul instead of TC tiny ones.
            x_all = inp_ref[...].reshape(time_chunk * bp, f_in).astype(mm_dtype)
            gx = jnp.dot(x_all, wih_ref[...],
                         preferred_element_type=jnp.float32) + b_ref[...]
            gx_scr[...] = gx.reshape(time_chunk, bp, 4 * hp)

            # Loop-invariant recurrent weight, hoisted out of the time loop.
            whh = whh_ref[...]

            def step(t, carry, whh=whh, dst_ref=dst_ref, dst_dtype=dst_dtype):
                h, c = carry   # h/c carried as values (vregs), not VMEM scratch
                gates = gx_scr[t] + jnp.dot(h.astype(mm_dtype), whh,
                                            preferred_element_type=jnp.float32)
                # hp is a multiple of 128, so every gate slice is lane-aligned.
                i = jax.nn.sigmoid(gates[:, 0 * hp:1 * hp])
                f = jax.nn.sigmoid(gates[:, 1 * hp:2 * hp])
                g = jnp.tanh(gates[:, 2 * hp:3 * hp])
                o = jax.nn.sigmoid(gates[:, 3 * hp:4 * hp])
                c = f * c + i * g
                h = o * jnp.tanh(c)
                dst_ref[t] = h.astype(dst_dtype)   # only per-step VMEM store
                return (h, c)

            # Unrolled serial recurrence (time_chunk is static).
            h_fin, c_fin = lax.fori_loop(0, time_chunk, step,
                                         (h_state[layer], c_state[layer]),
                                         unroll=True)
            h_state[layer] = h_fin
            c_state[layer] = c_fin

    return kernel


def lstm_stack_pallas(x_p, weight_args, hidden_p, num_layers, time_chunk, mm_dtype):
    tpad, bp, ep = x_p.shape
    num_chunks = tpad // time_chunk
    kernel = _make_lstm_stack_kernel(num_layers, hidden_p, time_chunk, mm_dtype)

    in_specs = [pl.BlockSpec((time_chunk, bp, ep), lambda t: (t, 0, 0))]
    for w in weight_args:
        # Constant block index: weights are DMA'd once and stay VMEM-resident.
        in_specs.append(pl.BlockSpec(w.shape, lambda t: (0, 0)))

    return pl.pallas_call(
        kernel,
        out_shape=jax.ShapeDtypeStruct((tpad, bp, hidden_p), mm_dtype),
        grid_spec=pltpu.PrefetchScalarGridSpec(
            num_scalar_prefetch=0,
            grid=(num_chunks,),
            in_specs=in_specs,
            out_specs=pl.BlockSpec((time_chunk, bp, hidden_p), lambda t: (t, 0, 0)),
            scratch_shapes=[
                pltpu.VMEM((time_chunk, bp, 4 * hidden_p), jnp.float32),  # gx chunk
                pltpu.VMEM((time_chunk, bp, hidden_p), jnp.float32),      # layer-0 h seq
                pltpu.VMEM((num_layers, bp, hidden_p), jnp.float32),      # h carry
                pltpu.VMEM((num_layers, bp, hidden_p), jnp.float32),      # c carry
            ]),
        compiler_params=pltpu.CompilerParams(
            # Recurrence across time chunks is strictly sequential.
            dimension_semantics=("arbitrary",),
            # Explicit budget: v5e default scoped VMEM is only 16 MiB; stays
            # under v7x's 64 MiB physical VMEM.
            vmem_limit_bytes=48 * 1024 * 1024,
        ),
    )(x_p, *weight_args)


# ----------------------------------------------------------------------------
# FC (Linear) kernel: grid = (vocab tiles, time tiles), batch-first output
# ----------------------------------------------------------------------------

def _fc_kernel(x_ref, w_ref, b_ref, out_ref):
    bp, tt, hp = x_ref.shape
    y = jnp.dot(x_ref[...].reshape(bp * tt, hp), w_ref[...],
                preferred_element_type=jnp.float32) + b_ref[...]
    out_ref[...] = y.reshape(bp, tt, -1)   # lane-dense (bp, tt, tn) store


def fc_pallas(h_bt, w_hv, b_1v, tt_fc, tn):
    bp, tpad, hp = h_bt.shape
    vp = w_hv.shape[1]
    # Vocab axis first -> it gets the megacore split (time_tiles is often 1),
    # and the fc-weight tile stays resident across the inner time axis.
    grid = (vp // tn, tpad // tt_fc)
    return pl.pallas_call(
        _fc_kernel,
        out_shape=jax.ShapeDtypeStruct((bp, tpad, vp), jnp.float32),
        grid_spec=pltpu.PrefetchScalarGridSpec(
            num_scalar_prefetch=0,
            grid=grid,
            in_specs=[
                pl.BlockSpec((bp, tt_fc, hp), lambda vi, ti: (0, ti, 0)),
                pl.BlockSpec((hp, tn), lambda vi, ti: (0, vi)),
                pl.BlockSpec((1, tn), lambda vi, ti: (0, vi)),
            ],
            out_specs=pl.BlockSpec((bp, tt_fc, tn), lambda vi, ti: (0, ti, vi)),
        ),
        compiler_params=pltpu.CompilerParams(
            dimension_semantics=("parallel", "parallel")),
    )(h_bt, w_hv, b_1v)


# ----------------------------------------------------------------------------
# Parameter init (deterministic, mirrors PyTorch shapes)
# ----------------------------------------------------------------------------

def init_params(key, embed_size, hidden_size, vocab_size, num_layers):
    keys = jax.random.split(key, 4 + 4 * num_layers)
    ki = iter(keys)

    def xavier(k, shape):
        fan_out, fan_in = shape
        bound = (6.0 / (fan_in + fan_out)) ** 0.5
        return jax.random.uniform(k, shape, jnp.float32, -bound, bound)

    def lstm_uniform(k, shape):
        bound = 1.0 / (hidden_size ** 0.5)
        return jax.random.uniform(k, shape, jnp.float32, -bound, bound)

    params = {
        "embed_weight": xavier(next(ki), (vocab_size, embed_size)),
        "fc_weight": xavier(next(ki), (vocab_size, hidden_size)),   # (V, H)
        "fc_bias": lstm_uniform(next(ki), (vocab_size,)),
        "lstm": [],
    }
    _ = next(ki)
    for layer in range(num_layers):
        in_size = embed_size if layer == 0 else hidden_size
        w_ih = lstm_uniform(next(ki), (4 * hidden_size, in_size))
        w_hh = lstm_uniform(next(ki), (4 * hidden_size, hidden_size))
        b_ih = lstm_uniform(next(ki), (4 * hidden_size,))
        b_hh = lstm_uniform(next(ki), (4 * hidden_size,))
        params["lstm"].append((w_ih, w_hh, b_ih, b_hh))
    return params


# ----------------------------------------------------------------------------
# Weight padding helpers (zero padding keeps the un-padded region exact)
# ----------------------------------------------------------------------------

def _pad_lstm_layer(w_ih, w_hh, b_ih, b_hh, in_size, in_p, h, hp, mm_dtype):
    """Transpose + pad one LSTM layer; each (i,f,g,o) gate block is placed at a
    128-aligned column offset k*hp so in-kernel gate slices stay lane-aligned.
    Matmul weights are cast to mm_dtype; the folded bias stays f32."""
    wih_p = jnp.zeros((in_p, 4 * hp), jnp.float32)
    whh_p = jnp.zeros((hp, 4 * hp), jnp.float32)
    b_p = jnp.zeros((1, 4 * hp), jnp.float32)
    for k in range(4):  # PyTorch gate order: i, f, g, o
        wih_p = wih_p.at[:in_size, k * hp:k * hp + h].set(w_ih[k * h:(k + 1) * h, :].T)
        whh_p = whh_p.at[:h, k * hp:k * hp + h].set(w_hh[k * h:(k + 1) * h, :].T)
        b_p = b_p.at[0, k * hp:k * hp + h].set(b_ih[k * h:(k + 1) * h] + b_hh[k * h:(k + 1) * h])
    return wih_p.astype(mm_dtype), whh_p.astype(mm_dtype), b_p


# ----------------------------------------------------------------------------
# DecoderRNN.forward
# ----------------------------------------------------------------------------

def decoder_rnn_forward(params, features, captions, hidden_size,
                        matmul_dtype=jnp.bfloat16):
    """features: (B, embed_size) float32; captions: (B, L) int32.
    Returns logits (B, L, vocab_size)  [T = 1 + (L - 1) = L].
    matmul_dtype: dtype of MXU operands (bf16 = production; f32 = verification)."""
    # Glue: embedding lookup + prepend feature step (plain JAX).
    captions_trim = captions[:, :-1]                                     # (B, L-1)
    embedded = jnp.take(params["embed_weight"], captions_trim, axis=0)   # (B, L-1, E)
    pairs = jnp.concatenate([features[:, None, :], embedded], axis=1)    # (B, T, E)
    x = jnp.transpose(pairs, (1, 0, 2)).astype(jnp.float32)              # (T, B, E)

    seq_len, batch, embed = x.shape
    hidden = hidden_size
    vocab = params["fc_bias"].shape[0]
    num_layers = len(params["lstm"])

    bp = _round_up(batch, 8)      # f32 sublane height
    ep = _round_up(embed, 128)    # lane width
    hp = _round_up(hidden, 128)
    vp = _round_up(vocab, 512)    # 512-wide lane-dense vocab tiles

    tpad = _round_up(seq_len, 8)
    time_chunk = 16 if tpad % 16 == 0 else 8
    tt_fc = next(c for c in (128, 64, 32, 16, 8) if tpad % c == 0)
    tn = 512

    x_p = jnp.zeros((tpad, bp, ep), matmul_dtype).at[:seq_len, :batch, :embed].set(
        x.astype(matmul_dtype))

    weight_args = []
    for layer, (w_ih, w_hh, b_ih, b_hh) in enumerate(params["lstm"]):
        in_size = embed if layer == 0 else hidden
        in_p = ep if layer == 0 else hp
        weight_args += list(_pad_lstm_layer(w_ih, w_hh, b_ih, b_hh,
                                            in_size, in_p, hidden, hp, matmul_dtype))

    h_all = lstm_stack_pallas(x_p, weight_args, hp, num_layers,
                              time_chunk, matmul_dtype)                  # (Tp, Bp, Hp)

    # Batch-major hidden states for the FC (much smaller than logits); the FC
    # then writes batch-first tiles so no post-FC logits transpose is needed.
    h_bt = jnp.transpose(h_all, (1, 0, 2))                               # (Bp, Tp, Hp)

    fc_w_p = jnp.zeros((hp, vp), jnp.float32).at[:hidden, :vocab].set(
        params["fc_weight"].T).astype(matmul_dtype)
    fc_b_p = jnp.zeros((1, vp), jnp.float32).at[0, :vocab].set(params["fc_bias"])

    logits_p = fc_pallas(h_bt, fc_w_p, fc_b_p, tt_fc, tn)                # (Bp, Tp, Vp)
    return logits_p[:batch, :seq_len, :vocab]                            # (B, T, V)


# ----------------------------------------------------------------------------
# Pure-JAX reference (for correctness check)
# ----------------------------------------------------------------------------

def decoder_rnn_reference(params, features, captions, hidden_size):
    captions_trim = captions[:, :-1]
    embedded = jnp.take(params["embed_weight"], captions_trim, axis=0)
    x = jnp.concatenate([features[:, None, :], embedded], axis=1)        # (B, T, E)
    x = jnp.transpose(x, (1, 0, 2))                                      # (T, B, E)
    batch = x.shape[1]

    for (w_ih, w_hh, b_ih, b_hh) in params["lstm"]:
        def step(carry, x_t):
            h, c = carry
            gates = x_t @ w_ih.T + h @ w_hh.T + b_ih + b_hh
            i, f, g, o = jnp.split(gates, 4, axis=-1)
            c = jax.nn.sigmoid(f) * c + jax.nn.sigmoid(i) * jnp.tanh(g)
            h = jax.nn.sigmoid(o) * jnp.tanh(c)
            return (h, c), h
        h0 = jnp.zeros((batch, hidden_size), jnp.float32)
        c0 = jnp.zeros((batch, hidden_size), jnp.float32)
        _, x = lax.scan(step, (h0, c0), x)

    logits = x @ params["fc_weight"].T + params["fc_bias"]
    return jnp.transpose(logits, (1, 0, 2))


# ----------------------------------------------------------------------------

if __name__ == "__main__":
    embed_size = 32
    hidden_size = 32
    vocab_size = 64
    num_layers = 2
    batch = 2
    cap_len = 8   # captions length L -> LSTM sees T = L steps

    key = jax.random.PRNGKey(0)
    k_params, k_feat, k_cap = jax.random.split(key, 3)

    params = init_params(k_params, embed_size, hidden_size, vocab_size, num_layers)
    features = jax.random.normal(k_feat, (batch, embed_size), jnp.float32)
    captions = jax.random.randint(k_cap, (batch, cap_len), 0, vocab_size, jnp.int32)

    ref = decoder_rnn_reference(params, features, captions, hidden_size)

    # 1) f32 verification path: exact structural check against the reference.
    out_f32 = decoder_rnn_forward(params, features, captions, hidden_size,
                                  matmul_dtype=jnp.float32)
    out_f32 = jax.block_until_ready(out_f32)
    assert out_f32.shape == (batch, cap_len, vocab_size), out_f32.shape
    assert jnp.allclose(out_f32, ref, atol=1e-4, rtol=1e-4), "f32 mismatch vs reference"

    # 2) bf16-operand production path: same code, MXU operands in bf16
    #    (f32 accumulation + f32 gate math), checked with a loosened tolerance.
    out_bf16 = decoder_rnn_forward(params, features, captions, hidden_size,
                                   matmul_dtype=jnp.bfloat16)
    out_bf16 = jax.block_until_ready(out_bf16)
    assert out_bf16.shape == (batch, cap_len, vocab_size), out_bf16.shape
    assert jnp.allclose(out_bf16, ref, atol=1e-1, rtol=1e-1), "bf16 mismatch vs reference"

    print("KERNEL_OK")
</pallas_src>

<mosaic_0001>
module attributes {stable_mosaic.version = 11 : i64} {
  func.func @kernel(%arg0: i32, %arg1: memref<8x8x128xf32, #tpu.memory_space<vmem>>, %arg2: memref<128x512xf32, #tpu.memory_space<vmem>>, %arg3: memref<128x512xf32, #tpu.memory_space<vmem>>, %arg4: memref<1x512xf32, #tpu.memory_space<vmem>>, %arg5: memref<128x512xf32, #tpu.memory_space<vmem>>, %arg6: memref<128x512xf32, #tpu.memory_space<vmem>>, %arg7: memref<1x512xf32, #tpu.memory_space<vmem>>, %arg8: memref<8x8x128xf32, #tpu.memory_space<vmem>>, %arg9: memref<8x8x512xf32, #tpu.memory_space<vmem>>, %arg10: memref<8x8x128xf32, #tpu.memory_space<vmem>>, %arg11: memref<2x8x128xf32, #tpu.memory_space<vmem>>, %arg12: memref<2x8x128xf32, #tpu.memory_space<vmem>>) attributes {dimension_semantics = [#tpu.dimension_semantics<arbitrary>], iteration_bounds = array<i64: 1>, scalar_prefetch = 0 : i64, scratch_operands = 4 : i64, tpu.core_type = #tpu.core_type<tc>, window_params = [{transform_indices = @transform_0, window_bounds = array<i64: 8, 8, 128>}, {pipeline_mode = #tpu.pipeline_mode<synchronous>, transform_indices = @transform_1, window_bounds = array<i64: 128, 512>}, {pipeline_mode = #tpu.pipeline_mode<synchronous>, transform_indices = @transform_2, window_bounds = array<i64: 128, 512>}, {pipeline_mode = #tpu.pipeline_mode<synchronous>, transform_indices = @transform_3, window_bounds = array<i64: 1, 512>}, {pipeline_mode = #tpu.pipeline_mode<synchronous>, transform_indices = @transform_4, window_bounds = array<i64: 128, 512>}, {pipeline_mode = #tpu.pipeline_mode<synchronous>, transform_indices = @transform_5, window_bounds = array<i64: 128, 512>}, {pipeline_mode = #tpu.pipeline_mode<synchronous>, transform_indices = @transform_6, window_bounds = array<i64: 1, 512>}, {transform_indices = @transform_7, window_bounds = array<i64: 8, 8, 128>}]} {
    %c0_i32 = arith.constant 0 : i32
    %0 = arith.cmpi eq, %arg0, %c0_i32 : i32
    %1 = arith.extui %0 : i1 to i32
    %c0_i32_0 = arith.constant 0 : i32
    %2 = arith.cmpi ne, %1, %c0_i32_0 : i32
    scf.if %2 {
      %cst_186 = arith.constant 0.000000e+00 : f32
      %587 = vector.broadcast %cst_186 : f32 to vector<2x8x128xf32>
      %c0_187 = arith.constant 0 : index
      %c0_188 = arith.constant 0 : index
      %c0_189 = arith.constant 0 : index
      %588 = vector.load %arg11[%c0_187, %c0_188, %c0_189] : memref<2x8x128xf32, #tpu.memory_space<vmem>>, vector<2x8x128xf32>
      tpu.vector_store %arg11[%c0_187, %c0_188, %c0_189], %587 {strides = array<i32>} : memref<2x8x128xf32, #tpu.memory_space<vmem>>, vector<2x8x128xf32>,
      %cst_190 = arith.constant 0.000000e+00 : f32
      %589 = vector.broadcast %cst_190 : f32 to vector<2x8x128xf32>
      %c0_191 = arith.constant 0 : index
      %c0_192 = arith.constant 0 : index
      %c0_193 = arith.constant 0 : index
      %590 = vector.load %arg12[%c0_191, %c0_192, %c0_193] : memref<2x8x128xf32, #tpu.memory_space<vmem>>, vector<2x8x128xf32>
      tpu.vector_store %arg12[%c0_191, %c0_192, %c0_193], %589 {strides = array<i32>} : memref<2x8x128xf32, #tpu.memory_space<vmem>>, vector<2x8x128xf32>,
    } else {
    }
    %c0 = arith.constant 0 : index
    %c0_1 = arith.constant 0 : index
    %c0_2 = arith.constant 0 : index
    %3 = vector.load %arg1[%c0, %c0_1, %c0_2] : memref<8x8x128xf32, #tpu.memory_space<vmem>>, vector<8x8x128xf32>
    %4 = vector.shape_cast %3 : vector<8x8x128xf32> to vector<64x128xf32>
    %c0_3 = arith.constant 0 : index
    %c0_4 = arith.constant 0 : index
    %5 = vector.load %arg2[%c0_3, %c0_4] : memref<128x512xf32, #tpu.memory_space<vmem>>, vector<128x512xf32>
    %cst = arith.constant dense<0.000000e+00> : vector<64x512xf32>
    %6 = tpu.matmul %4, %5, %cst {dimension_numbers = #tpu.dot_dimension_numbers<[1], [0], [0], [1], [0, 0, 1, 1], [], []>} : vector<64x128xf32>, vector<128x512xf32>, vector<64x512xf32> -> vector<64x512xf32>
    %c0_5 = arith.constant 0 : index
    %c0_6 = arith.constant 0 : index
    %7 = vector.load %arg4[%c0_5, %c0_6] : memref<1x512xf32, #tpu.memory_space<vmem>>, vector<1x512xf32>
    %8 = vector.broadcast %7 : vector<1x512xf32> to vector<64x512xf32>
    %9 = arith.addf %6, %8 : vector<64x512xf32>
    %10 = vector.shape_cast %9 : vector<64x512xf32> to vector<8x8x512xf32>
    %c0_7 = arith.constant 0 : index
    %c0_8 = arith.constant 0 : index
    %c0_9 = arith.constant 0 : index
    %11 = vector.load %arg9[%c0_7, %c0_8, %c0_9] : memref<8x8x512xf32, #tpu.memory_space<vmem>>, vector<8x8x512xf32>
    tpu.vector_store %arg9[%c0_7, %c0_8, %c0_9], %10 {strides = array<i32>} : memref<8x8x512xf32, #tpu.memory_space<vmem>>, vector<8x8x512xf32>,
    %c0_10 = arith.constant 0 : index
    %c0_11 = arith.constant 0 : index
    %12 = vector.load %arg3[%c0_10, %c0_11] : memref<128x512xf32, #tpu.memory_space<vmem>>, vector<128x512xf32>
    %c0_12 = arith.constant 0 : index
    %c0_13 = arith.constant 0 : index
    %c0_14 = arith.constant 0 : index
    %13 = vector.load %arg11[%c0_12, %c0_13, %c0_14] : memref<2x8x128xf32, #tpu.memory_space<vmem>>, vector<1x8x128xf32>
    %14 = vector.shape_cast %13 : vector<1x8x128xf32> to vector<8x128xf32>
    %c0_15 = arith.constant 0 : index
    %c0_16 = arith.constant 0 : index
    %c0_17 = arith.constant 0 : index
    %15 = vector.load %arg12[%c0_15, %c0_16, %c0_17] : memref<2x8x128xf32, #tpu.memory_space<vmem>>, vector<1x8x128xf32>
    %16 = vector.shape_cast %15 : vector<1x8x128xf32> to vector<8x128xf32>
    %c0_i32_18 = arith.constant 0 : i32
    %17 = arith.index_cast %c0_i32_18 : i32 to index
    %c0_19 = arith.constant 0 : index
    %c0_20 = arith.constant 0 : index
    %18 = vector.load %arg9[%17, %c0_19, %c0_20] : memref<8x8x512xf32, #tpu.memory_space<vmem>>, vector<1x8x512xf32>
    %19 = vector.shape_cast %18 : vector<1x8x512xf32> to vector<8x512xf32>
    %cst_21 = arith.constant dense<0.000000e+00> : vector<8x512xf32>
    %20 = tpu.matmul %14, %12, %cst_21 {dimension_numbers = #tpu.dot_dimension_numbers<[1], [0], [0], [1], [0, 0, 1, 1], [], []>} : vector<8x128xf32>, vector<128x512xf32>, vector<8x512xf32> -> vector<8x512xf32>
    %21 = arith.addf %19, %20 : vector<8x512xf32>
    %22 = vector.extract_strided_slice %21 {offsets = [0, 0], sizes = [8, 128], strides = [1, 1]} : vector<8x512xf32> to vector<8x128xf32>
    %23 = arith.negf %22 : vector<8x128xf32>
    %24 = math.exp %23 : vector<8x128xf32>
    %cst_22 = arith.constant 1.000000e+00 : f32
    %25 = vector.broadcast %cst_22 : f32 to vector<8x128xf32>
    %26 = arith.addf %25, %24 : vector<8x128xf32>
    %27 = arith.divf %25, %26 : vector<8x128xf32>
    %28 = vector.extract_strided_slice %21 {offsets = [0, 128], sizes = [8, 128], strides = [1, 1]} : vector<8x512xf32> to vector<8x128xf32>
    %29 = arith.negf %28 : vector<8x128xf32>
    %30 = math.exp %29 : vector<8x128xf32>
    %cst_23 = arith.constant 1.000000e+00 : f32
    %31 = vector.broadcast %cst_23 : f32 to vector<8x128xf32>
    %32 = arith.addf %31, %30 : vector<8x128xf32>
    %33 = arith.divf %31, %32 : vector<8x128xf32>
    %34 = vector.extract_strided_slice %21 {offsets = [0, 256], sizes = [8, 128], strides = [1, 1]} : vector<8x512xf32> to vector<8x128xf32>
    %35 = math.tanh %34 : vector<8x128xf32>
    %36 = vector.extract_strided_slice %21 {offsets = [0, 384], sizes = [8, 128], strides = [1, 1]} : vector<8x512xf32> to vector<8x128xf32>
    %37 = arith.negf %36 : vector<8x128xf32>
    %38 = math.exp %37 : vector<8x128xf32>
    %cst_24 = arith.constant 1.000000e+00 : f32
    %39 = vector.broadcast %cst_24 : f32 to vector<8x128xf32>
    %40 = arith.addf %39, %38 : vector<8x128xf32>
    %41 = arith.divf %39, %40 : vector<8x128xf32>
    %42 = arith.mulf %33, %16 : vector<8x128xf32>
    %43 = arith.mulf %27, %35 : vector<8x128xf32>
    %44 = arith.addf %42, %43 : vector<8x128xf32>
    %45 = math.tanh %44 : vector<8x128xf32>
    %46 = arith.mulf %41, %45 : vector<8x128xf32>
    %47 = arith.index_cast %c0_i32_18 : i32 to index
    %c0_25 = arith.constant 0 : index
    %c0_26 = arith.constant 0 : index
    %48 = vector.load %arg10[%47, %c0_25, %c0_26] : memref<8x8x128xf32, #tpu.memory_space<vmem>>, vector<1x8x128xf32>
    %49 = vector.shape_cast %48 : vector<1x8x128xf32> to vector<8x128xf32>
    %50 = vector.shape_cast %46 : vector<8x128xf32> to vector<1x8x128xf32>
    tpu.vector_store %arg10[%47, %c0_25, %c0_26], %50 {strides = array<i32>} : memref<8x8x128xf32, #tpu.memory_space<vmem>>, vector<1x8x128xf32>,
    %c1_i32 = arith.constant 1 : i32
    %51 = arith.index_cast %c1_i32 : i32 to index
    %c0_27 = arith.constant 0 : index
    %c0_28 = arith.constant 0 : index
    %52 = vector.load %arg9[%51, %c0_27, %c0_28] : memref<8x8x512xf32, #tpu.memory_space<vmem>>, vector<1x8x512xf32>
    %53 = vector.shape_cast %52 : vector<1x8x512xf32> to vector<8x512xf32>
    %cst_29 = arith.constant dense<0.000000e+00> : vector<8x512xf32>
    %54 = tpu.matmul %46, %12, %cst_29 {dimension_numbers = #tpu.dot_dimension_numbers<[1], [0], [0], [1], [0, 0, 1, 1], [], []>} : vector<8x128xf32>, vector<128x512xf32>, vector<8x512xf32> -> vector<8x512xf32>
    %55 = arith.addf %53, %54 : vector<8x512xf32>
    %56 = vector.extract_strided_slice %55 {offsets = [0, 0], sizes = [8, 128], strides = [1, 1]} : vector<8x512xf32> to vector<8x128xf32>
    %57 = arith.negf %56 : vector<8x128xf32>
    %58 = math.exp %57 : vector<8x128xf32>
    %cst_30 = arith.constant 1.000000e+00 : f32
    %59 = vector.broadcast %cst_30 : f32 to vector<8x128xf32>
    %60 = arith.addf %59, %58 : vector<8x128xf32>
    %61 = arith.divf %59, %60 : vector<8x128xf32>
    %62 = vector.extract_strided_slice %55 {offsets = [0, 128], sizes = [8, 128], strides = [1, 1]} : vector<8x512xf32> to vector<8x128xf32>
    %63 = arith.negf %62 : vector<8x128xf32>
    %64 = math.exp %63 : vector<8x128xf32>
    %cst_31 = arith.constant 1.000000e+00 : f32
    %65 = vector.broadcast %cst_31 : f32 to vector<8x128xf32>
    %66 = arith.addf %65, %64 : vector<8x128xf32>
    %67 = arith.divf %65, %66 : vector<8x128xf32>
    %68 = vector.extract_strided_slice %55 {offsets = [0, 256], sizes = [8, 128], strides = [1, 1]} : vector<8x512xf32> to vector<8x128xf32>
    %69 = math.tanh %68 : vector<8x128xf32>
    %70 = vector.extract_strided_slice %55 {offsets = [0, 384], sizes = [8, 128], strides = [1, 1]} : vector<8x512xf32> to vector<8x128xf32>
    %71 = arith.negf %70 : vector<8x128xf32>
    %72 = math.exp %71 : vector<8x128xf32>
    %cst_32 = arith.constant 1.000000e+00 : f32
    %73 = vector.broadcast %cst_32 : f32 to vector<8x128xf32>
    %74 = arith.addf %73, %72 : vector<8x128xf32>
    %75 = arith.divf %73, %74 : vector<8x128xf32>
    %76 = arith.mulf %67, %44 : vector<8x128xf32>
    %77 = arith.mulf %61, %69 : vector<8x128xf32>
    %78 = arith.addf %76, %77 : vector<8x128xf32>
    %79 = math.tanh %78 : vector<8x128xf32>
    %80 = arith.mulf %75, %79 : vector<8x128xf32>
    %81 = arith.index_cast %c1_i32 : i32 to index
    %c0_33 = arith.constant 0 : index
    %c0_34 = arith.constant 0 : index
    %82 = vector.load %arg10[%81, %c0_33, %c0_34] : memref<8x8x128xf32, #tpu.memory_space<vmem>>, vector<1x8x128xf32>
    %83 = vector.shape_cast %82 : vector<1x8x128xf32> to vector<8x128xf32>
    %84 = vector.shape_cast %80 : vector<8x128xf32> to vector<1x8x128xf32>
    tpu.vector_store %arg10[%81, %c0_33, %c0_34], %84 {strides = array<i32>} : memref<8x8x128xf32, #tpu.memory_space<vmem>>, vector<1x8x128xf32>,
    %c2_i32 = arith.constant 2 : i32
    %85 = arith.index_cast %c2_i32 : i32 to index
    %c0_35 = arith.constant 0 : index
    %c0_36 = arith.constant 0 : index
    %86 = vector.load %arg9[%85, %c0_35, %c0_36] : memref<8x8x512xf32, #tpu.memory_space<vmem>>, vector<1x8x512xf32>
    %87 = vector.shape_cast %86 : vector<1x8x512xf32> to vector<8x512xf32>
    %cst_37 = arith.constant dense<0.000000e+00> : vector<8x512xf32>
    %88 = tpu.matmul %80, %12, %cst_37 {dimension_numbers = #tpu.dot_dimension_numbers<[1], [0], [0], [1], [0, 0, 1, 1], [], []>} : vector<8x128xf32>, vector<128x512xf32>, vector<8x512xf32> -> vector<8x512xf32>
    %89 = arith.addf %87, %88 : vector<8x512xf32>
    %90 = vector.extract_strided_slice %89 {offsets = [0, 0], sizes = [8, 128], strides = [1, 1]} : vector<8x512xf32> to vector<8x128xf32>
    %91 = arith.negf %90 : vector<8x128xf32>
    %92 = math.exp %91 : vector<8x128xf32>
    %cst_38 = arith.constant 1.000000e+00 : f32
    %93 = vector.broadcast %cst_38 : f32 to vector<8x128xf32>
    %94 = arith.addf %93, %92 : vector<8x128xf32>
    %95 = arith.divf %93, %94 : vector<8x128xf32>
    %96 = vector.extract_strided_slice %89 {offsets = [0, 128], sizes = [8, 128], strides = [1, 1]} : vector<8x512xf32> to vector<8x128xf32>
    %97 = arith.negf %96 : vector<8x128xf32>
    %98 = math.exp %97 : vector<8x128xf32>
    %cst_39 = arith.constant 1.000000e+00 : f32
    %99 = vector.broadcast %cst_39 : f32 to vector<8x128xf32>
    %100 = arith.addf %99, %98 : vector<8x128xf32>
    %101 = arith.divf %99, %100 : vector<8x128xf32>
    %102 = vector.extract_strided_slice %89 {offsets = [0, 256], sizes = [8, 128], strides = [1, 1]} : vector<8x512xf32> to vector<8x128xf32>
    %103 = math.tanh %102 : vector<8x128xf32>
    %104 = vector.extract_strided_slice %89 {offsets = [0, 384], sizes = [8, 128], strides = [1, 1]} : vector<8x512xf32> to vector<8x128xf32>
    %105 = arith.negf %104 : vector<8x128xf32>
    %106 = math.exp %105 : vector<8x128xf32>
    %cst_40 = arith.constant 1.000000e+00 : f32
    %107 = vector.broadcast %cst_40 : f32 to vector<8x128xf32>
    %108 = arith.addf %107, %106 : vector<8x128xf32>
    %109 = arith.divf %107, %108 : vector<8x128xf32>
    %110 = arith.mulf %101, %78 : vector<8x128xf32>
    %111 = arith.mulf %95, %103 : vector<8x128xf32>
    %112 = arith.addf %110, %111 : vector<8x128xf32>
    %113 = math.tanh %112 : vector<8x128xf32>
    %114 = arith.mulf %109, %113 : vector<8x128xf32>
    %115 = arith.index_cast %c2_i32 : i32 to index
    %c0_41 = arith.constant 0 : index
    %c0_42 = arith.constant 0 : index
    %116 = vector.load %arg10[%115, %c0_41, %c0_42] : memref<8x8x128xf32, #tpu.memory_space<vmem>>, vector<1x8x128xf32>
    %117 = vector.shape_cast %116 : vector<1x8x128xf32> to vector<8x128xf32>
    %118 = vector.shape_cast %114 : vector<8x128xf32> to vector<1x8x128xf32>
    tpu.vector_store %arg10[%115, %c0_41, %c0_42], %118 {strides = array<i32>} : memref<8x8x128xf32, #tpu.memory_space<vmem>>, vector<1x8x128xf32>,
    %c3_i32 = arith.constant 3 : i32
    %119 = arith.index_cast %c3_i32 : i32 to index
    %c0_43 = arith.constant 0 : index
    %c0_44 = arith.constant 0 : index
    %120 = vector.load %arg9[%119, %c0_43, %c0_44] : memref<8x8x512xf32, #tpu.memory_space<vmem>>, vector<1x8x512xf32>
    %121 = vector.shape_cast %120 : vector<1x8x512xf32> to vector<8x512xf32>
    %cst_45 = arith.constant dense<0.000000e+00> : vector<8x512xf32>
    %122 = tpu.matmul %114, %12, %cst_45 {dimension_numbers = #tpu.dot_dimension_numbers<[1], [0], [0], [1], [0, 0, 1, 1], [], []>} : vector<8x128xf32>, vector<128x512xf32>, vector<8x512xf32> -> vector<8x512xf32>
    %123 = arith.addf %121, %122 : vector<8x512xf32>
    %124 = vector.extract_strided_slice %123 {offsets = [0, 0], sizes = [8, 128], strides = [1, 1]} : vector<8x512xf32> to vector<8x128xf32>
    %125 = arith.negf %124 : vector<8x128xf32>
    %126 = math.exp %125 : vector<8x128xf32>
    %cst_46 = arith.constant 1.000000e+00 : f32
    %127 = vector.broadcast %cst_46 : f32 to vector<8x128xf32>
    %128 = arith.addf %127, %126 : vector<8x128xf32>
    %129 = arith.divf %127, %128 : vector<8x128xf32>
    %130 = vector.extract_strided_slice %123 {offsets = [0, 128], sizes = [8, 128], strides = [1, 1]} : vector<8x512xf32> to vector<8x128xf32>
    %131 = arith.negf %130 : vector<8x128xf32>
    %132 = math.exp %131 : vector<8x128xf32>
    %cst_47 = arith.constant 1.000000e+00 : f32
    %133 = vector.broadcast %cst_47 : f32 to vector<8x128xf32>
    %134 = arith.addf %133, %132 : vector<8x128xf32>
    %135 = arith.divf %133, %134 : vector<8x128xf32>
    %136 = vector.extract_strided_slice %123 {offsets = [0, 256], sizes = [8, 128], strides = [1, 1]} : vector<8x512xf32> to vector<8x128xf32>
    %137 = math.tanh %136 : vector<8x128xf32>
    %138 = vector.extract_strided_slice %123 {offsets = [0, 384], sizes = [8, 128], strides = [1, 1]} : vector<8x512xf32> to vector<8x128xf32>
    %139 = arith.negf %138 : vector<8x128xf32>
    %140 = math.exp %139 : vector<8x128xf32>
    %cst_48 = arith.constant 1.000000e+00 : f32
    %141 = vector.broadcast %cst_48 : f32 to vector<8x128xf32>
    %142 = arith.addf %141, %140 : vector<8x128xf32>
    %143 = arith.divf %141, %142 : vector<8x128xf32>
    %144 = arith.mulf %135, %112 : vector<8x128xf32>
    %145 = arith.mulf %129, %137 : vector<8x128xf32>
    %146 = arith.addf %144, %145 : vector<8x128xf32>
    %147 = math.tanh %146 : vector<8x128xf32>
    %148 = arith.mulf %143, %147 : vector<8x128xf32>
    %149 = arith.index_cast %c3_i32 : i32 to index
    %c0_49 = arith.constant 0 : index
    %c0_50 = arith.constant 0 : index
    %150 = vector.load %arg10[%149, %c0_49, %c0_50] : memref<8x8x128xf32, #tpu.memory_space<vmem>>, vector<1x8x128xf32>
    %151 = vector.shape_cast %150 : vector<1x8x128xf32> to vector<8x128xf32>
    %152 = vector.shape_cast %148 : vector<8x128xf32> to vector<1x8x128xf32>
    tpu.vector_store %arg10[%149, %c0_49, %c0_50], %152 {strides = array<i32>} : memref<8x8x128xf32, #tpu.memory_space<vmem>>, vector<1x8x128xf32>,
    %c4_i32 = arith.constant 4 : i32
    %153 = arith.index_cast %c4_i32 : i32 to index
    %c0_51 = arith.constant 0 : index
    %c0_52 = arith.constant 0 : index
    %154 = vector.load %arg9[%153, %c0_51, %c0_52] : memref<8x8x512xf32, #tpu.memory_space<vmem>>, vector<1x8x512xf32>
    %155 = vector.shape_cast %154 : vector<1x8x512xf32> to vector<8x512xf32>
    %cst_53 = arith.constant dense<0.000000e+00> : vector<8x512xf32>
    %156 = tpu.matmul %148, %12, %cst_53 {dimension_numbers = #tpu.dot_dimension_numbers<[1], [0], [0], [1], [0, 0, 1, 1], [], []>} : vector<8x128xf32>, vector<128x512xf32>, vector<8x512xf32> -> vector<8x512xf32>
    %157 = arith.addf %155, %156 : vector<8x512xf32>
    %158 = vector.extract_strided_slice %157 {offsets = [0, 0], sizes = [8, 128], strides = [1, 1]} : vector<8x512xf32> to vector<8x128xf32>
    %159 = arith.negf %158 : vector<8x128xf32>
    %160 = math.exp %159 : vector<8x128xf32>
    %cst_54 = arith.constant 1.000000e+00 : f32
    %161 = vector.broadcast %cst_54 : f32 to vector<8x128xf32>
    %162 = arith.addf %161, %160 : vector<8x128xf32>
    %163 = arith.divf %161, %162 : vector<8x128xf32>
    %164 = vector.extract_strided_slice %157 {offsets = [0, 128], sizes = [8, 128], strides = [1, 1]} : vector<8x512xf32> to vector<8x128xf32>
    %165 = arith.negf %164 : vector<8x128xf32>
    %166 = math.exp %165 : vector<8x128xf32>
    %cst_55 = arith.constant 1.000000e+00 : f32
    %167 = vector.broadcast %cst_55 : f32 to vector<8x128xf32>
    %168 = arith.addf %167, %166 : vector<8x128xf32>
    %169 = arith.divf %167, %168 : vector<8x128xf32>
    %170 = vector.extract_strided_slice %157 {offsets = [0, 256], sizes = [8, 128], strides = [1, 1]} : vector<8x512xf32> to vector<8x128xf32>
    %171 = math.tanh %170 : vector<8x128xf32>
    %172 = vector.extract_strided_slice %157 {offsets = [0, 384], sizes = [8, 128], strides = [1, 1]} : vector<8x512xf32> to vector<8x128xf32>
    %173 = arith.negf %172 : vector<8x128xf32>
    %174 = math.exp %173 : vector<8x128xf32>
    %cst_56 = arith.constant 1.000000e+00 : f32
    %175 = vector.broadcast %cst_56 : f32 to vector<8x128xf32>
    %176 = arith.addf %175, %174 : vector<8x128xf32>
    %177 = arith.divf %175, %176 : vector<8x128xf32>
    %178 = arith.mulf %169, %146 : vector<8x128xf32>
    %179 = arith.mulf %163, %171 : vector<8x128xf32>
    %180 = arith.addf %178, %179 : vector<8x128xf32>
    %181 = math.tanh %180 : vector<8x128xf32>
    %182 = arith.mulf %177, %181 : vector<8x128xf32>
    %183 = arith.index_cast %c4_i32 : i32 to index
    %c0_57 = arith.constant 0 : index
    %c0_58 = arith.constant 0 : index
    %184 = vector.load %arg10[%183, %c0_57, %c0_58] : memref<8x8x128xf32, #tpu.memory_space<vmem>>, vector<1x8x128xf32>
    %185 = vector.shape_cast %184 : vector<1x8x128xf32> to vector<8x128xf32>
    %186 = vector.shape_cast %182 : vector<8x128xf32> to vector<1x8x128xf32>
    tpu.vector_store %arg10[%183, %c0_57, %c0_58], %186 {strides = array<i32>} : memref<8x8x128xf32, #tpu.memory_space<vmem>>, vector<1x8x128xf32>,
    %c5_i32 = arith.constant 5 : i32
    %187 = arith.index_cast %c5_i32 : i32 to index
    %c0_59 = arith.constant 0 : index
    %c0_60 = arith.constant 0 : index
    %188 = vector.load %arg9[%187, %c0_59, %c0_60] : memref<8x8x512xf32, #tpu.memory_space<vmem>>, vector<1x8x512xf32>
    %189 = vector.shape_cast %188 : vector<1x8x512xf32> to vector<8x512xf32>
    %cst_61 = arith.constant dense<0.000000e+00> : vector<8x512xf32>
    %190 = tpu.matmul %182, %12, %cst_61 {dimension_numbers = #tpu.dot_dimension_numbers<[1], [0], [0], [1], [0, 0, 1, 1], [], []>} : vector<8x128xf32>, vector<128x512xf32>, vector<8x512xf32> -> vector<8x512xf32>
    %191 = arith.addf %189, %190 : vector<8x512xf32>
    %192 = vector.extract_strided_slice %191 {offsets = [0, 0], sizes = [8, 128], strides = [1, 1]} : vector<8x512xf32> to vector<8x128xf32>
    %193 = arith.negf %192 : vector<8x128xf32>
    %194 = math.exp %193 : vector<8x128xf32>
    %cst_62 = arith.constant 1.000000e+00 : f32
    %195 = vector.broadcast %cst_62 : f32 to vector<8x128xf32>
    %196 = arith.addf %195, %194 : vector<8x128xf32>
    %197 = arith.divf %195, %196 : vector<8x128xf32>
    %198 = vector.extract_strided_slice %191 {offsets = [0, 128], sizes = [8, 128], strides = [1, 1]} : vector<8x512xf32> to vector<8x128xf32>
    %199 = arith.negf %198 : vector<8x128xf32>
    %200 = math.exp %199 : vector<8x128xf32>
    %cst_63 = arith.constant 1.000000e+00 : f32
    %201 = vector.broadcast %cst_63 : f32 to vector<8x128xf32>
    %202 = arith.addf %201, %200 : vector<8x128xf32>
    %203 = arith.divf %201, %202 : vector<8x128xf32>
    %204 = vector.extract_strided_slice %191 {offsets = [0, 256], sizes = [8, 128], strides = [1, 1]} : vector<8x512xf32> to vector<8x128xf32>
    %205 = math.tanh %204 : vector<8x128xf32>
    %206 = vector.extract_strided_slice %191 {offsets = [0, 384], sizes = [8, 128], strides = [1, 1]} : vector<8x512xf32> to vector<8x128xf32>
    %207 = arith.negf %206 : vector<8x128xf32>
    %208 = math.exp %207 : vector<8x128xf32>
    %cst_64 = arith.constant 1.000000e+00 : f32
    %209 = vector.broadcast %cst_64 : f32 to vector<8x128xf32>
    %210 = arith.addf %209, %208 : vector<8x128xf32>
    %211 = arith.divf %209, %210 : vector<8x128xf32>
    %212 = arith.mulf %203, %180 : vector<8x128xf32>
    %213 = arith.mulf %197, %205 : vector<8x128xf32>
    %214 = arith.addf %212, %213 : vector<8x128xf32>
    %215 = math.tanh %214 : vector<8x128xf32>
    %216 = arith.mulf %211, %215 : vector<8x128xf32>
    %217 = arith.index_cast %c5_i32 : i32 to index
    %c0_65 = arith.constant 0 : index
    %c0_66 = arith.constant 0 : index
    %218 = vector.load %arg10[%217, %c0_65, %c0_66] : memref<8x8x128xf32, #tpu.memory_space<vmem>>, vector<1x8x128xf32>
    %219 = vector.shape_cast %218 : vector<1x8x128xf32> to vector<8x128xf32>
    %220 = vector.shape_cast %216 : vector<8x128xf32> to vector<1x8x128xf32>
    tpu.vector_store %arg10[%217, %c0_65, %c0_66], %220 {strides = array<i32>} : memref<8x8x128xf32, #tpu.memory_space<vmem>>, vector<1x8x128xf32>,
    %c6_i32 = arith.constant 6 : i32
    %221 = arith.index_cast %c6_i32 : i32 to index
    %c0_67 = arith.constant 0 : index
    %c0_68 = arith.constant 0 : index
    %222 = vector.load %arg9[%221, %c0_67, %c0_68] : memref<8x8x512xf32, #tpu.memory_space<vmem>>, vector<1x8x512xf32>
    %223 = vector.shape_cast %222 : vector<1x8x512xf32> to vector<8x512xf32>
    %cst_69 = arith.constant dense<0.000000e+00> : vector<8x512xf32>
    %224 = tpu.matmul %216, %12, %cst_69 {dimension_numbers = #tpu.dot_dimension_numbers<[1], [0], [0], [1], [0, 0, 1, 1], [], []>} : vector<8x128xf32>, vector<128x512xf32>, vector<8x512xf32> -> vector<8x512xf32>
    %225 = arith.addf %223, %224 : vector<8x512xf32>
    %226 = vector.extract_strided_slice %225 {offsets = [0, 0], sizes = [8, 128], strides = [1, 1]} : vector<8x512xf32> to vector<8x128xf32>
    %227 = arith.negf %226 : vector<8x128xf32>
    %228 = math.exp %227 : vector<8x128xf32>
    %cst_70 = arith.constant 1.000000e+00 : f32
    %229 = vector.broadcast %cst_70 : f32 to vector<8x128xf32>
    %230 = arith.addf %229, %228 : vector<8x128xf32>
    %231 = arith.divf %229, %230 : vector<8x128xf32>
    %232 = vector.extract_strided_slice %225 {offsets = [0, 128], sizes = [8, 128], strides = [1, 1]} : vector<8x512xf32> to vector<8x128xf32>
    %233 = arith.negf %232 : vector<8x128xf32>
    %234 = math.exp %233 : vector<8x128xf32>
    %cst_71 = arith.constant 1.000000e+00 : f32
    %235 = vector.broadcast %cst_71 : f32 to vector<8x128xf32>
    %236 = arith.addf %235, %234 : vector<8x128xf32>
    %237 = arith.divf %235, %236 : vector<8x128xf32>
    %238 = vector.extract_strided_slice %225 {offsets = [0, 256], sizes = [8, 128], strides = [1, 1]} : vector<8x512xf32> to vector<8x128xf32>
    %239 = math.tanh %238 : vector<8x128xf32>
    %240 = vector.extract_strided_slice %225 {offsets = [0, 384], sizes = [8, 128], strides = [1, 1]} : vector<8x512xf32> to vector<8x128xf32>
    %241 = arith.negf %240 : vector<8x128xf32>
    %242 = math.exp %241 : vector<8x128xf32>
    %cst_72 = arith.constant 1.000000e+00 : f32
    %243 = vector.broadcast %cst_72 : f32 to vector<8x128xf32>
    %244 = arith.addf %243, %242 : vector<8x128xf32>
    %245 = arith.divf %243, %244 : vector<8x128xf32>
    %246 = arith.mulf %237, %214 : vector<8x128xf32>
    %247 = arith.mulf %231, %239 : vector<8x128xf32>
    %248 = arith.addf %246, %247 : vector<8x128xf32>
    %249 = math.tanh %248 : vector<8x128xf32>
    %250 = arith.mulf %245, %249 : vector<8x128xf32>
    %251 = arith.index_cast %c6_i32 : i32 to index
    %c0_73 = arith.constant 0 : index
    %c0_74 = arith.constant 0 : index
    %252 = vector.load %arg10[%251, %c0_73, %c0_74] : memref<8x8x128xf32, #tpu.memory_space<vmem>>, vector<1x8x128xf32>
    %253 = vector.shape_cast %252 : vector<1x8x128xf32> to vector<8x128xf32>
    %254 = vector.shape_cast %250 : vector<8x128xf32> to vector<1x8x128xf32>
    tpu.vector_store %arg10[%251, %c0_73, %c0_74], %254 {strides = array<i32>} : memref<8x8x128xf32, #tpu.memory_space<vmem>>, vector<1x8x128xf32>,
    %c7_i32 = arith.constant 7 : i32
    %255 = arith.index_cast %c7_i32 : i32 to index
    %c0_75 = arith.constant 0 : index
    %c0_76 = arith.constant 0 : index
    %256 = vector.load %arg9[%255, %c0_75, %c0_76] : memref<8x8x512xf32, #tpu.memory_space<vmem>>, vector<1x8x512xf32>
    %257 = vector.shape_cast %256 : vector<1x8x512xf32> to vector<8x512xf32>
    %cst_77 = arith.constant dense<0.000000e+00> : vector<8x512xf32>
    %258 = tpu.matmul %250, %12, %cst_77 {dimension_numbers = #tpu.dot_dimension_numbers<[1], [0], [0], [1], [0, 0, 1, 1], [], []>} : vector<8x128xf32>, vector<128x512xf32>, vector<8x512xf32> -> vector<8x512xf32>
    %259 = arith.addf %257, %258 : vector<8x512xf32>
    %260 = vector.extract_strided_slice %259 {offsets = [0, 0], sizes = [8, 128], strides = [1, 1]} : vector<8x512xf32> to vector<8x128xf32>
    %261 = arith.negf %260 : vector<8x128xf32>
    %262 = math.exp %261 : vector<8x128xf32>
    %cst_78 = arith.constant 1.000000e+00 : f32
    %263 = vector.broadcast %cst_78 : f32 to vector<8x128xf32>
    %264 = arith.addf %263, %262 : vector<8x128xf32>
    %265 = arith.divf %263, %264 : vector<8x128xf32>
    %266 = vector.extract_strided_slice %259 {offsets = [0, 128], sizes = [8, 128], strides = [1, 1]} : vector<8x512xf32> to vector<8x128xf32>
    %267 = arith.negf %266 : vector<8x128xf32>
    %268 = math.exp %267 : vector<8x128xf32>
    %cst_79 = arith.constant 1.000000e+00 : f32
    %269 = vector.broadcast %cst_79 : f32 to vector<8x128xf32>
    %270 = arith.addf %269, %268 : vector<8x128xf32>
    %271 = arith.divf %269, %270 : vector<8x128xf32>
    %272 = vector.extract_strided_slice %259 {offsets = [0, 256], sizes = [8, 128], strides = [1, 1]} : vector<8x512xf32> to vector<8x128xf32>
    %273 = math.tanh %272 : vector<8x128xf32>
    %274 = vector.extract_strided_slice %259 {offsets = [0, 384], sizes = [8, 128], strides = [1, 1]} : vector<8x512xf32> to vector<8x128xf32>
    %275 = arith.negf %274 : vector<8x128xf32>
    %276 = math.exp %275 : vector<8x128xf32>
    %cst_80 = arith.constant 1.000000e+00 : f32
    %277 = vector.broadcast %cst_80 : f32 to vector<8x128xf32>
    %278 = arith.addf %277, %276 : vector<8x128xf32>
    %279 = arith.divf %277, %278 : vector<8x128xf32>
    %280 = arith.mulf %271, %248 : vector<8x128xf32>
    %281 = arith.mulf %265, %273 : vector<8x128xf32>
    %282 = arith.addf %280, %281 : vector<8x128xf32>
    %283 = math.tanh %282 : vector<8x128xf32>
    %284 = arith.mulf %279, %283 : vector<8x128xf32>
    %285 = arith.index_cast %c7_i32 : i32 to index
    %c0_81 = arith.constant 0 : index
    %c0_82 = arith.constant 0 : index
    %286 = vector.load %arg10[%285, %c0_81, %c0_82] : memref<8x8x128xf32, #tpu.memory_space<vmem>>, vector<1x8x128xf32>
    %287 = vector.shape_cast %286 : vector<1x8x128xf32> to vector<8x128xf32>
    %288 = vector.shape_cast %284 : vector<8x128xf32> to vector<1x8x128xf32>
    tpu.vector_store %arg10[%285, %c0_81, %c0_82], %288 {strides = array<i32>} : memref<8x8x128xf32, #tpu.memory_space<vmem>>, vector<1x8x128xf32>,
    %c8_i32 = arith.constant 8 : i32
    %c0_83 = arith.constant 0 : index
    %c0_84 = arith.constant 0 : index
    %c0_85 = arith.constant 0 : index
    %289 = vector.load %arg11[%c0_83, %c0_84, %c0_85] : memref<2x8x128xf32, #tpu.memory_space<vmem>>, vector<1x8x128xf32>
    %290 = vector.shape_cast %289 : vector<1x8x128xf32> to vector<8x128xf32>
    %291 = vector.shape_cast %284 : vector<8x128xf32> to vector<1x8x128xf32>
    tpu.vector_store %arg11[%c0_83, %c0_84, %c0_85], %291 {strides = array<i32>} : memref<2x8x128xf32, #tpu.memory_space<vmem>>, vector<1x8x128xf32>,
    %c0_86 = arith.constant 0 : index
    %c0_87 = arith.constant 0 : index
    %c0_88 = arith.constant 0 : index
    %292 = vector.load %arg12[%c0_86, %c0_87, %c0_88] : memref<2x8x128xf32, #tpu.memory_space<vmem>>, vector<1x8x128xf32>
    %293 = vector.shape_cast %292 : vector<1x8x128xf32> to vector<8x128xf32>
    %294 = vector.shape_cast %282 : vector<8x128xf32> to vector<1x8x128xf32>
    tpu.vector_store %arg12[%c0_86, %c0_87, %c0_88], %294 {strides = array<i32>} : memref<2x8x128xf32, #tpu.memory_space<vmem>>, vector<1x8x128xf32>,
    %c0_89 = arith.constant 0 : index
    %c0_90 = arith.constant 0 : index
    %c0_91 = arith.constant 0 : index
    %295 = vector.load %arg10[%c0_89, %c0_90, %c0_91] : memref<8x8x128xf32, #tpu.memory_space<vmem>>, vector<8x8x128xf32>
    %296 = vector.shape_cast %295 : vector<8x8x128xf32> to vector<64x128xf32>
    %c0_92 = arith.constant 0 : index
    %c0_93 = arith.constant 0 : index
    %297 = vector.load %arg5[%c0_92, %c0_93] : memref<128x512xf32, #tpu.memory_space<vmem>>, vector<128x512xf32>
    %cst_94 = arith.constant dense<0.000000e+00> : vector<64x512xf32>
    %298 = tpu.matmul %296, %297, %cst_94 {dimension_numbers = #tpu.dot_dimension_numbers<[1], [0], [0], [1], [0, 0, 1, 1], [], []>} : vector<64x128xf32>, vector<128x512xf32>, vector<64x512xf32> -> vector<64x512xf32>
    %c0_95 = arith.constant 0 : index
    %c0_96 = arith.constant 0 : index
    %299 = vector.load %arg7[%c0_95, %c0_96] : memref<1x512xf32, #tpu.memory_space<vmem>>, vector<1x512xf32>
    %300 = vector.broadcast %299 : vector<1x512xf32> to vector<64x512xf32>
    %301 = arith.addf %298, %300 : vector<64x512xf32>
    %302 = vector.shape_cast %301 : vector<64x512xf32> to vector<8x8x512xf32>
    %c0_97 = arith.constant 0 : index
    %c0_98 = arith.constant 0 : index
    %c0_99 = arith.constant 0 : index
    %303 = vector.load %arg9[%c0_97, %c0_98, %c0_99] : memref<8x8x512xf32, #tpu.memory_space<vmem>>, vector<8x8x512xf32>
    tpu.vector_store %arg9[%c0_97, %c0_98, %c0_99], %302 {strides = array<i32>} : memref<8x8x512xf32, #tpu.memory_space<vmem>>, vector<8x8x512xf32>,
    %c0_100 = arith.constant 0 : index
    %c0_101 = arith.constant 0 : index
    %304 = vector.load %arg6[%c0_100, %c0_101] : memref<128x512xf32, #tpu.memory_space<vmem>>, vector<128x512xf32>
    %c1 = arith.constant 1 : index
    %c0_102 = arith.constant 0 : index
    %c0_103 = arith.constant 0 : index
    %305 = vector.load %arg11[%c1, %c0_102, %c0_103] : memref<2x8x128xf32, #tpu.memory_space<vmem>>, vector<1x8x128xf32>
    %306 = vector.shape_cast %305 : vector<1x8x128xf32> to vector<8x128xf32>
    %c1_104 = arith.constant 1 : index
    %c0_105 = arith.constant 0 : index
    %c0_106 = arith.constant 0 : index
    %307 = vector.load %arg12[%c1_104, %c0_105, %c0_106] : memref<2x8x128xf32, #tpu.memory_space<vmem>>, vector<1x8x128xf32>
    %308 = vector.shape_cast %307 : vector<1x8x128xf32> to vector<8x128xf32>
    %c0_i32_107 = arith.constant 0 : i32
    %309 = arith.index_cast %c0_i32_107 : i32 to index
    %c0_108 = arith.constant 0 : index
    %c0_109 = arith.constant 0 : index
    %310 = vector.load %arg9[%309, %c0_108, %c0_109] : memref<8x8x512xf32, #tpu.memory_space<vmem>>, vector<1x8x512xf32>
    %311 = vector.shape_cast %310 : vector<1x8x512xf32> to vector<8x512xf32>
    %cst_110 = arith.constant dense<0.000000e+00> : vector<8x512xf32>
    %312 = tpu.matmul %306, %304, %cst_110 {dimension_numbers = #tpu.dot_dimension_numbers<[1], [0], [0], [1], [0, 0, 1, 1], [], []>} : vector<8x128xf32>, vector<128x512xf32>, vector<8x512xf32> -> vector<8x512xf32>
    %313 = arith.addf %311, %312 : vector<8x512xf32>
    %314 = vector.extract_strided_slice %313 {offsets = [0, 0], sizes = [8, 128], strides = [1, 1]} : vector<8x512xf32> to vector<8x128xf32>
    %315 = arith.negf %314 : vector<8x128xf32>
    %316 = math.exp %315 : vector<8x128xf32>
    %cst_111 = arith.constant 1.000000e+00 : f32
    %317 = vector.broadcast %cst_111 : f32 to vector<8x128xf32>
    %318 = arith.addf %317, %316 : vector<8x128xf32>
    %319 = arith.divf %317, %318 : vector<8x128xf32>
    %320 = vector.extract_strided_slice %313 {offsets = [0, 128], sizes = [8, 128], strides = [1, 1]} : vector<8x512xf32> to vector<8x128xf32>
    %321 = arith.negf %320 : vector<8x128xf32>
    %322 = math.exp %321 : vector<8x128xf32>
    %cst_112 = arith.constant 1.000000e+00 : f32
    %323 = vector.broadcast %cst_112 : f32 to vector<8x128xf32>
    %324 = arith.addf %323, %322 : vector<8x128xf32>
    %325 = arith.divf %323, %324 : vector<8x128xf32>
    %326 = vector.extract_strided_slice %313 {offsets = [0, 256], sizes = [8, 128], strides = [1, 1]} : vector<8x512xf32> to vector<8x128xf32>
    %327 = math.tanh %326 : vector<8x128xf32>
    %328 = vector.extract_strided_slice %313 {offsets = [0, 384], sizes = [8, 128], strides = [1, 1]} : vector<8x512xf32> to vector<8x128xf32>
    %329 = arith.negf %328 : vector<8x128xf32>
    %330 = math.exp %329 : vector<8x128xf32>
    %cst_113 = arith.constant 1.000000e+00 : f32
    %331 = vector.broadcast %cst_113 : f32 to vector<8x128xf32>
    %332 = arith.addf %331, %330 : vector<8x128xf32>
    %333 = arith.divf %331, %332 : vector<8x128xf32>
    %334 = arith.mulf %325, %308 : vector<8x128xf32>
    %335 = arith.mulf %319, %327 : vector<8x128xf32>
    %336 = arith.addf %334, %335 : vector<8x128xf32>
    %337 = math.tanh %336 : vector<8x128xf32>
    %338 = arith.mulf %333, %337 : vector<8x128xf32>
    %339 = arith.index_cast %c0_i32_107 : i32 to index
    %c0_114 = arith.constant 0 : index
    %c0_115 = arith.constant 0 : index
    %340 = vector.load %arg8[%339, %c0_114, %c0_115] : memref<8x8x128xf32, #tpu.memory_space<vmem>>, vector<1x8x128xf32>
    %341 = vector.shape_cast %340 : vector<1x8x128xf32> to vector<8x128xf32>
    %342 = vector.shape_cast %338 : vector<8x128xf32> to vector<1x8x128xf32>
    tpu.vector_store %arg8[%339, %c0_114, %c0_115], %342 {strides = array<i32>} : memref<8x8x128xf32, #tpu.memory_space<vmem>>, vector<1x8x128xf32>,
    %c1_i32_116 = arith.constant 1 : i32
    %343 = arith.index_cast %c1_i32_116 : i32 to index
    %c0_117 = arith.constant 0 : index
    %c0_118 = arith.constant 0 : index
    %344 = vector.load %arg9[%343, %c0_117, %c0_118] : memref<8x8x512xf32, #tpu.memory_space<vmem>>, vector<1x8x512xf32>
    %345 = vector.shape_cast %344 : vector<1x8x512xf32> to vector<8x512xf32>
    %cst_119 = arith.constant dense<0.000000e+00> : vector<8x512xf32>
    %346 = tpu.matmul %338, %304, %cst_119 {dimension_numbers = #tpu.dot_dimension_numbers<[1], [0], [0], [1], [0, 0, 1, 1], [], []>} : vector<8x128xf32>, vector<128x512xf32>, vector<8x512xf32> -> vector<8x512xf32>
    %347 = arith.addf %345, %346 : vector<8x512xf32>
    %348 = vector.extract_strided_slice %347 {offsets = [0, 0], sizes = [8, 128], strides = [1, 1]} : vector<8x512xf32> to vector<8x128xf32>
    %349 = arith.negf %348 : vector<8x128xf32>
    %350 = math.exp %349 : vector<8x128xf32>
    %cst_120 = arith.constant 1.000000e+00 : f32
    %351 = vector.broadcast %cst_120 : f32 to vector<8x128xf32>
    %352 = arith.addf %351, %350 : vector<8x128xf32>
    %353 = arith.divf %351, %352 : vector<8x128xf32>
    %354 = vector.extract_strided_slice %347 {offsets = [0, 128], sizes = [8, 128], strides = [1, 1]} : vector<8x512xf32> to vector<8x128xf32>
    %355 = arith.negf %354 : vector<8x128xf32>
    %356 = math.exp %355 : vector<8x128xf32>
    %cst_121 = arith.constant 1.000000e+00 : f32
    %357 = vector.broadcast %cst_121 : f32 to vector<8x128xf32>
    %358 = arith.addf %357, %356 : vector<8x128xf32>
    %359 = arith.divf %357, %358 : vector<8x128xf32>
    %360 = vector.extract_strided_slice %347 {offsets = [0, 256], sizes = [8, 128], strides = [1, 1]} : vector<8x512xf32> to vector<8x128xf32>
    %361 = math.tanh %360 : vector<8x128xf32>
    %362 = vector.extract_strided_slice %347 {offsets = [0, 384], sizes = [8, 128], strides = [1, 1]} : vector<8x512xf32> to vector<8x128xf32>
    %363 = arith.negf %362 : vector<8x128xf32>
    %364 = math.exp %363 : vector<8x128xf32>
    %cst_122 = arith.constant 1.000000e+00 : f32
    %365 = vector.broadcast %cst_122 : f32 to vector<8x128xf32>
    %366 = arith.addf %365, %364 : vector<8x128xf32>
    %367 = arith.divf %365, %366 : vector<8x128xf32>
    %368 = arith.mulf %359, %336 : vector<8x128xf32>
    %369 = arith.mulf %353, %361 : vector<8x128xf32>
    %370 = arith.addf %368, %369 : vector<8x128xf32>
    %371 = math.tanh %370 : vector<8x128xf32>
    %372 = arith.mulf %367, %371 : vector<8x128xf32>
    %373 = arith.index_cast %c1_i32_116 : i32 to index
    %c0_123 = arith.constant 0 : index
    %c0_124 = arith.constant 0 : index
    %374 = vector.load %arg8[%373, %c0_123, %c0_124] : memref<8x8x128xf32, #tpu.memory_space<vmem>>, vector<1x8x128xf32>
    %375 = vector.shape_cast %374 : vector<1x8x128xf32> to vector<8x128xf32>
    %376 = vector.shape_cast %372 : vector<8x128xf32> to vector<1x8x128xf32>
    tpu.vector_store %arg8[%373, %c0_123, %c0_124], %376 {strides = array<i32>} : memref<8x8x128xf32, #tpu.memory_space<vmem>>, vector<1x8x128xf32>,
    %c2_i32_125 = arith.constant 2 : i32
    %377 = arith.index_cast %c2_i32_125 : i32 to index
    %c0_126 = arith.constant 0 : index
    %c0_127 = arith.constant 0 : index
    %378 = vector.load %arg9[%377, %c0_126, %c0_127] : memref<8x8x512xf32, #tpu.memory_space<vmem>>, vector<1x8x512xf32>
    %379 = vector.shape_cast %378 : vector<1x8x512xf32> to vector<8x512xf32>
    %cst_128 = arith.constant dense<0.000000e+00> : vector<8x512xf32>
    %380 = tpu.matmul %372, %304, %cst_128 {dimension_numbers = #tpu.dot_dimension_numbers<[1], [0], [0], [1], [0, 0, 1, 1], [], []>} : vector<8x128xf32>, vector<128x512xf32>, vector<8x512xf32> -> vector<8x512xf32>
    %381 = arith.addf %379, %380 : vector<8x512xf32>
    %382 = vector.extract_strided_slice %381 {offsets = [0, 0], sizes = [8, 128], strides = [1, 1]} : vector<8x512xf32> to vector<8x128xf32>
    %383 = arith.negf %382 : vector<8x128xf32>
    %384 = math.exp %383 : vector<8x128xf32>
    %cst_129 = arith.constant 1.000000e+00 : f32
    %385 = vector.broadcast %cst_129 : f32 to vector<8x128xf32>
    %386 = arith.addf %385, %384 : vector<8x128xf32>
    %387 = arith.divf %385, %386 : vector<8x128xf32>
    %388 = vector.extract_strided_slice %381 {offsets = [0, 128], sizes = [8, 128], strides = [1, 1]} : vector<8x512xf32> to vector<8x128xf32>
    %389 = arith.negf %388 : vector<8x128xf32>
    %390 = math.exp %389 : vector<8x128xf32>
    %cst_130 = arith.constant 1.000000e+00 : f32
    %391 = vector.broadcast %cst_130 : f32 to vector<8x128xf32>
    %392 = arith.addf %391, %390 : vector<8x128xf32>
    %393 = arith.divf %391, %392 : vector<8x128xf32>
    %394 = vector.extract_strided_slice %381 {offsets = [0, 256], sizes = [8, 128], strides = [1, 1]} : vector<8x512xf32> to vector<8x128xf32>
    %395 = math.tanh %394 : vector<8x128xf32>
    %396 = vector.extract_strided_slice %381 {offsets = [0, 384], sizes = [8, 128], strides = [1, 1]} : vector<8x512xf32> to vector<8x128xf32>
    %397 = arith.negf %396 : vector<8x128xf32>
    %398 = math.exp %397 : vector<8x128xf32>
    %cst_131 = arith.constant 1.000000e+00 : f32
    %399 = vector.broadcast %cst_131 : f32 to vector<8x128xf32>
    %400 = arith.addf %399, %398 : vector<8x128xf32>
    %401 = arith.divf %399, %400 : vector<8x128xf32>
    %402 = arith.mulf %393, %370 : vector<8x128xf32>
    %403 = arith.mulf %387, %395 : vector<8x128xf32>
    %404 = arith.addf %402, %403 : vector<8x128xf32>
    %405 = math.tanh %404 : vector<8x128xf32>
    %406 = arith.mulf %401, %405 : vector<8x128xf32>
    %407 = arith.index_cast %c2_i32_125 : i32 to index
    %c0_132 = arith.constant 0 : index
    %c0_133 = arith.constant 0 : index
    %408 = vector.load %arg8[%407, %c0_132, %c0_133] : memref<8x8x128xf32, #tpu.memory_space<vmem>>, vector<1x8x128xf32>
    %409 = vector.shape_cast %408 : vector<1x8x128xf32> to vector<8x128xf32>
    %410 = vector.shape_cast %406 : vector<8x128xf32> to vector<1x8x128xf32>
    tpu.vector_store %arg8[%407, %c0_132, %c0_133], %410 {strides = array<i32>} : memref<8x8x128xf32, #tpu.memory_space<vmem>>, vector<1x8x128xf32>,
    %c3_i32_134 = arith.constant 3 : i32
    %411 = arith.index_cast %c3_i32_134 : i32 to index
    %c0_135 = arith.constant 0 : index
    %c0_136 = arith.constant 0 : index
    %412 = vector.load %arg9[%411, %c0_135, %c0_136] : memref<8x8x512xf32, #tpu.memory_space<vmem>>, vector<1x8x512xf32>
    %413 = vector.shape_cast %412 : vector<1x8x512xf32> to vector<8x512xf32>
    %cst_137 = arith.constant dense<0.000000e+00> : vector<8x512xf32>
    %414 = tpu.matmul %406, %304, %cst_137 {dimension_numbers = #tpu.dot_dimension_numbers<[1], [0], [0], [1], [0, 0, 1, 1], [], []>} : vector<8x128xf32>, vector<128x512xf32>, vector<8x512xf32> -> vector<8x512xf32>
    %415 = arith.addf %413, %414 : vector<8x512xf32>
    %416 = vector.extract_strided_slice %415 {offsets = [0, 0], sizes = [8, 128], strides = [1, 1]} : vector<8x512xf32> to vector<8x128xf32>
    %417 = arith.negf %416 : vector<8x128xf32>
    %418 = math.exp %417 : vector<8x128xf32>
    %cst_138 = arith.constant 1.000000e+00 : f32
    %419 = vector.broadcast %cst_138 : f32 to vector<8x128xf32>
    %420 = arith.addf %419, %418 : vector<8x128xf32>
    %421 = arith.divf %419, %420 : vector<8x128xf32>
    %422 = vector.extract_strided_slice %415 {offsets = [0, 128], sizes = [8, 128], strides = [1, 1]} : vector<8x512xf32> to vector<8x128xf32>
    %423 = arith.negf %422 : vector<8x128xf32>
    %424 = math.exp %423 : vector<8x128xf32>
    %cst_139 = arith.constant 1.000000e+00 : f32
    %425 = vector.broadcast %cst_139 : f32 to vector<8x128xf32>
    %426 = arith.addf %425, %424 : vector<8x128xf32>
    %427 = arith.divf %425, %426 : vector<8x128xf32>
    %428 = vector.extract_strided_slice %415 {offsets = [0, 256], sizes = [8, 128], strides = [1, 1]} : vector<8x512xf32> to vector<8x128xf32>
    %429 = math.tanh %428 : vector<8x128xf32>
    %430 = vector.extract_strided_slice %415 {offsets = [0, 384], sizes = [8, 128], strides = [1, 1]} : vector<8x512xf32> to vector<8x128xf32>
    %431 = arith.negf %430 : vector<8x128xf32>
    %432 = math.exp %431 : vector<8x128xf32>
    %cst_140 = arith.constant 1.000000e+00 : f32
    %433 = vector.broadcast %cst_140 : f32 to vector<8x128xf32>
    %434 = arith.addf %433, %432 : vector<8x128xf32>
    %435 = arith.divf %433, %434 : vector<8x128xf32>
    %436 = arith.mulf %427, %404 : vector<8x128xf32>
    %437 = arith.mulf %421, %429 : vector<8x128xf32>
    %438 = arith.addf %436, %437 : vector<8x128xf32>
    %439 = math.tanh %438 : vector<8x128xf32>
    %440 = arith.mulf %435, %439 : vector<8x128xf32>
    %441 = arith.index_cast %c3_i32_134 : i32 to index
    %c0_141 = arith.constant 0 : index
    %c0_142 = arith.constant 0 : index
    %442 = vector.load %arg8[%441, %c0_141, %c0_142] : memref<8x8x128xf32, #tpu.memory_space<vmem>>, vector<1x8x128xf32>
    %443 = vector.shape_cast %442 : vector<1x8x128xf32> to vector<8x128xf32>
    %444 = vector.shape_cast %440 : vector<8x128xf32> to vector<1x8x128xf32>
    tpu.vector_store %arg8[%441, %c0_141, %c0_142], %444 {strides = array<i32>} : memref<8x8x128xf32, #tpu.memory_space<vmem>>, vector<1x8x128xf32>,
    %c4_i32_143 = arith.constant 4 : i32
    %445 = arith.index_cast %c4_i32_143 : i32 to index
    %c0_144 = arith.constant 0 : index
    %c0_145 = arith.constant 0 : index
    %446 = vector.load %arg9[%445, %c0_144, %c0_145] : memref<8x8x512xf32, #tpu.memory_space<vmem>>, vector<1x8x512xf32>
    %447 = vector.shape_cast %446 : vector<1x8x512xf32> to vector<8x512xf32>
    %cst_146 = arith.constant dense<0.000000e+00> : vector<8x512xf32>
    %448 = tpu.matmul %440, %304, %cst_146 {dimension_numbers = #tpu.dot_dimension_numbers<[1], [0], [0], [1], [0, 0, 1, 1], [], []>} : vector<8x128xf32>, vector<128x512xf32>, vector<8x512xf32> -> vector<8x512xf32>
    %449 = arith.addf %447, %448 : vector<8x512xf32>
    %450 = vector.extract_strided_slice %449 {offsets = [0, 0], sizes = [8, 128], strides = [1, 1]} : vector<8x512xf32> to vector<8x128xf32>
    %451 = arith.negf %450 : vector<8x128xf32>
    %452 = math.exp %451 : vector<8x128xf32>
    %cst_147 = arith.constant 1.000000e+00 : f32
    %453 = vector.broadcast %cst_147 : f32 to vector<8x128xf32>
    %454 = arith.addf %453, %452 : vector<8x128xf32>
    %455 = arith.divf %453, %454 : vector<8x128xf32>
    %456 = vector.extract_strided_slice %449 {offsets = [0, 128], sizes = [8, 128], strides = [1, 1]} : vector<8x512xf32> to vector<8x128xf32>
    %457 = arith.negf %456 : vector<8x128xf32>
    %458 = math.exp %457 : vector<8x128xf32>
    %cst_148 = arith.constant 1.000000e+00 : f32
    %459 = vector.broadcast %cst_148 : f32 to vector<8x128xf32>
    %460 = arith.addf %459, %458 : vector<8x128xf32>
    %461 = arith.divf %459, %460 : vector<8x128xf32>
    %462 = vector.extract_strided_slice %449 {offsets = [0, 256], sizes = [8, 128], strides = [1, 1]} : vector<8x512xf32> to vector<8x128xf32>
    %463 = math.tanh %462 : vector<8x128xf32>
    %464 = vector.extract_strided_slice %449 {offsets = [0, 384], sizes = [8, 128], strides = [1, 1]} : vector<8x512xf32> to vector<8x128xf32>
    %465 = arith.negf %464 : vector<8x128xf32>
    %466 = math.exp %465 : vector<8x128xf32>
    %cst_149 = arith.constant 1.000000e+00 : f32
    %467 = vector.broadcast %cst_149 : f32 to vector<8x128xf32>
    %468 = arith.addf %467, %466 : vector<8x128xf32>
    %469 = arith.divf %467, %468 : vector<8x128xf32>
    %470 = arith.mulf %461, %438 : vector<8x128xf32>
    %471 = arith.mulf %455, %463 : vector<8x128xf32>
    %472 = arith.addf %470, %471 : vector<8x128xf32>
    %473 = math.tanh %472 : vector<8x128xf32>
    %474 = arith.mulf %469, %473 : vector<8x128xf32>
    %475 = arith.index_cast %c4_i32_143 : i32 to index
    %c0_150 = arith.constant 0 : index
    %c0_151 = arith.constant 0 : index
    %476 = vector.load %arg8[%475, %c0_150, %c0_151] : memref<8x8x128xf32, #tpu.memory_space<vmem>>, vector<1x8x128xf32>
    %477 = vector.shape_cast %476 : vector<1x8x128xf32> to vector<8x128xf32>
    %478 = vector.shape_cast %474 : vector<8x128xf32> to vector<1x8x128xf32>
    tpu.vector_store %arg8[%475, %c0_150, %c0_151], %478 {strides = array<i32>} : memref<8x8x128xf32, #tpu.memory_space<vmem>>, vector<1x8x128xf32>,
    %c5_i32_152 = arith.constant 5 : i32
    %479 = arith.index_cast %c5_i32_152 : i32 to index
    %c0_153 = arith.constant 0 : index
    %c0_154 = arith.constant 0 : index
    %480 = vector.load %arg9[%479, %c0_153, %c0_154] : memref<8x8x512xf32, #tpu.memory_space<vmem>>, vector<1x8x512xf32>
    %481 = vector.shape_cast %480 : vector<1x8x512xf32> to vector<8x512xf32>
    %cst_155 = arith.constant dense<0.000000e+00> : vector<8x512xf32>
    %482 = tpu.matmul %474, %304, %cst_155 {dimension_numbers = #tpu.dot_dimension_numbers<[1], [0], [0], [1], [0, 0, 1, 1], [], []>} : vector<8x128xf32>, vector<128x512xf32>, vector<8x512xf32> -> vector<8x512xf32>
    %483 = arith.addf %481, %482 : vector<8x512xf32>
    %484 = vector.extract_strided_slice %483 {offsets = [0, 0], sizes = [8, 128], strides = [1, 1]} : vector<8x512xf32> to vector<8x128xf32>
    %485 = arith.negf %484 : vector<8x128xf32>
    %486 = math.exp %485 : vector<8x128xf32>
    %cst_156 = arith.constant 1.000000e+00 : f32
    %487 = vector.broadcast %cst_156 : f32 to vector<8x128xf32>
    %488 = arith.addf %487, %486 : vector<8x128xf32>
    %489 = arith.divf %487, %488 : vector<8x128xf32>
    %490 = vector.extract_strided_slice %483 {offsets = [0, 128], sizes = [8, 128], strides = [1, 1]} : vector<8x512xf32> to vector<8x128xf32>
    %491 = arith.negf %490 : vector<8x128xf32>
    %492 = math.exp %491 : vector<8x128xf32>
    %cst_157 = arith.constant 1.000000e+00 : f32
    %493 = vector.broadcast %cst_157 : f32 to vector<8x128xf32>
    %494 = arith.addf %493, %492 : vector<8x128xf32>
    %495 = arith.divf %493, %494 : vector<8x128xf32>
    %496 = vector.extract_strided_slice %483 {offsets = [0, 256], sizes = [8, 128], strides = [1, 1]} : vector<8x512xf32> to vector<8x128xf32>
    %497 = math.tanh %496 : vector<8x128xf32>
    %498 = vector.extract_strided_slice %483 {offsets = [0, 384], sizes = [8, 128], strides = [1, 1]} : vector<8x512xf32> to vector<8x128xf32>
    %499 = arith.negf %498 : vector<8x128xf32>
    %500 = math.exp %499 : vector<8x128xf32>
    %cst_158 = arith.constant 1.000000e+00 : f32
    %501 = vector.broadcast %cst_158 : f32 to vector<8x128xf32>
    %502 = arith.addf %501, %500 : vector<8x128xf32>
    %503 = arith.divf %501, %502 : vector<8x128xf32>
    %504 = arith.mulf %495, %472 : vector<8x128xf32>
    %505 = arith.mulf %489, %497 : vector<8x128xf32>
    %506 = arith.addf %504, %505 : vector<8x128xf32>
    %507 = math.tanh %506 : vector<8x128xf32>
    %508 = arith.mulf %503, %507 : vector<8x128xf32>
    %509 = arith.index_cast %c5_i32_152 : i32 to index
    %c0_159 = arith.constant 0 : index
    %c0_160 = arith.constant 0 : index
    %510 = vector.load %arg8[%509, %c0_159, %c0_160] : memref<8x8x128xf32, #tpu.memory_space<vmem>>, vector<1x8x128xf32>
    %511 = vector.shape_cast %510 : vector<1x8x128xf32> to vector<8x128xf32>
    %512 = vector.shape_cast %508 : vector<8x128xf32> to vector<1x8x128xf32>
    tpu.vector_store %arg8[%509, %c0_159, %c0_160], %512 {strides = array<i32>} : memref<8x8x128xf32, #tpu.memory_space<vmem>>, vector<1x8x128xf32>,
    %c6_i32_161 = arith.constant 6 : i32
    %513 = arith.index_cast %c6_i32_161 : i32 to index
    %c0_162 = arith.constant 0 : index
    %c0_163 = arith.constant 0 : index
    %514 = vector.load %arg9[%513, %c0_162, %c0_163] : memref<8x8x512xf32, #tpu.memory_space<vmem>>, vector<1x8x512xf32>
    %515 = vector.shape_cast %514 : vector<1x8x512xf32> to vector<8x512xf32>
    %cst_164 = arith.constant dense<0.000000e+00> : vector<8x512xf32>
    %516 = tpu.matmul %508, %304, %cst_164 {dimension_numbers = #tpu.dot_dimension_numbers<[1], [0], [0], [1], [0, 0, 1, 1], [], []>} : vector<8x128xf32>, vector<128x512xf32>, vector<8x512xf32> -> vector<8x512xf32>
    %517 = arith.addf %515, %516 : vector<8x512xf32>
    %518 = vector.extract_strided_slice %517 {offsets = [0, 0], sizes = [8, 128], strides = [1, 1]} : vector<8x512xf32> to vector<8x128xf32>
    %519 = arith.negf %518 : vector<8x128xf32>
    %520 = math.exp %519 : vector<8x128xf32>
    %cst_165 = arith.constant 1.000000e+00 : f32
    %521 = vector.broadcast %cst_165 : f32 to vector<8x128xf32>
    %522 = arith.addf %521, %520 : vector<8x128xf32>
    %523 = arith.divf %521, %522 : vector<8x128xf32>
    %524 = vector.extract_strided_slice %517 {offsets = [0, 128], sizes = [8, 128], strides = [1, 1]} : vector<8x512xf32> to vector<8x128xf32>
    %525 = arith.negf %524 : vector<8x128xf32>
    %526 = math.exp %525 : vector<8x128xf32>
    %cst_166 = arith.constant 1.000000e+00 : f32
    %527 = vector.broadcast %cst_166 : f32 to vector<8x128xf32>
    %528 = arith.addf %527, %526 : vector<8x128xf32>
    %529 = arith.divf %527, %528 : vector<8x128xf32>
    %530 = vector.extract_strided_slice %517 {offsets = [0, 256], sizes = [8, 128], strides = [1, 1]} : vector<8x512xf32> to vector<8x128xf32>
    %531 = math.tanh %530 : vector<8x128xf32>
    %532 = vector.extract_strided_slice %517 {offsets = [0, 384], sizes = [8, 128], strides = [1, 1]} : vector<8x512xf32> to vector<8x128xf32>
    %533 = arith.negf %532 : vector<8x128xf32>
    %534 = math.exp %533 : vector<8x128xf32>
    %cst_167 = arith.constant 1.000000e+00 : f32
    %535 = vector.broadcast %cst_167 : f32 to vector<8x128xf32>
    %536 = arith.addf %535, %534 : vector<8x128xf32>
    %537 = arith.divf %535, %536 : vector<8x128xf32>
    %538 = arith.mulf %529, %506 : vector<8x128xf32>
    %539 = arith.mulf %523, %531 : vector<8x128xf32>
    %540 = arith.addf %538, %539 : vector<8x128xf32>
    %541 = math.tanh %540 : vector<8x128xf32>
    %542 = arith.mulf %537, %541 : vector<8x128xf32>
    %543 = arith.index_cast %c6_i32_161 : i32 to index
    %c0_168 = arith.constant 0 : index
    %c0_169 = arith.constant 0 : index
    %544 = vector.load %arg8[%543, %c0_168, %c0_169] : memref<8x8x128xf32, #tpu.memory_space<vmem>>, vector<1x8x128xf32>
    %545 = vector.shape_cast %544 : vector<1x8x128xf32> to vector<8x128xf32>
    %546 = vector.shape_cast %542 : vector<8x128xf32> to vector<1x8x128xf32>
    tpu.vector_store %arg8[%543, %c0_168, %c0_169], %546 {strides = array<i32>} : memref<8x8x128xf32, #tpu.memory_space<vmem>>, vector<1x8x128xf32>,
    %c7_i32_170 = arith.constant 7 : i32
    %547 = arith.index_cast %c7_i32_170 : i32 to index
    %c0_171 = arith.constant 0 : index
    %c0_172 = arith.constant 0 : index
    %548 = vector.load %arg9[%547, %c0_171, %c0_172] : memref<8x8x512xf32, #tpu.memory_space<vmem>>, vector<1x8x512xf32>
    %549 = vector.shape_cast %548 : vector<1x8x512xf32> to vector<8x512xf32>
    %cst_173 = arith.constant dense<0.000000e+00> : vector<8x512xf32>
    %550 = tpu.matmul %542, %304, %cst_173 {dimension_numbers = #tpu.dot_dimension_numbers<[1], [0], [0], [1], [0, 0, 1, 1], [], []>} : vector<8x128xf32>, vector<128x512xf32>, vector<8x512xf32> -> vector<8x512xf32>
    %551 = arith.addf %549, %550 : vector<8x512xf32>
    %552 = vector.extract_strided_slice %551 {offsets = [0, 0], sizes = [8, 128], strides = [1, 1]} : vector<8x512xf32> to vector<8x128xf32>
    %553 = arith.negf %552 : vector<8x128xf32>
    %554 = math.exp %553 : vector<8x128xf32>
    %cst_174 = arith.constant 1.000000e+00 : f32
    %555 = vector.broadcast %cst_174 : f32 to vector<8x128xf32>
    %556 = arith.addf %555, %554 : vector<8x128xf32>
    %557 = arith.divf %555, %556 : vector<8x128xf32>
    %558 = vector.extract_strided_slice %551 {offsets = [0, 128], sizes = [8, 128], strides = [1, 1]} : vector<8x512xf32> to vector<8x128xf32>
    %559 = arith.negf %558 : vector<8x128xf32>
    %560 = math.exp %559 : vector<8x128xf32>
    %cst_175 = arith.constant 1.000000e+00 : f32
    %561 = vector.broadcast %cst_175 : f32 to vector<8x128xf32>
    %562 = arith.addf %561, %560 : vector<8x128xf32>
    %563 = arith.divf %561, %562 : vector<8x128xf32>
    %564 = vector.extract_strided_slice %551 {offsets = [0, 256], sizes = [8, 128], strides = [1, 1]} : vector<8x512xf32> to vector<8x128xf32>
    %565 = math.tanh %564 : vector<8x128xf32>
    %566 = vector.extract_strided_slice %551 {offsets = [0, 384], sizes = [8, 128], strides = [1, 1]} : vector<8x512xf32> to vector<8x128xf32>
    %567 = arith.negf %566 : vector<8x128xf32>
    %568 = math.exp %567 : vector<8x128xf32>
    %cst_176 = arith.constant 1.000000e+00 : f32
    %569 = vector.broadcast %cst_176 : f32 to vector<8x128xf32>
    %570 = arith.addf %569, %568 : vector<8x128xf32>
    %571 = arith.divf %569, %570 : vector<8x128xf32>
    %572 = arith.mulf %563, %540 : vector<8x128xf32>
    %573 = arith.mulf %557, %565 : vector<8x128xf32>
    %574 = arith.addf %572, %573 : vector<8x128xf32>
    %575 = math.tanh %574 : vector<8x128xf32>
    %576 = arith.mulf %571, %575 : vector<8x128xf32>
    %577 = arith.index_cast %c7_i32_170 : i32 to index
    %c0_177 = arith.constant 0 : index
    %c0_178 = arith.constant 0 : index
    %578 = vector.load %arg8[%577, %c0_177, %c0_178] : memref<8x8x128xf32, #tpu.memory_space<vmem>>, vector<1x8x128xf32>
    %579 = vector.shape_cast %578 : vector<1x8x128xf32> to vector<8x128xf32>
    %580 = vector.shape_cast %576 : vector<8x128xf32> to vector<1x8x128xf32>
    tpu.vector_store %arg8[%577, %c0_177, %c0_178], %580 {strides = array<i32>} : memref<8x8x128xf32, #tpu.memory_space<vmem>>, vector<1x8x128xf32>,
    %c8_i32_179 = arith.constant 8 : i32
    %c1_180 = arith.constant 1 : index
    %c0_181 = arith.constant 0 : index
    %c0_182 = arith.constant 0 : index
    %581 = vector.load %arg11[%c1_180, %c0_181, %c0_182] : memref<2x8x128xf32, #tpu.memory_space<vmem>>, vector<1x8x128xf32>
    %582 = vector.shape_cast %581 : vector<1x8x128xf32> to vector<8x128xf32>
    %583 = vector.shape_cast %576 : vector<8x128xf32> to vector<1x8x128xf32>
    tpu.vector_store %arg11[%c1_180, %c0_181, %c0_182], %583 {strides = array<i32>} : memref<2x8x128xf32, #tpu.memory_space<vmem>>, vector<1x8x128xf32>,
    %c1_183 = arith.constant 1 : index
    %c0_184 = arith.constant 0 : index
    %c0_185 = arith.constant 0 : index
    %584 = vector.load %arg12[%c1_183, %c0_184, %c0_185] : memref<2x8x128xf32, #tpu.memory_space<vmem>>, vector<1x8x128xf32>
    %585 = vector.shape_cast %584 : vector<1x8x128xf32> to vector<8x128xf32>
    %586 = vector.shape_cast %574 : vector<8x128xf32> to vector<1x8x128xf32>
    tpu.vector_store %arg12[%c1_183, %c0_184, %c0_185], %586 {strides = array<i32>} : memref<2x8x128xf32, #tpu.memory_space<vmem>>, vector<1x8x128xf32>,
    return
  }
  func.func @transform_0(%arg0: i32) -> (i32, i32, i32) {
    %c0_i32 = arith.constant 0 : i32
    %c0_i32_0 = arith.constant 0 : i32
    %c0_i32_1 = arith.constant 0 : i32
    return %arg0, %c0_i32, %c0_i32_0 : i32, i32, i32
  }
  func.func @transform_1(%arg0: i32) -> (i32, i32) {
    %c0_i32 = arith.constant 0 : i32
    %c0_i32_0 = arith.constant 0 : i32
    %c0_i32_1 = arith.constant 0 : i32
    return %c0_i32, %c0_i32_0 : i32, i32
  }
  func.func @transform_2(%arg0: i32) -> (i32, i32) {
    %c0_i32 = arith.constant 0 : i32
    %c0_i32_0 = arith.constant 0 : i32
    %c0_i32_1 = arith.constant 0 : i32
    return %c0_i32, %c0_i32_0 : i32, i32
  }
  func.func @transform_3(%arg0: i32) -> (i32, i32) {
    %c0_i32 = arith.constant 0 : i32
    %c0_i32_0 = arith.constant 0 : i32
    %c0_i32_1 = arith.constant 0 : i32
    return %c0_i32, %c0_i32_0 : i32, i32
  }
  func.func @transform_4(%arg0: i32) -> (i32, i32) {
    %c0_i32 = arith.constant 0 : i32
    %c0_i32_0 = arith.constant 0 : i32
    %c0_i32_1 = arith.constant 0 : i32
    return %c0_i32, %c0_i32_0 : i32, i32
  }
  func.func @transform_5(%arg0: i32) -> (i32, i32) {
    %c0_i32 = arith.constant 0 : i32
    %c0_i32_0 = arith.constant 0 : i32
    %c0_i32_1 = arith.constant 0 : i32
    return %c0_i32, %c0_i32_0 : i32, i32
  }
  func.func @transform_6(%arg0: i32) -> (i32, i32) {
    %c0_i32 = arith.constant 0 : i32
    %c0_i32_0 = arith.constant 0 : i32
    %c0_i32_1 = arith.constant 0 : i32
    return %c0_i32, %c0_i32_0 : i32, i32
  }
  func.func @transform_7(%arg0: i32) -> (i32, i32, i32) {
    %c0_i32 = arith.constant 0 : i32
    %c0_i32_0 = arith.constant 0 : i32
    %c0_i32_1 = arith.constant 0 : i32
    return %arg0, %c0_i32, %c0_i32_0 : i32, i32, i32
  }
}

</mosaic_0001>

<bundles_post_ra>
// kernel: tpu_custom_call.1
= control target key start
LH: loop header
LB: loop body
LE: loop exit
PB: predicated region body
PF: predicated region fallthrough
CT: control target
= control target key end

     0   :  { %12 = vsyncpa [#allocation7], 0  ;;  %s6571_s0 = inlined_call_operand.hbm [shape: f32[8,8,128], index: 0, kind: input, shape index: {}]   ;;  %s6572_s1 = inlined_call_operand.hbm [shape: f32[128,512], index: 1, kind: input, shape index: {}]   ;;  %s6573_s2 = inlined_call_operand.hbm [shape: f32[128,512], index: 2, kind: input, shape index: {}]   ;;  %s6574_s3 = inlined_call_operand.vmem [shape: f32[1,512], index: 3, kind: input, shape index: {}]   ;;  %s6575_s4 = inlined_call_operand.hbm [shape: f32[128,512], index: 4, kind: input, shape index: {}]   ;;  %s6576_s5 = inlined_call_operand.hbm [shape: f32[128,512], index: 5, kind: input, shape index: {}]   ;;  %s6577_s6 = inlined_call_operand.vmem [shape: f32[1,512], index: 6, kind: input, shape index: {}]   ;;  %s6578_s7 = inlined_call_operand.hbm [shape: f32[8,8,128], index: 7, kind: output, shape index: {}]  }
   0x1   :  { %13 = vsyncpa [#allocation10], 0 }
   0x2   :  { %14 = vsyncpa [#allocation13], 0 }
   0x3   :  { %15 = vsyncpa [#allocation8], 0  ;;  %s5520_s24 = smov [#allocation9]   ;;  %s5380_s28 = scalar_lea.hbm %s6572_s1, 8192 }
   0x4   :  { %s33_s25 = sshll.u32 %s5520_s24, 4  ;;  %p5381_p0 = scmp.ne.s32.totalorder %s6572_s1, %s5380_s28  ;;  %s34_s25 = int_to_ptr.vmem [resolvable:$true] %s33_s25 }
   0x5   :  { %p5384_p1 = scmp.lt.u32.totalorder %s5380_s28, %s6572_s1 }
   0x7   :  { %p5386_p2 = pnand %p5384_p1, %p5381_p0 }
   0x9   :  { %5389 = shalt.err (!%p5386_p2)
}
   0xa   :  { %s5390_s10 = scalar_lea.vmem %s34_s25, 8192  ;;  %p5395_p4 = scmp.lt.s32.totalorder %s34_s25, %s34_s25 }
   0xb   :  { %p5391_p3 = scmp.ne.s32.totalorder %s34_s25, %s5390_s10  ;;  %p5396_p5 = scmp.lt.s32.totalorder %s5390_s10, %s5390_s10 }
   0xd   :  { %p5397_p6 = por %p5396_p5, %p5395_p4 }
   0xf   :  { %p5398_p7 = pnand %p5397_p6, %p5391_p3 }
  0x11   :  { %5401 = shalt.err (!%p5398_p7)
}
  0x12   :  { %s5521_s11 = smov 512   ;;  %s5522_s12 = smov 32  }
  0x13   :  { %39 = dma.hbm_to_vmem [thread:$0]  %s6572_s1, 8192, %s34_s25, [#allocation10], %s5521_s11, %s5521_s11, %s5522_s12  }
  0x14   :  { %s5523_s15 = smov [#allocation12]   ;;  %s5524_s17 = smov [#allocation6]  }
  0x15   :  { %s59_s16 = sshll.u32 %s5523_s15, 4  ;;  %s21_s18 = sshll.u32 %s5524_s17, 4  ;;  %s60_s16 = int_to_ptr.vmem [resolvable:$true] %s59_s16  ;;  %s22_s18 = int_to_ptr.vmem [resolvable:$true] %s21_s18 }
  0x16   :  { %s5402_s21 = scalar_lea.hbm %s6575_s4, 8192 }
  0x17   :  { %p5403_p8 = scmp.ne.s32.totalorder %s6575_s4, %s5402_s21  ;;  %p5406_p9 = scmp.lt.u32.totalorder %s5402_s21, %s6575_s4 }
  0x19   :  { %p5408_p10 = pnand %p5406_p9, %p5403_p8 }
  0x1b   :  { %5411 = shalt.err (!%p5408_p10)
}
  0x1c   :  { %s5412_s1 = scalar_lea.vmem %s60_s16, 8192  ;;  %p5417_p12 = scmp.lt.s32.totalorder %s60_s16, %s60_s16 }
  0x1d   :  { %p5413_p11 = scmp.ne.s32.totalorder %s60_s16, %s5412_s1  ;;  %p5418_p13 = scmp.lt.s32.totalorder %s5412_s1, %s5412_s1 }
  0x1f   :  { %p5419_p0 = por %p5418_p13, %p5417_p12 }
  0x21   :  { %p5420_p1 = pnand %p5419_p0, %p5413_p11 }
  0x23   :  { %5423 = shalt.err (!%p5420_p1)
}
  0x24   :  { %65 = dma.hbm_to_vmem [thread:$0]  %s6575_s4, 8192, %s60_s16, [#allocation13], %s5521_s11, %s5521_s11, %s5522_s12  }
  0x25   :  { %s5424_s30 = scalar_lea.hbm %s6571_s0, 1024 }
  0x26   :  { %p5425_p2 = scmp.ne.s32.totalorder %s6571_s0, %s5424_s30  ;;  %p5428_p3 = scmp.lt.u32.totalorder %s5424_s30, %s6571_s0 }
  0x28   :  { %p5430_p4 = pnand %p5428_p3, %p5425_p2 }
  0x2a   :  { %5433 = shalt.err (!%p5430_p4)
}
  0x2b   :  { %s5434_s14 = scalar_lea.vmem %s22_s18, 1024  ;;  %p5439_p6 = scmp.lt.s32.totalorder %s22_s18, %s22_s18 }
  0x2c   :  { %p5435_p5 = scmp.ne.s32.totalorder %s22_s18, %s5434_s14  ;;  %p5440_p7 = scmp.lt.s32.totalorder %s5434_s14, %s5434_s14 }
  0x2e   :  { %p5441_p8 = por %p5440_p7, %p5439_p6 }
  0x30   :  { %p5442_p9 = pnand %p5441_p8, %p5435_p5 }
  0x32   :  { %5445 = shalt.err (!%p5442_p9)
}
  0x33   :  { %s5525_s4 = smov 128   ;;  %s5526_s15 = smov 8  }
  0x34   :  { %27 = dma.hbm_to_vmem [thread:$0]  %s6571_s0, 1024, %s22_s18, [#allocation7], %s5525_s4, %s5525_s4, %s5526_s15  }
  0x35   :  { %s5527_s19 = smov [#allocation11]   ;;  %s5528_s21 = smov [#allocation14]  }
  0x36   :  { %s45_s20 = sshll.u32 %s5527_s19, 4  ;;  %s71_s22 = sshll.u32 %s5528_s21, 4  ;;  %s46_s20 = int_to_ptr.vmem [resolvable:$true] %s45_s20  ;;  %s72_s22 = int_to_ptr.vmem [resolvable:$true] %s71_s22 }
  0x37   :  { %s5446_s26 = scalar_lea.hbm %s6573_s2, 8192 }
  0x38   :  { %p5447_p10 = scmp.ne.s32.totalorder %s6573_s2, %s5446_s26  ;;  %p5450_p11 = scmp.lt.u32.totalorder %s5446_s26, %s6573_s2 }
  0x3a   :  { %p5452_p12 = pnand %p5450_p11, %p5447_p10 }
  0x3c   :  { %5455 = shalt.err (!%p5452_p12)
}
  0x3d   :  { %s5456_s0 = scalar_lea.vmem %s46_s20, 8192  ;;  %p5461_p0 = scmp.lt.s32.totalorder %s46_s20, %s46_s20 }
  0x3e   :  { %p5457_p13 = scmp.ne.s32.totalorder %s46_s20, %s5456_s0  ;;  %p5462_p1 = scmp.lt.s32.totalorder %s5456_s0, %s5456_s0 }
  0x40   :  { %p5463_p2 = por %p5462_p1, %p5461_p0 }
  0x42   :  { %p5464_p3 = pnand %p5463_p2, %p5457_p13 }
  0x44   :  { %5467 = shalt.err (!%p5464_p3)
}
  0x45   :  { %51 = dma.hbm_to_vmem [thread:$0]  %s6573_s2, 8192, %s46_s20, [#allocation10], %s5521_s11, %s5521_s11, %s5522_s12  }
  0x46   :  { %s5468_s9 = scalar_lea.hbm %s6576_s5, 8192 }
  0x47   :  { %p5469_p4 = scmp.ne.s32.totalorder %s6576_s5, %s5468_s9  ;;  %p5472_p5 = scmp.lt.u32.totalorder %s5468_s9, %s6576_s5 }
  0x49   :  { %p5474_p6 = pnand %p5472_p5, %p5469_p4 }
  0x4b   :  { %5477 = shalt.err (!%p5474_p6)
}
  0x4c   :  { %s5478_s17 = scalar_lea.vmem %s72_s22, 8192  ;;  %p5483_p8 = scmp.lt.s32.totalorder %s72_s22, %s72_s22 }
  0x4d   :  { %p5479_p7 = scmp.ne.s32.totalorder %s72_s22, %s5478_s17  ;;  %p5484_p9 = scmp.lt.s32.totalorder %s5478_s17, %s5478_s17 }
  0x4f   :  { %p5485_p10 = por %p5484_p9, %p5483_p8 }
  0x51   :  { %p5486_p11 = pnand %p5485_p10, %p5479_p7 }
  0x53   :  { %5489 = shalt.err (!%p5486_p11)
}
  0x54   :  { %77 = dma.hbm_to_vmem [thread:$0]  %s6576_s5, 8192, %s72_s22, [#allocation13], %s5521_s11, %s5521_s11, %s5522_s12  }
  0x55   :  { %5512 = dma.done.wait [#allocation7], 1024  }
  0x56   :  { %5513 = vsyncadd [#allocation7], 4294966272 }
  0x57   :  { %5514 = dma.done.wait [#allocation10], 16384  }
  0x58   :  { %5515 = vsyncadd [#allocation10], 4294950912 }
  0x59   :  { %5516 = dma.done.wait [#allocation13], 16384  }
  0x5a   :  { %5517 = vsyncadd [#allocation13], 4294950912  ;;  %v5529_v0 = vmov 0.0   ;;  %v112_v1 = vld [vmem:[#allocation9 + $0x8] sm:$0xff]  ;;  %v114_v3 = vld [vmem:[#allocation9 + $0x18] sm:$0xff] }
  0x5b   :  { %261 = vmatprep.mubr.f32.mxu0 %v5529_v0  ;;  %374 = vmatprep.mubr.f32.mxu1 %v5529_v0  ;;  %v116_v2 = vld [vmem:[#allocation9 + $0x28] sm:$0xff]  ;;  %v118_v5 = vld [vmem:[#allocation9 + $0x38] sm:$0xff]  ;;  %v111_v6 = vld [vmem:[#allocation9] sm:$0xff] }
  0x5c   :  { %v3833_v4 = vpack.c.bf16 %v116_v2, %v112_v1  ;;  %v115_v7 = vld [vmem:[#allocation9 + $0x20] sm:$0xff]  ;;  %v3865_v8 = vpack.c.bf16 %v118_v5, %v114_v3  ;;  %v113_v10 = vld [vmem:[#allocation9 + $0x10] sm:$0xff]  ;;  %v120_v12 = vld [vmem:[#allocation9 + $0x48] sm:$0xff] }
  0x5d   :  { %v3835_v9 = vpack.c.bf16 %v115_v7, %v111_v6  ;;  %v117_v11 = vld [vmem:[#allocation9 + $0x30] sm:$0xff]  ;;  %v124_v14 = vld [vmem:[#allocation9 + $0x68] sm:$0xff]  ;;  %v122_v15 = vld [vmem:[#allocation9 + $0x58] sm:$0xff] }
  0x5e   :  { %3834 = vmatprep.subr.bf16.mxu0 %v3833_v4  ;;  %v3867_v13 = vpack.c.bf16 %v117_v11, %v113_v10  ;;  %v126_v16 = vld [vmem:[#allocation9 + $0x78] sm:$0xff]  ;;  %3866 = vmatprep.subr.bf16.mxu1 %v3865_v8  ;;  %v3837_v17 = vpack.c.bf16 %v124_v14, %v120_v12  ;;  %v119_v19 = vld [vmem:[#allocation9 + $0x40] sm:$0xff]  ;;  %v121_v21 = vld [vmem:[#allocation9 + $0x50] sm:$0xff] }
  0x5f   :  { %3836 = vmatpush1.bf16.msra.mxu0 %v3835_v9  ;;  %v3869_v18 = vpack.c.bf16 %v126_v16, %v122_v15  ;;  %v123_v20 = vld [vmem:[#allocation9 + $0x60] sm:$0xff]  ;;  %v125_v23 = vld [vmem:[#allocation9 + $0x70] sm:$0xff]  ;;  %v128_v24 = vld [vmem:[#allocation9 + $0x88] sm:$0xff] }
  0x60   :  { %3868 = vmatpush1.bf16.msra.mxu1 %v3867_v13  ;;  %v3839_v22 = vpack.c.bf16 %v123_v20, %v119_v19  ;;  %v132_v25 = vld [vmem:[#allocation9 + $0xa8] sm:$0xff]  ;;  %3838 = vmatprep.subr.bf16.mxu0 %v3837_v17  ;;  %v3871_v26 = vpack.c.bf16 %v125_v23, %v121_v21  ;;  %v130_v28 = vld [vmem:[#allocation9 + $0x98] sm:$0xff]  ;;  %v127_v30 = vld [vmem:[#allocation9 + $0x80] sm:$0xff] }
  0x61   :  { %3870 = vmatprep.subr.bf16.mxu1 %v3869_v18  ;;  %v3841_v27 = vpack.c.bf16 %v132_v25, %v128_v24  ;;  %v134_v29 = vld [vmem:[#allocation9 + $0xb8] sm:$0xff]  ;;  %v131_v32 = vld [vmem:[#allocation9 + $0xa0] sm:$0xff]  ;;  %v129_v33 = vld [vmem:[#allocation9 + $0x90] sm:$0xff] }
  0x62   :  { %v3873_v31 = vpack.c.bf16 %v134_v29, %v130_v28  ;;  %v133_v34 = vld [vmem:[#allocation9 + $0xb0] sm:$0xff]  ;;  %v3843_v35 = vpack.c.bf16 %v131_v32, %v127_v30  ;;  %v136_v36 = vld [vmem:[#allocation9 + $0xc8] sm:$0xff]  ;;  %v138_v38 = vld [vmem:[#allocation9 + $0xd8] sm:$0xff] }
  0x63   :  { %3840 = vmatpush1.bf16.msra.mxu0 %v3839_v22  ;;  %v140_v37 = vld [vmem:[#allocation9 + $0xe8] sm:$0xff]  ;;  %v3875_v39 = vpack.c.bf16 %v133_v34, %v129_v33  ;;  %v142_v41 = vld [vmem:[#allocation9 + $0xf8] sm:$0xff]  ;;  %v135_v42 = vld [vmem:[#allocation9 + $0xc0] sm:$0xff] }
  0x64   :  { %3872 = vmatpush1.bf16.msra.mxu1 %v3871_v26  ;;  %3842 = vmatprep.subr.bf16.mxu0 %v3841_v27  ;;  %v3845_v40 = vpack.c.bf16 %v140_v37, %v136_v36  ;;  %v139_v43 = vld [vmem:[#allocation9 + $0xe0] sm:$0xff]  ;;  %v3877_v44 = vpack.c.bf16 %v142_v41, %v138_v38  ;;  %v137_v45 = vld [vmem:[#allocation9 + $0xd0] sm:$0xff]  ;;  %v144_v47 = vld [vmem:[#allocation9 + $0x108] sm:$0xff] }
  0x65   :  { %3874 = vmatprep.subr.bf16.mxu1 %v3873_v31  ;;  %v141_v46 = vld [vmem:[#allocation9 + $0xf0] sm:$0xff]  ;;  %v148_v48 = vld [vmem:[#allocation9 + $0x128] sm:$0xff]  ;;  %v146_v49 = vld [vmem:[#allocation9 + $0x118] sm:$0xff]  ;;  %v3847_v51 = vpack.c.bf16 %v139_v43, %v135_v42 }
  0x66   :  { %v150_v50 = vld [vmem:[#allocation9 + $0x138] sm:$0xff]  ;;  %v3879_v52 = vpack.c.bf16 %v141_v46, %v137_v45  ;;  %v3849_v53 = vpack.c.bf16 %v148_v48, %v144_v47  ;;  %v143_v54 = vld [vmem:[#allocation9 + $0x100] sm:$0xff]  ;;  %v145_v56 = vld [vmem:[#allocation9 + $0x110] sm:$0xff] }
  0x67   :  { %3844 = vmatpush1.bf16.msra.mxu0 %v3843_v35  ;;  %v147_v55 = vld [vmem:[#allocation9 + $0x120] sm:$0xff]  ;;  %v3881_v57 = vpack.c.bf16 %v150_v50, %v146_v49  ;;  %v149_v58 = vld [vmem:[#allocation9 + $0x130] sm:$0xff]  ;;  %v152_v59 = vld [vmem:[#allocation9 + $0x148] sm:$0xff] }
  0x68   :  { %3876 = vmatpush1.bf16.msra.mxu1 %v3875_v39  ;;  %3846 = vmatprep.subr.bf16.mxu0 %v3845_v40  ;;  %v156_v60 = vld [vmem:[#allocation9 + $0x168] sm:$0xff]  ;;  %v154_v61 = vld [vmem:[#allocation9 + $0x158] sm:$0xff]  ;;  %v3851_v63 = vpack.c.bf16 %v147_v55, %v143_v54  ;;  %v3883_v1 = vpack.c.bf16 %v149_v58, %v145_v56  ;;  %v151_v3 = vld [vmem:[#allocation9 + $0x140] sm:$0xff] }
  0x69   :  { %3878 = vmatprep.subr.bf16.mxu1 %v3877_v44  ;;  %v158_v62 = vld [vmem:[#allocation9 + $0x178] sm:$0xff]  ;;  %v3853_v2 = vpack.c.bf16 %v156_v60, %v152_v59  ;;  %v155_v4 = vld [vmem:[#allocation9 + $0x160] sm:$0xff]  ;;  %v153_v5 = vld [vmem:[#allocation9 + $0x150] sm:$0xff] }
  0x6a   :  { %v3885_v6 = vpack.c.bf16 %v158_v62, %v154_v61  ;;  %v157_v7 = vld [vmem:[#allocation9 + $0x170] sm:$0xff]  ;;  %v160_v8 = vld [vmem:[#allocation9 + $0x188] sm:$0xff]  ;;  %v162_v10 = vld [vmem:[#allocation9 + $0x198] sm:$0xff]  ;;  %v3855_v12 = vpack.c.bf16 %v155_v4, %v151_v3 }
  0x6b   :  { %3848 = vmatpush1.bf16.msra.mxu0 %v3847_v51  ;;  %v164_v9 = vld [vmem:[#allocation9 + $0x1a8] sm:$0xff]  ;;  %v166_v11 = vld [vmem:[#allocation9 + $0x1b8] sm:$0xff]  ;;  %v3887_v13 = vpack.c.bf16 %v157_v7, %v153_v5  ;;  %v159_v15 = vld [vmem:[#allocation9 + $0x180] sm:$0xff] }
  0x6c   :  { %3880 = vmatpush1.bf16.msra.mxu1 %v3879_v52  ;;  %3850 = vmatprep.subr.bf16.mxu0 %v3849_v53  ;;  %v3857_v14 = vpack.c.bf16 %v164_v9, %v160_v8  ;;  %v163_v16 = vld [vmem:[#allocation9 + $0x1a0] sm:$0xff]  ;;  %v161_v17 = vld [vmem:[#allocation9 + $0x190] sm:$0xff]  ;;  %v3889_v18 = vpack.c.bf16 %v166_v11, %v162_v10  ;;  %v168_v20 = vld [vmem:[#allocation9 + $0x1c8] sm:$0xff] }
  0x6d   :  { %3882 = vmatprep.subr.bf16.mxu1 %v3881_v57  ;;  %v165_v19 = vld [vmem:[#allocation9 + $0x1b0] sm:$0xff]  ;;  %v172_v21 = vld [vmem:[#allocation9 + $0x1e8] sm:$0xff]  ;;  %v170_v22 = vld [vmem:[#allocation9 + $0x1d8] sm:$0xff]  ;;  %v3859_v24 = vpack.c.bf16 %v163_v16, %v159_v15 }
  0x6e   :  { %v174_v23 = vld [vmem:[#allocation9 + $0x1f8] sm:$0xff]  ;;  %v3891_v25 = vpack.c.bf16 %v165_v19, %v161_v17  ;;  %v3861_v26 = vpack.c.bf16 %v172_v21, %v168_v20  ;;  %v167_v27 = vld [vmem:[#allocation9 + $0x1c0] sm:$0xff]  ;;  %v169_v29 = vld [vmem:[#allocation9 + $0x1d0] sm:$0xff] }
  0x6f   :  { %3852 = vmatpush1.bf16.msra.mxu0 %v3851_v63  ;;  %v171_v28 = vld [vmem:[#allocation9 + $0x1e0] sm:$0xff]  ;;  %v3893_v30 = vpack.c.bf16 %v174_v23, %v170_v22  ;;  %v173_v31 = vld [vmem:[#allocation9 + $0x1f0] sm:$0xff]  ;;  %v456_v32 = vld [vmem:[#allocation11 + $0x8] sm:$0xff] }
  0x70   :  { %3884 = vmatpush1.bf16.msra.mxu1 %v3883_v1  ;;  %3854 = vmatprep.subr.bf16.mxu0 %v3853_v2  ;;  %v460_v33 = vld [vmem:[#allocation11 + $0x28] sm:$0xff]  ;;  %v458_v34 = vld [vmem:[#allocation11 + $0x18] sm:$0xff]  ;;  %v3863_v36 = vpack.c.bf16 %v171_v28, %v167_v27  ;;  %v3895_v37 = vpack.c.bf16 %v173_v31, %v169_v29  ;;  %v455_v39 = vld [vmem:[#allocation11] sm:$0xff] }
  0x71   :  { %3886 = vmatprep.subr.bf16.mxu1 %v3885_v6  ;;  %v462_v35 = vld [vmem:[#allocation11 + $0x38] sm:$0xff]  ;;  %v5648_v38 = vpack.c.bf16 %v460_v33, %v456_v32  ;;  %v459_v40 = vld [vmem:[#allocation11 + $0x20] sm:$0xff]  ;;  %v457_v42 = vld [vmem:[#allocation11 + $0x10] sm:$0xff] }
  0x72   :  { %v5650_v41 = vpack.c.bf16 %v462_v35, %v458_v34  ;;  %v461_v43 = vld [vmem:[#allocation11 + $0x30] sm:$0xff]  ;;  %v464_v44 = vld [vmem:[#allocation11 + $0x48] sm:$0xff]  ;;  %v103_v46 = vld [vmem:[#allocation6] sm:$0xff]  ;;  %v5652_v47 = vpack.c.bf16 %v459_v40, %v455_v39 }
  0x73   :  { %3856 = vmatpush1.bf16.msra.mxu0 %v3855_v12  ;;  %v468_v45 = vld [vmem:[#allocation11 + $0x68] sm:$0xff]  ;;  %v466_v48 = vld [vmem:[#allocation11 + $0x58] sm:$0xff]  ;;  %v5655_v50 = vpack.c.bf16 %v461_v43, %v457_v42  ;;  %v463_v51 = vld [vmem:[#allocation11 + $0x40] sm:$0xff] }
  0x74   :  { %3888 = vmatpush1.bf16.msra.mxu1 %v3887_v13  ;;  %3858 = vmatprep.subr.bf16.mxu0 %v3857_v14  ;;  %v470_v49 = vld [vmem:[#allocation11 + $0x78] sm:$0xff]  ;;  %v467_v52 = vld [vmem:[#allocation11 + $0x60] sm:$0xff]  ;;  %v5658_v53 = vpack.c.bf16 %v468_v45, %v464_v44  ;;  %v465_v54 = vld [vmem:[#allocation11 + $0x50] sm:$0xff] }
  0x75   :  { %3890 = vmatprep.subr.bf16.mxu1 %v3889_v18  ;;  %v469_v55 = vld [vmem:[#allocation11 + $0x70] sm:$0xff]  ;;  %v5660_v56 = vpack.c.bf16 %v470_v49, %v466_v48  ;;  %v472_v57 = vld [vmem:[#allocation11 + $0x88] sm:$0xff]  ;;  %v5663_v60 = vpack.c.bf16 %v467_v52, %v463_v51  ;;  %v474_v61 = vld [vmem:[#allocation11 + $0x98] sm:$0xff] }
  0x76   :  { %v476_v58 = vld [vmem:[#allocation11 + $0xa8] sm:$0xff]  ;;  %v478_v62 = vld [vmem:[#allocation11 + $0xb8] sm:$0xff]  ;;  %v5667_v63 = vpack.c.bf16 %v469_v55, %v465_v54  ;;  %v471_v1 = vld [vmem:[#allocation11 + $0x80] sm:$0xff] }
  0x77   :  { %3860 = vmatpush1.bf16.msra.mxu0 %v3859_v24  ;;  %v104_v59 = vld [vmem:[#allocation6 + $0x8] sm:$0xff]  ;;  %v475_v2 = vld [vmem:[#allocation11 + $0xa0] sm:$0xff]  ;;  %v5671_v3 = vpack.c.bf16 %v476_v58, %v472_v57  ;;  %v473_v4 = vld [vmem:[#allocation11 + $0x90] sm:$0xff]  ;;  %v5674_v6 = vpack.c.bf16 %v478_v62, %v474_v61 }
  0x78   :  { %3892 = vmatpush1.bf16.msra.mxu1 %v3891_v25  ;;  %3862 = vmatprep.subr.bf16.mxu0 %v3861_v26  ;;  %v477_v5 = vld [vmem:[#allocation11 + $0xb0] sm:$0xff]  ;;  %v480_v7 = vld [vmem:[#allocation11 + $0xc8] sm:$0xff]  ;;  %v5677_v10 = vpack.c.bf16 %v475_v2, %v471_v1  ;;  %v482_v11 = vld [vmem:[#allocation11 + $0xd8] sm:$0xff] }
  0x79   :  { %3894 = vmatprep.subr.bf16.mxu1 %v3893_v30  ;;  %v484_v8 = vld [vmem:[#allocation11 + $0xe8] sm:$0xff]  ;;  %v105_v9 = vld [vmem:[#allocation6 + $0x10] sm:$0xff]  ;;  %v486_v12 = vld [vmem:[#allocation11 + $0xf8] sm:$0xff]  ;;  %v5681_v13 = vpack.c.bf16 %v477_v5, %v473_v4 }
  0x7a   :  { %v479_v14 = vld [vmem:[#allocation11 + $0xc0] sm:$0xff]  ;;  %v5685_v16 = vpack.c.bf16 %v484_v8, %v480_v7  ;;  %v481_v17 = vld [vmem:[#allocation11 + $0xd0] sm:$0xff]  ;;  %v5688_v19 = vpack.c.bf16 %v486_v12, %v482_v11  ;;  %v488_v20 = vld [vmem:[#allocation11 + $0x108] sm:$0xff] }
  0x7b   :  { %3864 = vmatpush1.bf16.msra.mxu0 %v3863_v36  ;;  %v483_v15 = vld [vmem:[#allocation11 + $0xe0] sm:$0xff]  ;;  %v485_v18 = vld [vmem:[#allocation11 + $0xf0] sm:$0xff]  ;;  %v492_v21 = vld [vmem:[#allocation11 + $0x128] sm:$0xff] }
  0x7c   :  { %3896 = vmatpush1.bf16.msra.mxu1 %v3895_v37  ;;  %3898 = vmatprep.subr.bf16.mxu0 %v5648_v38  ;;  %v106_v22 = vld [vmem:[#allocation6 + $0x18] sm:$0xff]  ;;  %v5691_v23 = vpack.c.bf16 %v483_v15, %v479_v14  ;;  %v5695_v26 = vpack.c.bf16 %v485_v18, %v481_v17  ;;  %v487_v27 = vld [vmem:[#allocation11 + $0x100] sm:$0xff]  ;;  %v5699_v29 = vpack.c.bf16 %v492_v21, %v488_v20  ;;  %v489_v30 = vld [vmem:[#allocation11 + $0x110] sm:$0xff] }
  0x7d   :  { %3930 = vmatprep.subr.bf16.mxu1 %v5650_v41  ;;  %v490_v24 = vld [vmem:[#allocation11 + $0x118] sm:$0xff]  ;;  %v491_v28 = vld [vmem:[#allocation11 + $0x120] sm:$0xff]  ;;  %v493_v31 = vld [vmem:[#allocation11 + $0x130] sm:$0xff] }
  0x7e   :  { %262 = vmatmul.mubr.f32.vlgmr.msra.gmra.mrb[0].mxu0 %v103_v46  ;;  %v494_v25 = vld [vmem:[#allocation11 + $0x138] sm:$0xff]  ;;  %v496_v33 = vld [vmem:[#allocation11 + $0x148] sm:$0xff]  ;;  %v107_v35 = vld [vmem:[#allocation6 + $0x20] sm:$0xff]  ;;  %v5705_v36 = vpack.c.bf16 %v491_v28, %v487_v27  ;;  %v5709_v40 = vpack.c.bf16 %v493_v31, %v489_v30  ;;  %v177_v28 = vlaneseq }
  0x7f   :  { %375 = vmatmul.mubr.f32.vlgmr.msra.gmra.mrb[0].mxu1 %v103_v46  ;;  %3900 = vmatpush1.bf16.msra.mxu0 %v5652_v47  ;;  %v5702_v32 = vpack.c.bf16 %v494_v25, %v490_v24  ;;  %v500_v34 = vld [vmem:[#allocation11 + $0x168] sm:$0xff]  ;;  %v498_v37 = vld [vmem:[#allocation11 + $0x158] sm:$0xff]  ;;  %v495_v42 = vld [vmem:[#allocation11 + $0x140] sm:$0xff] }
  0x80   :  { %3932 = vmatpush1.bf16.msra.mxu1 %v5655_v50  ;;  %267 = vmatprep.mubr.f32.mxu0 %v5529_v0  ;;  %v502_v39 = vld [vmem:[#allocation11 + $0x178] sm:$0xff]  ;;  %v499_v43 = vld [vmem:[#allocation11 + $0x160] sm:$0xff]  ;;  %v5713_v44 = vpack.c.bf16 %v500_v34, %v496_v33  ;;  %v497_v45 = vld [vmem:[#allocation11 + $0x150] sm:$0xff]  ;;  %v5798_v30 = vshrl.u32 %v177_v28, 7 }
  0x81   :  { %380 = vmatprep.mubr.f32.mxu1 %v5529_v0  ;;  %3902 = vmatprep.subr.bf16.mxu0 %v5658_v53  ;;  %v501_v46 = vld [vmem:[#allocation11 + $0x170] sm:$0xff]  ;;  %v5716_v48 = vpack.c.bf16 %v502_v39, %v498_v37  ;;  %v504_v49 = vld [vmem:[#allocation11 + $0x188] sm:$0xff]  ;;  %v5719_v54 = vpack.c.bf16 %v499_v43, %v495_v42  ;;  %v506_v55 = vld [vmem:[#allocation11 + $0x198] sm:$0xff] }
  0x82   :  { %268 = vmatmul.mubr.f32.gmra.mrb[2].mxu0 %v104_v59  ;;  %3934 = vmatprep.subr.bf16.mxu1 %v5660_v56  ;;  %v508_v51 = vld [vmem:[#allocation11 + $0x1a8] sm:$0xff]  ;;  %v510_v57 = vld [vmem:[#allocation11 + $0x1b8] sm:$0xff]  ;;  %v5723_v58 = vpack.c.bf16 %v501_v46, %v497_v45  ;;  %v507_v61 = vld [vmem:[#allocation11 + $0x1a0] sm:$0xff]  ;;  %v179_v31 = vsub.s32 0, %v5798_v30  ;;  %v183_v34 = vsub.s32 1, %v5798_v30  ;;  %v191_v42 = vsub.s32 3, %v5798_v30 }
  0x83   :  { %381 = vmatmul.mubr.f32.gmra.mrb[2].mxu1 %v104_v59  ;;  %3904 = vmatpush1.bf16.msra.mxu0 %v5663_v60  ;;  %v108_v52 = vld [vmem:[#allocation6 + $0x28] sm:$0xff]  ;;  %v503_v59 = vld [vmem:[#allocation11 + $0x180] sm:$0xff]  ;;  %v5727_v62 = vpack.c.bf16 %v508_v51, %v504_v49  ;;  %v505_v1 = vld [vmem:[#allocation11 + $0x190] sm:$0xff]  ;;  %v5730_v4 = vpack.c.bf16 %v510_v57, %v506_v55 }
  0x84   :  { %3936 = vmatpush1.bf16.msra.mxu1 %v5667_v63  ;;  %273 = vmatprep.mubr.f32.mxu0 %v5529_v0  ;;  %v509_v2 = vld [vmem:[#allocation11 + $0x1b0] sm:$0xff]  ;;  %v512_v5 = vld [vmem:[#allocation11 + $0x1c8] sm:$0xff]  ;;  %v514_v11 = vld [vmem:[#allocation11 + $0x1d8] sm:$0xff] }
  0x85   :  { %386 = vmatprep.mubr.f32.mxu1 %v5529_v0  ;;  %3906 = vmatprep.subr.bf16.mxu0 %v5671_v3  ;;  %v516_v7 = vld [vmem:[#allocation11 + $0x1e8] sm:$0xff]  ;;  %v109_v8 = vld [vmem:[#allocation6 + $0x30] sm:$0xff]  ;;  %v518_v12 = vld [vmem:[#allocation11 + $0x1f8] sm:$0xff]  ;;  %v5737_v14 = vpack.c.bf16 %v509_v2, %v505_v1 }
  0x86   :  { %274 = vmatmul.mubr.f32.gmra.mrb[4].mxu0 %v105_v9  ;;  %3938 = vmatprep.subr.bf16.mxu1 %v5674_v6  ;;  %v511_v15 = vld [vmem:[#allocation11 + $0x1c0] sm:$0xff]  ;;  %v5741_v18 = vpack.c.bf16 %v516_v7, %v512_v5  ;;  %v513_v20 = vld [vmem:[#allocation11 + $0x1d0] sm:$0xff]  ;;  %v110_v24 = vld [vmem:[#allocation6 + $0x38] sm:$0xff] }
  0x87   :  { %387 = vmatmul.mubr.f32.gmra.mrb[4].mxu1 %v105_v9  ;;  %3908 = vmatpush1.bf16.msra.mxu0 %v5677_v10  ;;  %v5733_v9 = vpack.c.bf16 %v507_v61, %v503_v59  ;;  %v515_v17 = vld [vmem:[#allocation11 + $0x1e0] sm:$0xff]  ;;  %v517_v21 = vld [vmem:[#allocation11 + $0x1f0] sm:$0xff]  ;;  %v187_v59 = vsub.s32 2, %v5798_v30 }
  0x88   :  { %3940 = vmatpush1.bf16.msra.mxu1 %v5681_v13  ;;  %279 = vmatprep.mubr.f32.mxu0 %v5529_v0  ;;  %v5747_v25 = vpack.c.bf16 %v515_v17, %v511_v15  ;;  %v5751_v27 = vpack.c.bf16 %v517_v21, %v513_v20  ;;  %v175_v33 = vld [vmem:[%s6574_s3] sm:$0xf] }
  0x89   :  { %392 = vmatprep.mubr.f32.mxu1 %v5529_v0  ;;  %3910 = vmatprep.subr.bf16.mxu0 %v5685_v16  ;;  %v5811_v37 = vrot.slane %v175_v33, %v183_v34  ;;  %v5818_v57 = vrot.slane %v175_v33, %v191_v42  ;;  %v5824_v1 = vrot.slane %v175_v33, %v187_v59 }
  0x8a   :  { %280 = vmatmul.mubr.f32.gmra.mrb[6].mxu0 %v106_v22  ;;  %3942 = vmatprep.subr.bf16.mxu1 %v5688_v19 }
  0x8b   :  { %393 = vmatmul.mubr.f32.gmra.mrb[6].mxu1 %v106_v22  ;;  %3912 = vmatpush1.bf16.msra.mxu0 %v5691_v23  ;;  %v5744_v22 = vpack.c.bf16 %v518_v12, %v514_v11 }
  0x8c   :  { %3944 = vmatpush1.bf16.msra.mxu1 %v5695_v26  ;;  %285 = vmatprep.mubr.f32.mxu0 %v5529_v0 }
  0x8d   :  { %398 = vmatprep.mubr.f32.mxu1 %v5529_v0  ;;  %3914 = vmatprep.subr.bf16.mxu0 %v5699_v29 }
  0x8e   :  { %286 = vmatmul.mubr.f32.gmra.mrb[8].mxu0 %v107_v35  ;;  %3946 = vmatprep.subr.bf16.mxu1 %v5702_v32 }
  0x8f   :  { %399 = vmatmul.mubr.f32.gmra.mrb[8].mxu1 %v107_v35  ;;  %3916 = vmatpush1.bf16.msra.mxu0 %v5705_v36  ;;  %v5807_v35 = vrot.slane %v175_v33, %v179_v31 }
  0x90   :  { %3948 = vmatpush1.bf16.msra.mxu1 %v5709_v40  ;;  %291 = vmatprep.mubr.f32.mxu0 %v5529_v0 }
  0x91   :  { %404 = vmatprep.mubr.f32.mxu1 %v5529_v0  ;;  %3918 = vmatprep.subr.bf16.mxu0 %v5713_v44 }
  0x92   :  { %292 = vmatmul.mubr.f32.gmra.mrb[10].mxu0 %v108_v52  ;;  %3950 = vmatprep.subr.bf16.mxu1 %v5716_v48 }
  0x93   :  { %405 = vmatmul.mubr.f32.gmra.mrb[10].mxu1 %v108_v52  ;;  %3920 = vmatpush1.bf16.msra.mxu0 %v5719_v54 }
  0x94   :  { %3952 = vmatpush1.bf16.msra.mxu1 %v5723_v58  ;;  %297 = vmatprep.mubr.f32.mxu0 %v5529_v0 }
  0x95   :  { %410 = vmatprep.mubr.f32.mxu1 %v5529_v0  ;;  %3922 = vmatprep.subr.bf16.mxu0 %v5727_v62 }
  0x96   :  { %298 = vmatmul.mubr.f32.gmra.mrb[12].mxu0 %v109_v8  ;;  %3954 = vmatprep.subr.bf16.mxu1 %v5730_v4 }
  0x97   :  { %411 = vmatmul.mubr.f32.gmra.mrb[12].mxu1 %v109_v8  ;;  %3924 = vmatpush1.bf16.msra.mxu0 %v5733_v9 }
  0x98   :  { %3956 = vmatpush1.bf16.msra.mxu1 %v5737_v14  ;;  %303 = vmatprep.mubr.f32.mxu0 %v5529_v0 }
  0x99   :  { %416 = vmatprep.mubr.f32.mxu1 %v5529_v0  ;;  %3926 = vmatprep.subr.bf16.mxu0 %v5741_v18 }
  0x9a   :  { %304 = vmatmul.mubr.f32.gmra.mrb[14].mxu0 %v110_v24  ;;  %3958 = vmatprep.subr.bf16.mxu1 %v5744_v22 }
  0x9b   :  { %417 = vmatmul.mubr.f32.gmra.mrb[14].mxu1 %v110_v24  ;;  %3928 = vmatpush1.bf16.msra.mxu0 %v5747_v25 }
  0x9c   :  { %3960 = vmatpush1.bf16.msra.mxu1 %v5751_v27  ;;  %589 = vmatprep.mubr.f32.mxu0 %v5529_v0 }
  0x9d   :  { %660 = vmatprep.mubr.f32.mxu1 %v5529_v0  ;;  %3962 = vmatprep.subr.bf16.mxu0 %v5648_v38 }
  0x9e   :  { %590 = vmatmul.mubr.f32.vlgmr.msra.gmra.mrb[0].mxu0 %v5529_v0  ;;  %3994 = vmatprep.subr.bf16.mxu1 %v5650_v41 }
  0x9f   :  { %661 = vmatmul.mubr.f32.vlgmr.msra.gmra.mrb[0].mxu1 %v5529_v0  ;;  %3964 = vmatpush1.bf16.msra.mxu0 %v5652_v47 }
  0xa0   :  { %3996 = vmatpush1.bf16.msra.mxu1 %v5655_v50  ;;  %3966 = vmatprep.subr.bf16.mxu0 %v5658_v53 }
  0xa1   :  { %3998 = vmatprep.subr.bf16.mxu1 %v5660_v56  ;;  %765 = vmatprep.mubr.f32.mxu0 %v5529_v0 }
  0xa2   :  { %836 = vmatprep.mubr.f32.mxu1 %v5529_v0 }
  0xa3   :  { %3968 = vmatpush1.bf16.msra.mxu0 %v5663_v60 }
  0xa4   :  { %4000 = vmatpush1.bf16.msra.mxu1 %v5667_v63  ;;  %3970 = vmatprep.subr.bf16.mxu0 %v5671_v3 }
  0xa5   :  { %4002 = vmatprep.subr.bf16.mxu1 %v5674_v6 }
  0xa7   :  { %3972 = vmatpush1.bf16.msra.mxu0 %v5677_v10 }
  0xa8   :  { %4004 = vmatpush1.bf16.msra.mxu1 %v5681_v13  ;;  %3974 = vmatprep.subr.bf16.mxu0 %v5685_v16 }
  0xa9   :  { %4006 = vmatprep.subr.bf16.mxu1 %v5688_v19 }
  0xab   :  { %3976 = vmatpush1.bf16.msra.mxu0 %v5691_v23 }
  0xac   :  { %4008 = vmatpush1.bf16.msra.mxu1 %v5695_v26  ;;  %3978 = vmatprep.subr.bf16.mxu0 %v5699_v29 }
  0xad   :  { %4010 = vmatprep.subr.bf16.mxu1 %v5702_v32 }
  0xaf   :  { %3980 = vmatpush1.bf16.msra.mxu0 %v5705_v36 }
  0xb0   :  { %4012 = vmatpush1.bf16.msra.mxu1 %v5709_v40  ;;  %3982 = vmatprep.subr.bf16.mxu0 %v5713_v44 }
  0xb1   :  { %4014 = vmatprep.subr.bf16.mxu1 %v5716_v48 }
  0xb3   :  { %3984 = vmatpush1.bf16.msra.mxu0 %v5719_v54 }
  0xb4   :  { %4016 = vmatpush1.bf16.msra.mxu1 %v5723_v58  ;;  %3986 = vmatprep.subr.bf16.mxu0 %v5727_v62 }
  0xb5   :  { %4018 = vmatprep.subr.bf16.mxu1 %v5730_v4 }
  0xb7   :  { %3988 = vmatpush1.bf16.msra.mxu0 %v5733_v9 }
  0xb8   :  { %4020 = vmatpush1.bf16.msra.mxu1 %v5737_v14  ;;  %3990 = vmatprep.subr.bf16.mxu0 %v5741_v18 }
  0xb9   :  { %4022 = vmatprep.subr.bf16.mxu1 %v5744_v22 }
  0xbb   :  { %3992 = vmatpush1.bf16.msra.mxu0 %v5747_v25 }
  0xbc   :  { %4024 = vmatpush1.bf16.msra.mxu1 %v5751_v27  ;;  %4026 = vmatprep.subr.bf16.mxu0 %v5648_v38 }
  0xbd   :  { %4058 = vmatprep.subr.bf16.mxu1 %v5650_v41 }
 0x171   :  { %v591_v39 = vpop.f32.mrb[0].mxu0 }
 0x172   :  { %v4985_v43 = vadd.f32 %v591_v39, %v5807_v35  ;;  %v662_v45 = vpop.f32.mrb[0].mxu1  ;;  %v593_v46 = vpop.f32.mrb[1].mxu0 }
 0x173   :  { %v4986_v49 = vadd.f32 %v593_v46, %v5811_v37  ;;  %v664_v51 = vpop.f32.mrb[1].mxu1  ;;  %v5001_v5 = vadd.f32 %v662_v45, %v5824_v1 }
 0x174   :  { %v3785_v52 = vmul.f32 -1.442695, %v4985_v43  ;;  %v5002_v61 = vadd.f32 %v664_v51, %v5818_v57 }
 0x175   :  { %v3786_v55 = vmul.f32 -1.442695, %v4986_v49 }
 0x176   :  { %5124 = vpow2.f32 %v3785_v52  ;;  %v3787_v2 = vmul.f32 -1.442695, %v5002_v61 }
 0x177   :  { %5126 = vpow2.f32 %v3786_v55 }
 0x178   :  { %5128 = vpow2.f32 %v3787_v2 }
 0x179   :  { %5130 = vtanh.f32 %v5001_v5 }
 0x180   :  { %v5125_v7 = vpop.eup %5124 }
 0x181   :  { %v5127_v8 = vpop.eup %5126  ;;  %v674_v11 = vadd.f32 1.0, %v5125_v7 }
 0x182   :  { %v680_v12 = vadd.f32 1.0, %v5127_v8  ;;  %v5129_v15 = vpop.eup %5128 }
 0x183   :  { %5132 = vrcp.f32 %v674_v11  ;;  %v5131_v17 = vpop.eup %5130  ;;  %v687_v28 = vadd.f32 1.0, %v5129_v15 }
 0x184   :  { %5134 = vrcp.f32 %v680_v12 }
 0x185   :  { %5136 = vrcp.f32 %v687_v28 }
 0x18d   :  { %v5133_v20 = vpop.eup %5132 }
 0x18e   :  { %v5135_v21 = vpop.eup %5134  ;;  %v691_v24 = vmul.f32 %v5133_v20, %v5131_v17 }
 0x18f   :  { %v690_v39 = vmul.f32 0.0, %v5135_v21  ;;  %v5137_v43 = vpop.eup %5136 }
 0x191   :  { %v5827_v33 = vadd.f32 %v691_v24, %v690_v39 }
 0x193   :  { %5138 = vtanh.f32 %v5827_v33 }
 0x19d   :  { %v5139_v45 = vpop.eup %5138 }
 0x19e   :  { %v5830_v46 = vmul.f32 %v5139_v45, %v5137_v43 }
 0x1a0   :  { %766 = vmatmul.mubr.f32.vlgmr.msra.gmra.mrb[2].mxu0 %v5830_v46  ;;  %837 = vmatmul.mubr.f32.vlgmr.msra.gmra.mrb[2].mxu1 %v5830_v46 }
 0x1a1   :  { %4028 = vmatpush1.bf16.msra.mxu0 %v5652_v47  ;;  %4060 = vmatpush1.bf16.msra.mxu1 %v5655_v50 }
 0x1a2   :  { %4030 = vmatprep.subr.bf16.mxu0 %v5658_v53  ;;  %4062 = vmatprep.subr.bf16.mxu1 %v5660_v56 }
 0x1a3   :  { %942 = vmatprep.mubr.f32.mxu0 %v5529_v0  ;;  %1013 = vmatprep.mubr.f32.mxu1 %v5529_v0 }
 0x1a5   :  { %4032 = vmatpush1.bf16.msra.mxu0 %v5663_v60  ;;  %4064 = vmatpush1.bf16.msra.mxu1 %v5667_v63 }
 0x1a6   :  { %4034 = vmatprep.subr.bf16.mxu0 %v5671_v3  ;;  %4066 = vmatprep.subr.bf16.mxu1 %v5674_v6 }
 0x1a9   :  { %4036 = vmatpush1.bf16.msra.mxu0 %v5677_v10  ;;  %4068 = vmatpush1.bf16.msra.mxu1 %v5681_v13 }
 0x1aa   :  { %4038 = vmatprep.subr.bf16.mxu0 %v5685_v16  ;;  %4070 = vmatprep.subr.bf16.mxu1 %v5688_v19 }
 0x1ad   :  { %4040 = vmatpush1.bf16.msra.mxu0 %v5691_v23  ;;  %4072 = vmatpush1.bf16.msra.mxu1 %v5695_v26 }
 0x1ae   :  { %4042 = vmatprep.subr.bf16.mxu0 %v5699_v29  ;;  %4074 = vmatprep.subr.bf16.mxu1 %v5702_v32 }
 0x1b1   :  { %4044 = vmatpush1.bf16.msra.mxu0 %v5705_v36  ;;  %4076 = vmatpush1.bf16.msra.mxu1 %v5709_v40 }
 0x1b2   :  { %4046 = vmatprep.subr.bf16.mxu0 %v5713_v44  ;;  %4078 = vmatprep.subr.bf16.mxu1 %v5716_v48 }
 0x1b5   :  { %4048 = vmatpush1.bf16.msra.mxu0 %v5719_v54  ;;  %4080 = vmatpush1.bf16.msra.mxu1 %v5723_v58 }
 0x1b6   :  { %4050 = vmatprep.subr.bf16.mxu0 %v5727_v62  ;;  %4082 = vmatprep.subr.bf16.mxu1 %v5730_v4 }
 0x1b9   :  { %4052 = vmatpush1.bf16.msra.mxu0 %v5733_v9  ;;  %4084 = vmatpush1.bf16.msra.mxu1 %v5737_v14 }
 0x1ba   :  { %4054 = vmatprep.subr.bf16.mxu0 %v5741_v18  ;;  %4086 = vmatprep.subr.bf16.mxu1 %v5744_v22 }
 0x1bd   :  { %4056 = vmatpush1.bf16.msra.mxu0 %v5747_v25  ;;  %4088 = vmatpush1.bf16.msra.mxu1 %v5751_v27 }
 0x1be   :  { %4090 = vmatprep.subr.bf16.mxu0 %v5648_v38  ;;  %4122 = vmatprep.subr.bf16.mxu1 %v5650_v41 }
 0x273   :  { %v767_v49 = vpop.f32.mrb[2].mxu0  ;;  %v838_v51 = vpop.f32.mrb[2].mxu1 }
 0x274   :  { %v4987_v52 = vadd.f32 %v767_v49, %v5807_v35  ;;  %v769_v55 = vpop.f32.mrb[3].mxu0  ;;  %v840_v61 = vpop.f32.mrb[3].mxu1  ;;  %v5003_v12 = vadd.f32 %v838_v51, %v5824_v1 }
 0x275   :  { %v4988_v2 = vadd.f32 %v769_v55, %v5811_v37  ;;  %v5004_v8 = vadd.f32 %v840_v61, %v5818_v57 }
 0x276   :  { %v3788_v5 = vmul.f32 -1.442695, %v4987_v52 }
 0x277   :  { %v3789_v7 = vmul.f32 -1.442695, %v4988_v2  ;;  %v3790_v11 = vmul.f32 -1.442695, %v5004_v8 }
 0x278   :  { %5140 = vpow2.f32 %v3788_v5 }
 0x279   :  { %5142 = vpow2.f32 %v3789_v7 }
 0x27a   :  { %5144 = vpow2.f32 %v3790_v11 }
 0x27b   :  { %5146 = vtanh.f32 %v5003_v12 }
 0x282   :  { %v5141_v15 = vpop.eup %5140 }
 0x283   :  { %v5143_v17 = vpop.eup %5142  ;;  %v850_v20 = vadd.f32 1.0, %v5141_v15 }
 0x284   :  { %v856_v21 = vadd.f32 1.0, %v5143_v17  ;;  %v5145_v24 = vpop.eup %5144 }
 0x285   :  { %5148 = vrcp.f32 %v850_v20  ;;  %v5147_v28 = vpop.eup %5146  ;;  %v863_v49 = vadd.f32 1.0, %v5145_v24 }
 0x286   :  { %5150 = vrcp.f32 %v856_v21 }
 0x287   :  { %5152 = vrcp.f32 %v863_v49 }
 0x28f   :  { %v5149_v39 = vpop.eup %5148 }
 0x290   :  { %v5151_v43 = vpop.eup %5150  ;;  %v867_v45 = vmul.f32 %v5149_v39, %v5147_v28 }
 0x291   :  { %v866_v52 = vmul.f32 %v5151_v43, %v5827_v33  ;;  %v5153_v51 = vpop.eup %5152 }
 0x293   :  { %v5873_v55 = vadd.f32 %v867_v45, %v866_v52 }
 0x295   :  { %5154 = vtanh.f32 %v5873_v55 }
 0x29f   :  { %v5155_v61 = vpop.eup %5154 }
 0x2a0   :  { %v5876_v2 = vmul.f32 %v5155_v61, %v5153_v51 }
 0x2a2   :  { %943 = vmatmul.mubr.f32.vlgmr.msra.gmra.mrb[4].mxu0 %v5876_v2  ;;  %1014 = vmatmul.mubr.f32.vlgmr.msra.gmra.mrb[4].mxu1 %v5876_v2 }
 0x2a3   :  { %4092 = vmatpush1.bf16.msra.mxu0 %v5652_v47  ;;  %4124 = vmatpush1.bf16.msra.mxu1 %v5655_v50 }
 0x2a4   :  { %4094 = vmatprep.subr.bf16.mxu0 %v5658_v53  ;;  %4126 = vmatprep.subr.bf16.mxu1 %v5660_v56 }
 0x2a5   :  { %1119 = vmatprep.mubr.f32.mxu0 %v5529_v0  ;;  %1190 = vmatprep.mubr.f32.mxu1 %v5529_v0 }
 0x2a7   :  { %4096 = vmatpush1.bf16.msra.mxu0 %v5663_v60  ;;  %4128 = vmatpush1.bf16.msra.mxu1 %v5667_v63 }
 0x2a8   :  { %4098 = vmatprep.subr.bf16.mxu0 %v5671_v3  ;;  %4130 = vmatprep.subr.bf16.mxu1 %v5674_v6 }
 0x2ab   :  { %4100 = vmatpush1.bf16.msra.mxu0 %v5677_v10  ;;  %4132 = vmatpush1.bf16.msra.mxu1 %v5681_v13 }
 0x2ac   :  { %4102 = vmatprep.subr.bf16.mxu0 %v5685_v16  ;;  %4134 = vmatprep.subr.bf16.mxu1 %v5688_v19 }
 0x2af   :  { %4104 = vmatpush1.bf16.msra.mxu0 %v5691_v23  ;;  %4136 = vmatpush1.bf16.msra.mxu1 %v5695_v26 }
 0x2b0   :  { %4106 = vmatprep.subr.bf16.mxu0 %v5699_v29  ;;  %4138 = vmatprep.subr.bf16.mxu1 %v5702_v32 }
 0x2b3   :  { %4108 = vmatpush1.bf16.msra.mxu0 %v5705_v36  ;;  %4140 = vmatpush1.bf16.msra.mxu1 %v5709_v40 }
 0x2b4   :  { %4110 = vmatprep.subr.bf16.mxu0 %v5713_v44  ;;  %4142 = vmatprep.subr.bf16.mxu1 %v5716_v48 }
 0x2b7   :  { %4112 = vmatpush1.bf16.msra.mxu0 %v5719_v54  ;;  %4144 = vmatpush1.bf16.msra.mxu1 %v5723_v58 }
 0x2b8   :  { %4114 = vmatprep.subr.bf16.mxu0 %v5727_v62  ;;  %4146 = vmatprep.subr.bf16.mxu1 %v5730_v4 }
 0x2bb   :  { %4116 = vmatpush1.bf16.msra.mxu0 %v5733_v9  ;;  %4148 = vmatpush1.bf16.msra.mxu1 %v5737_v14 }
 0x2bc   :  { %4118 = vmatprep.subr.bf16.mxu0 %v5741_v18  ;;  %4150 = vmatprep.subr.bf16.mxu1 %v5744_v22 }
 0x2bf   :  { %4120 = vmatpush1.bf16.msra.mxu0 %v5747_v25  ;;  %4152 = vmatpush1.bf16.msra.mxu1 %v5751_v27 }
 0x2c0   :  { %4154 = vmatprep.subr.bf16.mxu0 %v5648_v38  ;;  %4186 = vmatprep.subr.bf16.mxu1 %v5650_v41 }
 0x375   :  { %v944_v33 = vpop.f32.mrb[4].mxu0  ;;  %v1015_v5 = vpop.f32.mrb[4].mxu1 }
 0x376   :  { %v4989_v7 = vadd.f32 %v944_v33, %v5807_v35  ;;  %v946_v8 = vpop.f32.mrb[5].mxu0  ;;  %v1017_v11 = vpop.f32.mrb[5].mxu1  ;;  %v5005_v24 = vadd.f32 %v1015_v5, %v5824_v1 }
 0x377   :  { %v4990_v12 = vadd.f32 %v946_v8, %v5811_v37  ;;  %v5006_v20 = vadd.f32 %v1017_v11, %v5818_v57 }
 0x378   :  { %v3791_v15 = vmul.f32 -1.442695, %v4989_v7 }
 0x379   :  { %v3792_v17 = vmul.f32 -1.442695, %v4990_v12  ;;  %v3793_v21 = vmul.f32 -1.442695, %v5006_v20 }
 0x37a   :  { %5156 = vpow2.f32 %v3791_v15 }
 0x37b   :  { %5158 = vpow2.f32 %v3792_v17 }
 0x37c   :  { %5160 = vpow2.f32 %v3793_v21 }
 0x37d   :  { %5162 = vtanh.f32 %v5005_v24 }
 0x384   :  { %v5157_v28 = vpop.eup %5156 }
 0x385   :  { %v5159_v39 = vpop.eup %5158  ;;  %v1027_v43 = vadd.f32 1.0, %v5157_v28 }
 0x386   :  { %v1033_v45 = vadd.f32 1.0, %v5159_v39  ;;  %v5161_v49 = vpop.eup %5160 }
 0x387   :  { %5164 = vrcp.f32 %v1027_v43  ;;  %v5163_v52 = vpop.eup %5162  ;;  %v1040_v7 = vadd.f32 1.0, %v5161_v49 }
 0x388   :  { %5166 = vrcp.f32 %v1033_v45 }
 0x389   :  { %5168 = vrcp.f32 %v1040_v7 }
 0x391   :  { %v5165_v51 = vpop.eup %5164 }
 0x392   :  { %v5167_v61 = vpop.eup %5166  ;;  %v1044_v33 = vmul.f32 %v5165_v51, %v5163_v52 }
 0x393   :  { %v1043_v8 = vmul.f32 %v5167_v61, %v5873_v55  ;;  %v5169_v5 = vpop.eup %5168 }
 0x395   :  { %v5919_v11 = vadd.f32 %v1044_v33, %v1043_v8 }
 0x397   :  { %5170 = vtanh.f32 %v5919_v11 }
 0x3a1   :  { %v5171_v12 = vpop.eup %5170 }
 0x3a2   :  { %v5922_v15 = vmul.f32 %v5171_v12, %v5169_v5 }
 0x3a4   :  { %1120 = vmatmul.mubr.f32.vlgmr.msra.gmra.mrb[6].mxu0 %v5922_v15  ;;  %1191 = vmatmul.mubr.f32.vlgmr.msra.gmra.mrb[6].mxu1 %v5922_v15 }
 0x3a5   :  { %4156 = vmatpush1.bf16.msra.mxu0 %v5652_v47  ;;  %4188 = vmatpush1.bf16.msra.mxu1 %v5655_v50 }
 0x3a6   :  { %4158 = vmatprep.subr.bf16.mxu0 %v5658_v53  ;;  %4190 = vmatprep.subr.bf16.mxu1 %v5660_v56 }
 0x3a7   :  { %1296 = vmatprep.mubr.f32.mxu0 %v5529_v0  ;;  %1367 = vmatprep.mubr.f32.mxu1 %v5529_v0 }
 0x3a9   :  { %4160 = vmatpush1.bf16.msra.mxu0 %v5663_v60  ;;  %4192 = vmatpush1.bf16.msra.mxu1 %v5667_v63 }
 0x3aa   :  { %4162 = vmatprep.subr.bf16.mxu0 %v5671_v3  ;;  %4194 = vmatprep.subr.bf16.mxu1 %v5674_v6 }
 0x3ad   :  { %4164 = vmatpush1.bf16.msra.mxu0 %v5677_v10  ;;  %4196 = vmatpush1.bf16.msra.mxu1 %v5681_v13 }
 0x3ae   :  { %4166 = vmatprep.subr.bf16.mxu0 %v5685_v16  ;;  %4198 = vmatprep.subr.bf16.mxu1 %v5688_v19 }
 0x3b1   :  { %4168 = vmatpush1.bf16.msra.mxu0 %v5691_v23  ;;  %4200 = vmatpush1.bf16.msra.mxu1 %v5695_v26 }
 0x3b2   :  { %4170 = vmatprep.subr.bf16.mxu0 %v5699_v29  ;;  %4202 = vmatprep.subr.bf16.mxu1 %v5702_v32 }
 0x3b5   :  { %4172 = vmatpush1.bf16.msra.mxu0 %v5705_v36  ;;  %4204 = vmatpush1.bf16.msra.mxu1 %v5709_v40 }
 0x3b6   :  { %4174 = vmatprep.subr.bf16.mxu0 %v5713_v44  ;;  %4206 = vmatprep.subr.bf16.mxu1 %v5716_v48 }
 0x3b9   :  { %4176 = vmatpush1.bf16.msra.mxu0 %v5719_v54  ;;  %4208 = vmatpush1.bf16.msra.mxu1 %v5723_v58 }
 0x3ba   :  { %4178 = vmatprep.subr.bf16.mxu0 %v5727_v62  ;;  %4210 = vmatprep.subr.bf16.mxu1 %v5730_v4 }
 0x3bd   :  { %4180 = vmatpush1.bf16.msra.mxu0 %v5733_v9  ;;  %4212 = vmatpush1.bf16.msra.mxu1 %v5737_v14 }
 0x3be   :  { %4182 = vmatprep.subr.bf16.mxu0 %v5741_v18  ;;  %4214 = vmatprep.subr.bf16.mxu1 %v5744_v22 }
 0x3c1   :  { %4184 = vmatpush1.bf16.msra.mxu0 %v5747_v25  ;;  %4216 = vmatpush1.bf16.msra.mxu1 %v5751_v27 }
 0x3c2   :  { %4218 = vmatprep.subr.bf16.mxu0 %v5648_v38  ;;  %4250 = vmatprep.subr.bf16.mxu1 %v5650_v41 }
 0x477   :  { %v1121_v55 = vpop.f32.mrb[6].mxu0  ;;  %v1192_v17 = vpop.f32.mrb[6].mxu1 }
 0x478   :  { %v4991_v20 = vadd.f32 %v1121_v55, %v5807_v35  ;;  %v1123_v21 = vpop.f32.mrb[7].mxu0  ;;  %v1194_v24 = vpop.f32.mrb[7].mxu1  ;;  %v5007_v52 = vadd.f32 %v1192_v17, %v5824_v1 }
 0x479   :  { %v4992_v28 = vadd.f32 %v1123_v21, %v5811_v37  ;;  %v5008_v45 = vadd.f32 %v1194_v24, %v5818_v57 }
 0x47a   :  { %v3794_v39 = vmul.f32 -1.442695, %v4991_v20 }
 0x47b   :  { %v3795_v43 = vmul.f32 -1.442695, %v4992_v28  ;;  %v3796_v49 = vmul.f32 -1.442695, %v5008_v45 }
 0x47c   :  { %5172 = vpow2.f32 %v3794_v39 }
 0x47d   :  { %5174 = vpow2.f32 %v3795_v43 }
 0x47e   :  { %5176 = vpow2.f32 %v3796_v49 }
 0x47f   :  { %5178 = vtanh.f32 %v5007_v52 }
 0x486   :  { %v5173_v51 = vpop.eup %5172 }
 0x487   :  { %v5175_v61 = vpop.eup %5174  ;;  %v1204_v33 = vadd.f32 1.0, %v5173_v51 }
 0x488   :  { %v1210_v7 = vadd.f32 1.0, %v5175_v61  ;;  %v5177_v8 = vpop.eup %5176 }
 0x489   :  { %5180 = vrcp.f32 %v1204_v33  ;;  %v5179_v5 = vpop.eup %5178  ;;  %v1217_v21 = vadd.f32 1.0, %v5177_v8 }
 0x48a   :  { %5182 = vrcp.f32 %v1210_v7 }
 0x48b   :  { %5184 = vrcp.f32 %v1217_v21 }
 0x493   :  { %v5181_v12 = vpop.eup %5180 }
 0x494   :  { %v5183_v55 = vpop.eup %5182  ;;  %v1221_v20 = vmul.f32 %v5181_v12, %v5179_v5 }
 0x495   :  { %v1220_v28 = vmul.f32 %v5183_v55, %v5919_v11  ;;  %v5185_v17 = vpop.eup %5184 }
 0x497   :  { %v5965_v24 = vadd.f32 %v1221_v20, %v1220_v28 }
 0x499   :  { %5186 = vtanh.f32 %v5965_v24 }
 0x4a3   :  { %v5187_v39 = vpop.eup %5186 }
 0x4a4   :  { %v5968_v43 = vmul.f32 %v5187_v39, %v5185_v17 }
 0x4a6   :  { %1297 = vmatmul.mubr.f32.vlgmr.msra.gmra.mrb[8].mxu0 %v5968_v43  ;;  %1368 = vmatmul.mubr.f32.vlgmr.msra.gmra.mrb[8].mxu1 %v5968_v43 }
 0x4a7   :  { %4220 = vmatpush1.bf16.msra.mxu0 %v5652_v47  ;;  %4252 = vmatpush1.bf16.msra.mxu1 %v5655_v50 }
 0x4a8   :  { %4222 = vmatprep.subr.bf16.mxu0 %v5658_v53  ;;  %4254 = vmatprep.subr.bf16.mxu1 %v5660_v56 }
 0x4a9   :  { %1473 = vmatprep.mubr.f32.mxu0 %v5529_v0  ;;  %1544 = vmatprep.mubr.f32.mxu1 %v5529_v0 }
 0x4ab   :  { %4224 = vmatpush1.bf16.msra.mxu0 %v5663_v60  ;;  %4256 = vmatpush1.bf16.msra.mxu1 %v5667_v63 }
 0x4ac   :  { %4226 = vmatprep.subr.bf16.mxu0 %v5671_v3  ;;  %4258 = vmatprep.subr.bf16.mxu1 %v5674_v6 }
 0x4af   :  { %4228 = vmatpush1.bf16.msra.mxu0 %v5677_v10  ;;  %4260 = vmatpush1.bf16.msra.mxu1 %v5681_v13 }
 0x4b0   :  { %4230 = vmatprep.subr.bf16.mxu0 %v5685_v16  ;;  %4262 = vmatprep.subr.bf16.mxu1 %v5688_v19 }
 0x4b3   :  { %4232 = vmatpush1.bf16.msra.mxu0 %v5691_v23  ;;  %4264 = vmatpush1.bf16.msra.mxu1 %v5695_v26 }
 0x4b4   :  { %4234 = vmatprep.subr.bf16.mxu0 %v5699_v29  ;;  %4266 = vmatprep.subr.bf16.mxu1 %v5702_v32 }
 0x4b7   :  { %4236 = vmatpush1.bf16.msra.mxu0 %v5705_v36  ;;  %4268 = vmatpush1.bf16.msra.mxu1 %v5709_v40 }
 0x4b8   :  { %4238 = vmatprep.subr.bf16.mxu0 %v5713_v44  ;;  %4270 = vmatprep.subr.bf16.mxu1 %v5716_v48 }
 0x4bb   :  { %4240 = vmatpush1.bf16.msra.mxu0 %v5719_v54  ;;  %4272 = vmatpush1.bf16.msra.mxu1 %v5723_v58 }
 0x4bc   :  { %4242 = vmatprep.subr.bf16.mxu0 %v5727_v62  ;;  %4274 = vmatprep.subr.bf16.mxu1 %v5730_v4 }
 0x4bf   :  { %4244 = vmatpush1.bf16.msra.mxu0 %v5733_v9  ;;  %4276 = vmatpush1.bf16.msra.mxu1 %v5737_v14 }
 0x4c0   :  { %4246 = vmatprep.subr.bf16.mxu0 %v5741_v18  ;;  %4278 = vmatprep.subr.bf16.mxu1 %v5744_v22 }
 0x4c3   :  { %4248 = vmatpush1.bf16.msra.mxu0 %v5747_v25  ;;  %4280 = vmatpush1.bf16.msra.mxu1 %v5751_v27 }
 0x4c4   :  { %4282 = vmatprep.subr.bf16.mxu0 %v5648_v38  ;;  %4314 = vmatprep.subr.bf16.mxu1 %v5650_v41 }
 0x579   :  { %v1298_v11 = vpop.f32.mrb[8].mxu0  ;;  %v1369_v45 = vpop.f32.mrb[8].mxu1 }
 0x57a   :  { %v4993_v49 = vadd.f32 %v1298_v11, %v5807_v35  ;;  %v1300_v52 = vpop.f32.mrb[9].mxu0  ;;  %v1371_v51 = vpop.f32.mrb[9].mxu1  ;;  %v5009_v12 = vadd.f32 %v1369_v45, %v5824_v1 }
 0x57b   :  { %v4994_v61 = vadd.f32 %v1300_v52, %v5811_v37  ;;  %v5010_v8 = vadd.f32 %v1371_v51, %v5818_v57 }
 0x57c   :  { %v3797_v33 = vmul.f32 -1.442695, %v4993_v49 }
 0x57d   :  { %v3798_v7 = vmul.f32 -1.442695, %v4994_v61  ;;  %v3799_v5 = vmul.f32 -1.442695, %v5010_v8 }
 0x57e   :  { %5188 = vpow2.f32 %v3797_v33 }
 0x57f   :  { %5190 = vpow2.f32 %v3798_v7 }
 0x580   :  { %5192 = vpow2.f32 %v3799_v5 }
 0x581   :  { %5194 = vtanh.f32 %v5009_v12 }
 0x588   :  { %v5189_v55 = vpop.eup %5188 }
 0x589   :  { %v5191_v20 = vpop.eup %5190  ;;  %v1381_v21 = vadd.f32 1.0, %v5189_v55 }
 0x58a   :  { %v1387_v28 = vadd.f32 1.0, %v5191_v20  ;;  %v5193_v17 = vpop.eup %5192 }
 0x58b   :  { %5196 = vrcp.f32 %v1381_v21  ;;  %v5195_v39 = vpop.eup %5194  ;;  %v1394_v61 = vadd.f32 1.0, %v5193_v17 }
 0x58c   :  { %5198 = vrcp.f32 %v1387_v28 }
 0x58d   :  { %5200 = vrcp.f32 %v1394_v61 }
 0x595   :  { %v5197_v11 = vpop.eup %5196 }
 0x596   :  { %v5199_v49 = vpop.eup %5198  ;;  %v1398_v52 = vmul.f32 %v5197_v11, %v5195_v39 }
 0x597   :  { %v1397_v33 = vmul.f32 %v5199_v49, %v5965_v24  ;;  %v5201_v45 = vpop.eup %5200 }
 0x599   :  { %v6011_v51 = vadd.f32 %v1398_v52, %v1397_v33 }
 0x59b   :  { %5202 = vtanh.f32 %v6011_v51 }
 0x5a5   :  { %v5203_v7 = vpop.eup %5202 }
 0x5a6   :  { %v6014_v8 = vmul.f32 %v5203_v7, %v5201_v45 }
 0x5a8   :  { %1474 = vmatmul.mubr.f32.vlgmr.msra.gmra.mrb[10].mxu0 %v6014_v8  ;;  %1545 = vmatmul.mubr.f32.vlgmr.msra.gmra.mrb[10].mxu1 %v6014_v8 }
 0x5a9   :  { %4284 = vmatpush1.bf16.msra.mxu0 %v5652_v47  ;;  %4316 = vmatpush1.bf16.msra.mxu1 %v5655_v50 }
 0x5aa   :  { %4286 = vmatprep.subr.bf16.mxu0 %v5658_v53  ;;  %4318 = vmatprep.subr.bf16.mxu1 %v5660_v56 }
 0x5ab   :  { %1650 = vmatprep.mubr.f32.mxu0 %v5529_v0  ;;  %1721 = vmatprep.mubr.f32.mxu1 %v5529_v0 }
 0x5ad   :  { %4288 = vmatpush1.bf16.msra.mxu0 %v5663_v60  ;;  %4320 = vmatpush1.bf16.msra.mxu1 %v5667_v63 }
 0x5ae   :  { %4290 = vmatprep.subr.bf16.mxu0 %v5671_v3  ;;  %4322 = vmatprep.subr.bf16.mxu1 %v5674_v6 }
 0x5b1   :  { %4292 = vmatpush1.bf16.msra.mxu0 %v5677_v10  ;;  %4324 = vmatpush1.bf16.msra.mxu1 %v5681_v13 }
 0x5b2   :  { %4294 = vmatprep.subr.bf16.mxu0 %v5685_v16  ;;  %4326 = vmatprep.subr.bf16.mxu1 %v5688_v19 }
 0x5b5   :  { %4296 = vmatpush1.bf16.msra.mxu0 %v5691_v23  ;;  %4328 = vmatpush1.bf16.msra.mxu1 %v5695_v26 }
 0x5b6   :  { %4298 = vmatprep.subr.bf16.mxu0 %v5699_v29  ;;  %4330 = vmatprep.subr.bf16.mxu1 %v5702_v32 }
 0x5b9   :  { %4300 = vmatpush1.bf16.msra.mxu0 %v5705_v36  ;;  %4332 = vmatpush1.bf16.msra.mxu1 %v5709_v40 }
 0x5ba   :  { %4302 = vmatprep.subr.bf16.mxu0 %v5713_v44  ;;  %4334 = vmatprep.subr.bf16.mxu1 %v5716_v48 }
 0x5bd   :  { %4304 = vmatpush1.bf16.msra.mxu0 %v5719_v54  ;;  %4336 = vmatpush1.bf16.msra.mxu1 %v5723_v58 }
 0x5be   :  { %4306 = vmatprep.subr.bf16.mxu0 %v5727_v62  ;;  %4338 = vmatprep.subr.bf16.mxu1 %v5730_v4 }
 0x5c1   :  { %4308 = vmatpush1.bf16.msra.mxu0 %v5733_v9  ;;  %4340 = vmatpush1.bf16.msra.mxu1 %v5737_v14 }
 0x5c2   :  { %4310 = vmatprep.subr.bf16.mxu0 %v5741_v18  ;;  %4342 = vmatprep.subr.bf16.mxu1 %v5744_v22 }
 0x5c5   :  { %4312 = vmatpush1.bf16.msra.mxu0 %v5747_v25  ;;  %4344 = vmatpush1.bf16.msra.mxu1 %v5751_v27 }
 0x5c6   :  { %4346 = vmatprep.subr.bf16.mxu0 %v5648_v38  ;;  %4378 = vmatprep.subr.bf16.mxu1 %v5650_v41 }
 0x67b   :  { %v1475_v24 = vpop.f32.mrb[10].mxu0  ;;  %v1546_v5 = vpop.f32.mrb[10].mxu1 }
 0x67c   :  { %v4995_v12 = vadd.f32 %v1475_v24, %v5807_v35  ;;  %v1477_v55 = vpop.f32.mrb[11].mxu0  ;;  %v1548_v20 = vpop.f32.mrb[11].mxu1  ;;  %v5011_v49 = vadd.f32 %v1546_v5, %v5824_v1 }
 0x67d   :  { %v4996_v21 = vadd.f32 %v1477_v55, %v5811_v37  ;;  %v5012_v39 = vadd.f32 %v1548_v20, %v5818_v57 }
 0x67e   :  { %v3800_v28 = vmul.f32 -1.442695, %v4995_v12 }
 0x67f   :  { %v3801_v17 = vmul.f32 -1.442695, %v4996_v21  ;;  %v3802_v11 = vmul.f32 -1.442695, %v5012_v39  ;;  %v1947_v39 = vld [vmem:[#allocation12 + $0x10] sm:$0xff] }
 0x680   :  { %5204 = vpow2.f32 %v3800_v28 }
 0x681   :  { %5206 = vpow2.f32 %v3801_v17 }
 0x682   :  { %5208 = vpow2.f32 %v3802_v11  ;;  %v1951_v11 = vld [vmem:[#allocation12 + $0x30] sm:$0xff] }
 0x683   :  { %5210 = vtanh.f32 %v5011_v49  ;;  %v1954_v49 = vld [vmem:[#allocation12 + $0x48] sm:$0xff] }
 0x68a   :  { %v5205_v38 = vpop.eup %5204 }
 0x68b   :  { %v5207_v52 = vpop.eup %5206  ;;  %v1558_v41 = vadd.f32 1.0, %v5205_v38  ;;  %v1958_v38 = vld [vmem:[#allocation12 + $0x68] sm:$0xff] }
 0x68c   :  { %v1564_v61 = vadd.f32 1.0, %v5207_v52  ;;  %v5209_v33 = vpop.eup %5208  ;;  %v1956_v52 = vld [vmem:[#allocation12 + $0x58] sm:$0xff] }
 0x68d   :  { %5212 = vrcp.f32 %v1558_v41  ;;  %v5211_v45 = vpop.eup %5210  ;;  %v1571_v55 = vadd.f32 1.0, %v5209_v33  ;;  %v1960_v41 = vld [vmem:[#allocation12 + $0x78] sm:$0xff] }
 0x68e   :  { %5214 = vrcp.f32 %v1564_v61 }
 0x68f   :  { %5216 = vrcp.f32 %v1571_v55 }
 0x697   :  { %v5213_v7 = vpop.eup %5212 }
 0x698   :  { %v5215_v24 = vpop.eup %5214  ;;  %v1575_v12 = vmul.f32 %v5213_v7, %v5211_v45  ;;  %v4443_v7 = vpack.c.bf16 %v1951_v11, %v1947_v39  ;;  %v1977_v39 = vld [vmem:[#allocation12 + $0x100] sm:$0xff] }
 0x699   :  { %v1574_v21 = vmul.f32 %v5215_v24, %v6011_v51  ;;  %v5217_v5 = vpop.eup %5216  ;;  %v1949_v51 = vld [vmem:[#allocation12 + $0x20] sm:$0xff] }
 0x69a   :  { %v1953_v24 = vld [vmem:[#allocation12 + $0x40] sm:$0xff] }
 0x69b   :  { %v6057_v20 = vadd.f32 %v1575_v12, %v1574_v21  ;;  %v1957_v12 = vld [vmem:[#allocation12 + $0x60] sm:$0xff]  ;;  %v4413_v21 = vpack.c.bf16 %v1958_v38, %v1954_v49 }
 0x69c   :  { %v1981_v11 = vld [vmem:[#allocation12 + $0x120] sm:$0xff] }
 0x69d   :  { %5218 = vtanh.f32 %v6057_v20 }
 0x6a7   :  { %v5219_v28 = vpop.eup %5218 }
 0x6a8   :  { %v6060_v17 = vmul.f32 %v5219_v28, %v5217_v5  ;;  %v1955_v5 = vld [vmem:[#allocation12 + $0x50] sm:$0xff] }
 0x6a9   :  { %v1959_v28 = vld [vmem:[#allocation12 + $0x70] sm:$0xff] }
 0x6aa   :  { %1651 = vmatmul.mubr.f32.vlgmr.msra.gmra.mrb[12].mxu0 %v6060_v17  ;;  %1722 = vmatmul.mubr.f32.vlgmr.msra.gmra.mrb[12].mxu1 %v6060_v17 }
 0x6ab   :  { %4348 = vmatpush1.bf16.msra.mxu0 %v5652_v47  ;;  %4380 = vmatpush1.bf16.msra.mxu1 %v5655_v50  ;;  %v1946_v47 = vld [vmem:[#allocation12 + $0x8] sm:$0xff] }
 0x6ac   :  { %4350 = vmatprep.subr.bf16.mxu0 %v5658_v53  ;;  %4382 = vmatprep.subr.bf16.mxu1 %v5660_v56  ;;  %v1950_v50 = vld [vmem:[#allocation12 + $0x28] sm:$0xff]  ;;  %v1948_v53 = vld [vmem:[#allocation12 + $0x18] sm:$0xff] }
 0x6ad   :  { %1827 = vmatprep.mubr.f32.mxu0 %v5529_v0  ;;  %1898 = vmatprep.mubr.f32.mxu1 %v5529_v0  ;;  %v4409_v56 = vpack.c.bf16 %v1950_v50, %v1946_v47  ;;  %v1962_v47 = vld [vmem:[#allocation12 + $0x88] sm:$0xff] }
 0x6ae   :  { %v1966_v50 = vld [vmem:[#allocation12 + $0xa8] sm:$0xff] }
 0x6af   :  { %4352 = vmatpush1.bf16.msra.mxu0 %v5663_v60  ;;  %4384 = vmatpush1.bf16.msra.mxu1 %v5667_v63  ;;  %v1952_v60 = vld [vmem:[#allocation12 + $0x38] sm:$0xff] }
 0x6b0   :  { %4354 = vmatprep.subr.bf16.mxu0 %v5671_v3  ;;  %4386 = vmatprep.subr.bf16.mxu1 %v5674_v6  ;;  %v4441_v63 = vpack.c.bf16 %v1952_v60, %v1948_v53  ;;  %v1964_v53 = vld [vmem:[#allocation12 + $0x98] sm:$0xff]  ;;  %v4415_v60 = vpack.c.bf16 %v1957_v12, %v1953_v24  ;;  %v4427_v24 = vpack.c.bf16 %v1981_v11, %v1977_v39  ;;  %v2291_v11 = vld [vmem:[#allocation14 + $0x10] sm:$0xff] }
 0x6b3   :  { %4356 = vmatpush1.bf16.msra.mxu0 %v5677_v10  ;;  %4388 = vmatpush1.bf16.msra.mxu1 %v5681_v13 }
 0x6b4   :  { %4358 = vmatprep.subr.bf16.mxu0 %v5685_v16  ;;  %4390 = vmatprep.subr.bf16.mxu1 %v5688_v19 }
 0x6b7   :  { %4360 = vmatpush1.bf16.msra.mxu0 %v5691_v23  ;;  %4392 = vmatpush1.bf16.msra.mxu1 %v5695_v26 }
 0x6b8   :  { %4362 = vmatprep.subr.bf16.mxu0 %v5699_v29  ;;  %4394 = vmatprep.subr.bf16.mxu1 %v5702_v32 }
 0x6bb   :  { %4364 = vmatpush1.bf16.msra.mxu0 %v5705_v36  ;;  %4396 = vmatpush1.bf16.msra.mxu1 %v5709_v40 }
 0x6bc   :  { %4366 = vmatprep.subr.bf16.mxu0 %v5713_v44  ;;  %4398 = vmatprep.subr.bf16.mxu1 %v5716_v48 }
 0x6bf   :  { %4368 = vmatpush1.bf16.msra.mxu0 %v5719_v54  ;;  %4400 = vmatpush1.bf16.msra.mxu1 %v5723_v58 }
 0x6c0   :  { %4370 = vmatprep.subr.bf16.mxu0 %v5727_v62  ;;  %4402 = vmatprep.subr.bf16.mxu1 %v5730_v4 }
 0x6c3   :  { %4372 = vmatpush1.bf16.msra.mxu0 %v5733_v9  ;;  %4404 = vmatpush1.bf16.msra.mxu1 %v5737_v14 }
 0x6c4   :  { %4374 = vmatprep.subr.bf16.mxu0 %v5741_v18  ;;  %4406 = vmatprep.subr.bf16.mxu1 %v5744_v22 }
 0x6c7   :  { %4376 = vmatpush1.bf16.msra.mxu0 %v5747_v25  ;;  %4408 = vmatpush1.bf16.msra.mxu1 %v5751_v27  ;;  %v1945_v27 = vld [vmem:[#allocation12] sm:$0xff] }
 0x6c8   :  { %4410 = vmatprep.subr.bf16.mxu0 %v4409_v56  ;;  %4442 = vmatprep.subr.bf16.mxu1 %v4441_v63  ;;  %v4411_v45 = vpack.c.bf16 %v1949_v51, %v1945_v27  ;;  %v1968_v56 = vld [vmem:[#allocation12 + $0xb8] sm:$0xff]  ;;  %v4447_v63 = vpack.c.bf16 %v1959_v28, %v1955_v5 }
 0x77d   :  { %v1652_v3 = vpop.f32.mrb[12].mxu0  ;;  %v1723_v6 = vpop.f32.mrb[12].mxu1 }
 0x77e   :  { %v4997_v10 = vadd.f32 %v1652_v3, %v5807_v35  ;;  %v1654_v13 = vpop.f32.mrb[13].mxu0  ;;  %v1725_v16 = vpop.f32.mrb[13].mxu1  ;;  %v5013_v36 = vadd.f32 %v1723_v6, %v5824_v1  ;;  %v1961_v3 = vld [vmem:[#allocation12 + $0x80] sm:$0xff] }
 0x77f   :  { %v4998_v19 = vadd.f32 %v1654_v13, %v5811_v37  ;;  %v5014_v29 = vadd.f32 %v1725_v16, %v5818_v57  ;;  %v1965_v6 = vld [vmem:[#allocation12 + $0xa0] sm:$0xff]  ;;  %v4449_v13 = vpack.c.bf16 %v1968_v56, %v1964_v53  ;;  %v1963_v16 = vld [vmem:[#allocation12 + $0x90] sm:$0xff]  ;;  %v1994_v53 = vld [vmem:[#allocation12 + $0x188] sm:$0xff] }
 0x780   :  { %v3803_v23 = vmul.f32 -1.442695, %v4997_v10  ;;  %v4417_v10 = vpack.c.bf16 %v1966_v50, %v1962_v47  ;;  %v1987_v47 = vld [vmem:[#allocation12 + $0x150] sm:$0xff]  ;;  %v1998_v56 = vld [vmem:[#allocation12 + $0x1a8] sm:$0xff] }
 0x781   :  { %v3804_v26 = vmul.f32 -1.442695, %v4998_v19  ;;  %v3805_v32 = vmul.f32 -1.442695, %v5014_v29  ;;  %v1967_v19 = vld [vmem:[#allocation12 + $0xb0] sm:$0xff]  ;;  %v1972_v29 = vld [vmem:[#allocation12 + $0xd8] sm:$0xff] }
 0x782   :  { %5220 = vpow2.f32 %v3803_v23  ;;  %v1970_v23 = vld [vmem:[#allocation12 + $0xc8] sm:$0xff]  ;;  %v1991_v50 = vld [vmem:[#allocation12 + $0x170] sm:$0xff] }
 0x783   :  { %5222 = vpow2.f32 %v3804_v26  ;;  %v1974_v26 = vld [vmem:[#allocation12 + $0xe8] sm:$0xff] }
 0x784   :  { %5224 = vpow2.f32 %v3805_v32  ;;  %v1976_v32 = vld [vmem:[#allocation12 + $0xf8] sm:$0xff] }
 0x785   :  { %5226 = vtanh.f32 %v5013_v36  ;;  %v4419_v36 = vpack.c.bf16 %v1965_v6, %v1961_v3  ;;  %v4463_v6 = vpack.c.bf16 %v1991_v50, %v1987_v47  ;;  %v2310_v47 = vld [vmem:[#allocation14 + $0xa8] sm:$0xff]  ;;  %v2308_v50 = vld [vmem:[#allocation14 + $0x98] sm:$0xff] }
 0x78c   :  { %v5221_v40 = vpop.eup %5220 }
 0x78d   :  { %v5223_v44 = vpop.eup %5222  ;;  %v1735_v48 = vadd.f32 1.0, %v5221_v40  ;;  %v4451_v40 = vpack.c.bf16 %v1967_v19, %v1963_v16  ;;  %v4433_v16 = vpack.c.bf16 %v1998_v56, %v1994_v53  ;;  %v2312_v56 = vld [vmem:[#allocation14 + $0xb8] sm:$0xff] }
 0x78e   :  { %v1741_v54 = vadd.f32 1.0, %v5223_v44  ;;  %v5225_v58 = vpop.eup %5224  ;;  %v1969_v44 = vld [vmem:[#allocation12 + $0xc0] sm:$0xff] }
 0x78f   :  { %5228 = vrcp.f32 %v1735_v48  ;;  %v5227_v62 = vpop.eup %5226  ;;  %v1748_v18 = vadd.f32 1.0, %v5225_v58  ;;  %v1973_v48 = vld [vmem:[#allocation12 + $0xe0] sm:$0xff]  ;;  %v4453_v58 = vpack.c.bf16 %v1976_v32, %v1972_v29  ;;  %v2002_v29 = vld [vmem:[#allocation12 + $0x1c8] sm:$0xff] }
 0x790   :  { %5230 = vrcp.f32 %v1741_v54  ;;  %v4421_v54 = vpack.c.bf16 %v1974_v26, %v1970_v23  ;;  %v4423_v27 = vpack.c.bf16 %v1973_v48, %v1969_v44  ;;  %v1995_v23 = vld [vmem:[#allocation12 + $0x190] sm:$0xff]  ;;  %v2006_v32 = vld [vmem:[#allocation12 + $0x1e8] sm:$0xff] }
 0x791   :  { %5232 = vrcp.f32 %v1748_v18  ;;  %v1980_v18 = vld [vmem:[#allocation12 + $0x118] sm:$0xff]  ;;  %v1999_v26 = vld [vmem:[#allocation12 + $0x1b0] sm:$0xff] }
 0x792   :  { %v4467_v48 = vpack.c.bf16 %v1999_v26, %v1995_v23  ;;  %v2318_v23 = vld [vmem:[#allocation14 + $0xe8] sm:$0xff]  ;;  %v2316_v26 = vld [vmem:[#allocation14 + $0xd8] sm:$0xff] }
 0x799   :  { %v5229_v4 = vpop.eup %5228 }
 0x79a   :  { %v5231_v9 = vpop.eup %5230  ;;  %v1752_v14 = vmul.f32 %v5229_v4, %v5227_v62  ;;  %v1971_v62 = vld [vmem:[#allocation12 + $0xd0] sm:$0xff] }
 0x79b   :  { %v1751_v22 = vmul.f32 %v5231_v9, %v6057_v20  ;;  %v5233_v61 = vpop.eup %5232  ;;  %v4445_v20 = vpack.c.bf16 %v1960_v41, %v1956_v52  ;;  %v1975_v4 = vld [vmem:[#allocation12 + $0xf0] sm:$0xff]  ;;  %v1978_v9 = vld [vmem:[#allocation12 + $0x108] sm:$0xff] }
 0x79c   :  { %v4455_v51 = vpack.c.bf16 %v1975_v4, %v1971_v62  ;;  %v1979_v52 = vld [vmem:[#allocation12 + $0x110] sm:$0xff]  ;;  %v2005_v4 = vld [vmem:[#allocation12 + $0x1e0] sm:$0xff] }
 0x79d   :  { %v6101_v25 = vadd.f32 %v1752_v14, %v1751_v22  ;;  %v1982_v14 = vld [vmem:[#allocation12 + $0x128] sm:$0xff]  ;;  %v1984_v22 = vld [vmem:[#allocation12 + $0x138] sm:$0xff]  ;;  %v1983_v41 = vld [vmem:[#allocation12 + $0x130] sm:$0xff] }
 0x79e   :  { %v4425_v49 = vpack.c.bf16 %v1982_v14, %v1978_v9  ;;  %v4457_v38 = vpack.c.bf16 %v1984_v22, %v1980_v18  ;;  %v4459_v12 = vpack.c.bf16 %v1983_v41, %v1979_v52  ;;  %v2003_v9 = vld [vmem:[#allocation12 + $0x1d0] sm:$0xff]  ;;  %v2302_v52 = vld [vmem:[#allocation14 + $0x68] sm:$0xff]  ;;  %v2300_v41 = vld [vmem:[#allocation14 + $0x58] sm:$0xff] }
 0x79f   :  { %5234 = vtanh.f32 %v6101_v25  ;;  %v2007_v14 = vld [vmem:[#allocation12 + $0x1f0] sm:$0xff] }
 0x7a0   :  { %v4471_v22 = vpack.c.bf16 %v2007_v14, %v2003_v9  ;;  %v2326_v9 = vld [vmem:[#allocation14 + $0x128] sm:$0xff]  ;;  %v2324_v14 = vld [vmem:[#allocation14 + $0x118] sm:$0xff] }
 0x7a9   :  { %v5235_v33 = vpop.eup %5234 }
 0x7aa   :  { %v6104_v55 = vmul.f32 %v5235_v33, %v5233_v61  ;;  %v1986_v61 = vld [vmem:[#allocation12 + $0x148] sm:$0xff] }
 0x7ab   :  { %v1990_v33 = vld [vmem:[#allocation12 + $0x168] sm:$0xff] }
 0x7ac   :  { %1828 = vmatmul.mubr.f32.vlgmr.msra.gmra.mrb[14].mxu0 %v6104_v55  ;;  %1899 = vmatmul.mubr.f32.vlgmr.msra.gmra.mrb[14].mxu1 %v6104_v55  ;;  %v4429_v5 = vpack.c.bf16 %v1990_v33, %v1986_v61  ;;  %v2304_v33 = vld [vmem:[#allocation14 + $0x78] sm:$0xff] }
 0x7ad   :  { %4412 = vmatpush1.bf16.msra.mxu0 %v4411_v45  ;;  %4444 = vmatpush1.bf16.msra.mxu1 %v4443_v7  ;;  %v1988_v45 = vld [vmem:[#allocation12 + $0x158] sm:$0xff] }
 0x7ae   :  { %4414 = vmatprep.subr.bf16.mxu0 %v4413_v21  ;;  %4446 = vmatprep.subr.bf16.mxu1 %v4445_v20  ;;  %v1992_v7 = vld [vmem:[#allocation12 + $0x178] sm:$0xff]  ;;  %v1985_v21 = vld [vmem:[#allocation12 + $0x140] sm:$0xff] }
 0x7af   :  { %2095 = vmatprep.mubr.f32.mxu0 %v5529_v0  ;;  %2208 = vmatprep.mubr.f32.mxu1 %v5529_v0  ;;  %v1989_v20 = vld [vmem:[#allocation12 + $0x160] sm:$0xff]  ;;  %v4461_v28 = vpack.c.bf16 %v1992_v7, %v1988_v45 }
 0x7b0   :  { %v4431_v3 = vpack.c.bf16 %v1989_v20, %v1985_v21  ;;  %v2297_v45 = vld [vmem:[#allocation14 + $0x40] sm:$0xff]  ;;  %v2299_v21 = vld [vmem:[#allocation14 + $0x50] sm:$0xff] }
 0x7b1   :  { %4416 = vmatpush1.bf16.msra.mxu0 %v4415_v60  ;;  %4448 = vmatpush1.bf16.msra.mxu1 %v4447_v63  ;;  %v1996_v60 = vld [vmem:[#allocation12 + $0x198] sm:$0xff]  ;;  %v2301_v7 = vld [vmem:[#allocation14 + $0x60] sm:$0xff]  ;;  %v2303_v20 = vld [vmem:[#allocation14 + $0x70] sm:$0xff] }
 0x7b2   :  { %4418 = vmatprep.subr.bf16.mxu0 %v4417_v10  ;;  %4450 = vmatprep.subr.bf16.mxu1 %v4449_v13  ;;  %v2000_v63 = vld [vmem:[#allocation12 + $0x1b8] sm:$0xff]  ;;  %v1993_v10 = vld [vmem:[#allocation12 + $0x180] sm:$0xff] }
 0x7b3   :  { %v1997_v13 = vld [vmem:[#allocation12 + $0x1a0] sm:$0xff]  ;;  %v4465_v19 = vpack.c.bf16 %v2000_v63, %v1996_v60 }
 0x7b4   :  { %v4435_v44 = vpack.c.bf16 %v1997_v13, %v1993_v10  ;;  %v2305_v60 = vld [vmem:[#allocation14 + $0x80] sm:$0xff]  ;;  %v2307_v10 = vld [vmem:[#allocation14 + $0x90] sm:$0xff] }
 0x7b5   :  { %4420 = vmatpush1.bf16.msra.mxu0 %v4419_v36  ;;  %4452 = vmatpush1.bf16.msra.mxu1 %v4451_v40  ;;  %v2004_v36 = vld [vmem:[#allocation12 + $0x1d8] sm:$0xff]  ;;  %v2309_v63 = vld [vmem:[#allocation14 + $0xa0] sm:$0xff]  ;;  %v2311_v13 = vld [vmem:[#allocation14 + $0xb0] sm:$0xff] }
 0x7b6   :  { %4422 = vmatprep.subr.bf16.mxu0 %v4421_v54  ;;  %4454 = vmatprep.subr.bf16.mxu1 %v4453_v58  ;;  %v2008_v40 = vld [vmem:[#allocation12 + $0x1f8] sm:$0xff]  ;;  %v2001_v54 = vld [vmem:[#allocation12 + $0x1c0] sm:$0xff]  ;;  %v4437_v58 = vpack.c.bf16 %v2006_v32, %v2002_v29 }
 0x7b7   :  { %v4469_v62 = vpack.c.bf16 %v2008_v40, %v2004_v36  ;;  %v4439_v18 = vpack.c.bf16 %v2005_v4, %v2001_v54  ;;  %v2320_v32 = vld [vmem:[#allocation14 + $0xf8] sm:$0xff]  ;;  %v2313_v36 = vld [vmem:[#allocation14 + $0xc0] sm:$0xff]  ;;  %v2315_v54 = vld [vmem:[#allocation14 + $0xd0] sm:$0xff] }
 0x7b8   :  { %v2317_v40 = vld [vmem:[#allocation14 + $0xe0] sm:$0xff] }
 0x7b9   :  { %4424 = vmatpush1.bf16.msra.mxu0 %v4423_v27  ;;  %4456 = vmatpush1.bf16.msra.mxu1 %v4455_v51  ;;  %v2289_v27 = vld [vmem:[#allocation14] sm:$0xff] }
 0x7ba   :  { %4426 = vmatprep.subr.bf16.mxu0 %v4425_v49  ;;  %4458 = vmatprep.subr.bf16.mxu1 %v4457_v38  ;;  %v2295_v49 = vld [vmem:[#allocation14 + $0x30] sm:$0xff]  ;;  %v2298_v38 = vld [vmem:[#allocation14 + $0x48] sm:$0xff] }
 0x7bb   :  { %v6150_v61 = vpack.c.bf16 %v2302_v52, %v2298_v38 }
 0x7bd   :  { %4428 = vmatpush1.bf16.msra.mxu0 %v4427_v24  ;;  %4460 = vmatpush1.bf16.msra.mxu1 %v4459_v12  ;;  %v6152_v24 = vpack.c.bf16 %v2304_v33, %v2300_v41  ;;  %v6154_v12 = vpack.c.bf16 %v2301_v7, %v2297_v45  ;;  %v2332_v41 = vld [vmem:[#allocation14 + $0x158] sm:$0xff]  ;;  %v2329_v45 = vld [vmem:[#allocation14 + $0x140] sm:$0xff] }
 0x7be   :  { %4430 = vmatprep.subr.bf16.mxu0 %v4429_v5  ;;  %4462 = vmatprep.subr.bf16.mxu1 %v4461_v28  ;;  %v6157_v5 = vpack.c.bf16 %v2303_v20, %v2299_v21  ;;  %v2306_v28 = vld [vmem:[#allocation14 + $0x88] sm:$0xff]  ;;  %v2336_v33 = vld [vmem:[#allocation14 + $0x178] sm:$0xff]  ;;  %v2333_v21 = vld [vmem:[#allocation14 + $0x160] sm:$0xff] }
 0x7bf   :  { %v6162_v53 = vpack.c.bf16 %v2310_v47, %v2306_v28  ;;  %v6198_v7 = vpack.c.bf16 %v2336_v33, %v2332_v41  ;;  %v2331_v20 = vld [vmem:[#allocation14 + $0x150] sm:$0xff]  ;;  %v6201_v47 = vpack.c.bf16 %v2333_v21, %v2329_v45 }
 0x7c0   :  { %v2335_v28 = vld [vmem:[#allocation14 + $0x170] sm:$0xff] }
 0x7c1   :  { %4432 = vmatpush1.bf16.msra.mxu0 %v4431_v3  ;;  %4464 = vmatpush1.bf16.msra.mxu1 %v4463_v6  ;;  %v6164_v3 = vpack.c.bf16 %v2312_v56, %v2308_v50  ;;  %v6166_v6 = vpack.c.bf16 %v2309_v63, %v2305_v60  ;;  %v2338_v50 = vld [vmem:[#allocation14 + $0x188] sm:$0xff]  ;;  %v2340_v60 = vld [vmem:[#allocation14 + $0x198] sm:$0xff]  ;;  %v6205_v63 = vpack.c.bf16 %v2335_v28, %v2331_v20 }
 0x7c2   :  { %4434 = vmatprep.subr.bf16.mxu0 %v4433_v16  ;;  %4466 = vmatprep.subr.bf16.mxu1 %v4465_v19  ;;  %v6169_v16 = vpack.c.bf16 %v2311_v13, %v2307_v10  ;;  %v2314_v19 = vld [vmem:[#allocation14 + $0xc8] sm:$0xff]  ;;  %v2344_v13 = vld [vmem:[#allocation14 + $0x1b8] sm:$0xff] }
 0x7c3   :  { %v6174_v29 = vpack.c.bf16 %v2318_v23, %v2314_v19  ;;  %v2342_v56 = vld [vmem:[#allocation14 + $0x1a8] sm:$0xff]  ;;  %v2337_v19 = vld [vmem:[#allocation14 + $0x180] sm:$0xff] }
 0x7c4   :  { %v6207_v10 = vpack.c.bf16 %v2342_v56, %v2338_v50  ;;  %v2341_v23 = vld [vmem:[#allocation14 + $0x1a0] sm:$0xff] }
 0x7c5   :  { %4436 = vmatpush1.bf16.msra.mxu0 %v4435_v44  ;;  %4468 = vmatpush1.bf16.msra.mxu1 %v4467_v48  ;;  %v6176_v44 = vpack.c.bf16 %v2320_v32, %v2316_v26  ;;  %v6178_v48 = vpack.c.bf16 %v2317_v40, %v2313_v36  ;;  %v6210_v26 = vpack.c.bf16 %v2344_v13, %v2340_v60  ;;  %v2339_v32 = vld [vmem:[#allocation14 + $0x190] sm:$0xff] }
 0x7c6   :  { %4438 = vmatprep.subr.bf16.mxu0 %v4437_v58  ;;  %4470 = vmatprep.subr.bf16.mxu1 %v4469_v62  ;;  %v2319_v58 = vld [vmem:[#allocation14 + $0xf0] sm:$0xff]  ;;  %v2322_v62 = vld [vmem:[#allocation14 + $0x108] sm:$0xff]  ;;  %v6213_v40 = vpack.c.bf16 %v2341_v23, %v2337_v19 }
 0x7c7   :  { %v6181_v4 = vpack.c.bf16 %v2319_v58, %v2315_v54  ;;  %v2343_v36 = vld [vmem:[#allocation14 + $0x1b0] sm:$0xff]  ;;  %v2346_v58 = vld [vmem:[#allocation14 + $0x1c8] sm:$0xff] }
 0x7c8   :  { %v6217_v54 = vpack.c.bf16 %v2343_v36, %v2339_v32 }
 0x7c9   :  { %4440 = vmatpush1.bf16.msra.mxu0 %v4439_v18  ;;  %4472 = vmatpush1.bf16.msra.mxu1 %v4471_v22  ;;  %v2328_v18 = vld [vmem:[#allocation14 + $0x138] sm:$0xff]  ;;  %v6185_v22 = vpack.c.bf16 %v2326_v9, %v2322_v62  ;;  %v2350_v62 = vld [vmem:[#allocation14 + $0x1e8] sm:$0xff] }
 0x7ca   :  { %v2348_v9 = vld [vmem:[#allocation14 + $0x1d8] sm:$0xff] }
 0x7cc   :  { %2096 = vmatmul.mubr.f32.vlgmr.msra.gmra.mrb[16].mxu0 %v5830_v46  ;;  %2209 = vmatmul.mubr.f32.vlgmr.msra.gmra.mrb[16].mxu1 %v5830_v46  ;;  %v2290_v46 = vld [vmem:[#allocation14 + $0x8] sm:$0xff] }
 0x7cd   :  { %2101 = vmatprep.mubr.f32.mxu0 %v5529_v0  ;;  %2214 = vmatprep.mubr.f32.mxu1 %v5529_v0 }
 0x7d0   :  { %2102 = vmatmul.mubr.f32.gmra.mrb[18].mxu0 %v5876_v2  ;;  %2215 = vmatmul.mubr.f32.gmra.mrb[18].mxu1 %v5876_v2  ;;  %v2294_v2 = vld [vmem:[#allocation14 + $0x28] sm:$0xff] }
 0x7d1   :  { %2107 = vmatprep.mubr.f32.mxu0 %v5529_v0  ;;  %2220 = vmatprep.mubr.f32.mxu1 %v5529_v0 }
 0x7d4   :  { %2108 = vmatmul.mubr.f32.gmra.mrb[20].mxu0 %v5922_v15  ;;  %2221 = vmatmul.mubr.f32.gmra.mrb[20].mxu1 %v5922_v15  ;;  %v2292_v15 = vld [vmem:[#allocation14 + $0x18] sm:$0xff] }
 0x7d5   :  { %2113 = vmatprep.mubr.f32.mxu0 %v5529_v0  ;;  %2226 = vmatprep.mubr.f32.mxu1 %v5529_v0 }
 0x7d8   :  { %2114 = vmatmul.mubr.f32.gmra.mrb[22].mxu0 %v5968_v43  ;;  %2227 = vmatmul.mubr.f32.gmra.mrb[22].mxu1 %v5968_v43  ;;  %v6138_v43 = vpack.c.bf16 %v2294_v2, %v2290_v46  ;;  %v6187_v46 = vpack.c.bf16 %v2328_v18, %v2324_v14  ;;  %v2321_v2 = vld [vmem:[#allocation14 + $0x100] sm:$0xff]  ;;  %v6222_v14 = vpack.c.bf16 %v2350_v62, %v2346_v58  ;;  %v2352_v18 = vld [vmem:[#allocation14 + $0x1f8] sm:$0xff] }
 0x7d9   :  { %2119 = vmatprep.mubr.f32.mxu0 %v5529_v0  ;;  %2232 = vmatprep.mubr.f32.mxu1 %v5529_v0 }
 0x7da   :  { %4474 = vmatprep.subr.bf16.mxu0 %v6138_v43 }
 0x7dc   :  { %2120 = vmatmul.mubr.f32.gmra.mrb[24].mxu0 %v6014_v8  ;;  %2233 = vmatmul.mubr.f32.gmra.mrb[24].mxu1 %v6014_v8  ;;  %v2296_v8 = vld [vmem:[#allocation14 + $0x38] sm:$0xff] }
 0x7dd   :  { %2125 = vmatprep.mubr.f32.mxu0 %v5529_v0  ;;  %2238 = vmatprep.mubr.f32.mxu1 %v5529_v0  ;;  %v6140_v51 = vpack.c.bf16 %v2296_v8, %v2292_v15  ;;  %v2325_v15 = vld [vmem:[#allocation14 + $0x120] sm:$0xff]  ;;  %v2323_v8 = vld [vmem:[#allocation14 + $0x110] sm:$0xff] }
 0x7df   :  { %4506 = vmatprep.subr.bf16.mxu1 %v6140_v51 }
 0x7e0   :  { %2126 = vmatmul.mubr.f32.gmra.mrb[26].mxu0 %v6060_v17  ;;  %2239 = vmatmul.mubr.f32.gmra.mrb[26].mxu1 %v6060_v17  ;;  %v2293_v17 = vld [vmem:[#allocation14 + $0x20] sm:$0xff] }
 0x7e1   :  { %2131 = vmatprep.mubr.f32.mxu0 %v5529_v0  ;;  %2244 = vmatprep.mubr.f32.mxu1 %v5529_v0  ;;  %v6142_v39 = vpack.c.bf16 %v2293_v17, %v2289_v27  ;;  %v6190_v27 = vpack.c.bf16 %v2325_v15, %v2321_v2  ;;  %v2327_v17 = vld [vmem:[#allocation14 + $0x130] sm:$0xff]  ;;  %v2345_v2 = vld [vmem:[#allocation14 + $0x1c0] sm:$0xff] }
 0x7e2   :  { %v6194_v38 = vpack.c.bf16 %v2327_v17, %v2323_v8  ;;  %v2349_v15 = vld [vmem:[#allocation14 + $0x1e0] sm:$0xff]  ;;  %v6224_v8 = vpack.c.bf16 %v2352_v18, %v2348_v9 }
 0x7e3   :  { %4476 = vmatpush1.bf16.msra.mxu0 %v6142_v39  ;;  %v6226_v17 = vpack.c.bf16 %v2349_v15, %v2345_v2 }
 0x7e4   :  { %2132 = vmatmul.mubr.f32.gmra.mrb[28].mxu0 %v6104_v55  ;;  %2245 = vmatmul.mubr.f32.gmra.mrb[28].mxu1 %v6104_v55  ;;  %v6145_v55 = vpack.c.bf16 %v2295_v49, %v2291_v11  ;;  %v2330_v11 = vld [vmem:[#allocation14 + $0x148] sm:$0xff] }
 0x7e5   :  { %2137 = vmatprep.mubr.f32.mxu0 %v5529_v0  ;;  %2250 = vmatprep.mubr.f32.mxu1 %v5529_v0  ;;  %v2334_v49 = vld [vmem:[#allocation14 + $0x168] sm:$0xff] }
 0x7e6   :  { %4508 = vmatpush1.bf16.msra.mxu1 %v6145_v55  ;;  %4478 = vmatprep.subr.bf16.mxu0 %v6150_v61  ;;  %v6196_v52 = vpack.c.bf16 %v2334_v49, %v2330_v11  ;;  %v2347_v11 = vld [vmem:[#allocation14 + $0x1d0] sm:$0xff] }
 0x7e7   :  { %4510 = vmatprep.subr.bf16.mxu1 %v6152_v24  ;;  %4480 = vmatpush1.bf16.msra.mxu0 %v6154_v12  ;;  %v2351_v49 = vld [vmem:[#allocation14 + $0x1f0] sm:$0xff] }
 0x7e8   :  { %4482 = vmatprep.subr.bf16.mxu0 %v6162_v53  ;;  %v6229_v41 = vpack.c.bf16 %v2351_v49, %v2347_v11 }
 0x7ea   :  { %4512 = vmatpush1.bf16.msra.mxu1 %v6157_v5 }
 0x7eb   :  { %4514 = vmatprep.subr.bf16.mxu1 %v6164_v3  ;;  %4484 = vmatpush1.bf16.msra.mxu0 %v6166_v6 }
 0x7ec   :  { %4486 = vmatprep.subr.bf16.mxu0 %v6174_v29 }
 0x7ee   :  { %4516 = vmatpush1.bf16.msra.mxu1 %v6169_v16 }
 0x7ef   :  { %4518 = vmatprep.subr.bf16.mxu1 %v6176_v44  ;;  %4488 = vmatpush1.bf16.msra.mxu0 %v6178_v48 }
 0x7f0   :  { %4490 = vmatprep.subr.bf16.mxu0 %v6185_v22 }
 0x7f2   :  { %4520 = vmatpush1.bf16.msra.mxu1 %v6181_v4 }
 0x7f3   :  { %4522 = vmatprep.subr.bf16.mxu1 %v6187_v46  ;;  %4492 = vmatpush1.bf16.msra.mxu0 %v6190_v27 }
 0x7f4   :  { %4494 = vmatprep.subr.bf16.mxu0 %v6196_v52 }
 0x7f6   :  { %4524 = vmatpush1.bf16.msra.mxu1 %v6194_v38 }
 0x7f7   :  { %4526 = vmatprep.subr.bf16.mxu1 %v6198_v7  ;;  %4496 = vmatpush1.bf16.msra.mxu0 %v6201_v47 }
 0x7f8   :  { %4498 = vmatprep.subr.bf16.mxu0 %v6207_v10 }
 0x7fa   :  { %4528 = vmatpush1.bf16.msra.mxu1 %v6205_v63 }
 0x7fb   :  { %4530 = vmatprep.subr.bf16.mxu1 %v6210_v26  ;;  %4500 = vmatpush1.bf16.msra.mxu0 %v6213_v40 }
 0x7fc   :  { %4502 = vmatprep.subr.bf16.mxu0 %v6222_v14 }
 0x7fe   :  { %4532 = vmatpush1.bf16.msra.mxu1 %v6217_v54 }
 0x7ff   :  { %4534 = vmatprep.subr.bf16.mxu1 %v6224_v8  ;;  %4504 = vmatpush1.bf16.msra.mxu0 %v6226_v17 }
 0x800   :  { %4538 = vmatprep.subr.bf16.mxu0 %v6138_v43 }
 0x802   :  { %4536 = vmatpush1.bf16.msra.mxu1 %v6229_v41 }
 0x803   :  { %4570 = vmatprep.subr.bf16.mxu1 %v6140_v51 }
 0x87f   :  { %v1829_v33 = vpop.f32.mrb[14].mxu0  ;;  %v1900_v45 = vpop.f32.mrb[14].mxu1 }
 0x880   :  { %v4999_v21 = vadd.f32 %v1829_v33, %v5807_v35  ;;  %v1831_v20 = vpop.f32.mrb[15].mxu0  ;;  %v1902_v28 = vpop.f32.mrb[15].mxu1  ;;  %v5015_v23 = vadd.f32 %v1900_v45, %v5824_v1 }
 0x881   :  { %v5000_v50 = vadd.f32 %v1831_v20, %v5811_v37  ;;  %v5016_v13 = vadd.f32 %v1902_v28, %v5818_v57 }
 0x882   :  { %v3806_v56 = vmul.f32 -1.442695, %v4999_v21 }
 0x883   :  { %v3807_v60 = vmul.f32 -1.442695, %v5000_v50  ;;  %v3808_v19 = vmul.f32 -1.442695, %v5016_v13 }
 0x884   :  { %5236 = vpow2.f32 %v3806_v56 }
 0x885   :  { %5238 = vpow2.f32 %v3807_v60 }
 0x886   :  { %5240 = vpow2.f32 %v3808_v19 }
 0x887   :  { %5242 = vtanh.f32 %v5015_v23 }
 0x88e   :  { %v5237_v32 = vpop.eup %5236 }
 0x88f   :  { %v5239_v36 = vpop.eup %5238  ;;  %v1912_v58 = vadd.f32 1.0, %v5237_v32 }
 0x890   :  { %v1918_v62 = vadd.f32 1.0, %v5239_v36  ;;  %v5241_v35 = vpop.eup %5240 }
 0x891   :  { %5244 = vrcp.f32 %v1912_v58  ;;  %v5243_v9 = vpop.eup %5242  ;;  %v1925_v15 = vadd.f32 1.0, %v5241_v35 }
 0x892   :  { %5246 = vrcp.f32 %v1918_v62 }
 0x893   :  { %5248 = vrcp.f32 %v1925_v15 }
 0x89b   :  { %v5245_v37 = vpop.eup %5244 }
 0x89c   :  { %v5247_v18 = vpop.eup %5246  ;;  %v1929_v2 = vmul.f32 %v5245_v37, %v5243_v9 }
 0x89d   :  { %v1928_v11 = vmul.f32 %v5247_v18, %v6101_v25  ;;  %v5249_v1 = vpop.eup %5248  ;;  %v2009_v25 = vld [vmem:[%s6577_s6] sm:$0xf]  ;;  %s5530_s6 = smov [#allocation15]  }
 0x89e   :  { %v6284_v45 = vrot.slane %v2009_v25, %v179_v31  ;;  %v6288_v21 = vrot.slane %v2009_v25, %v183_v34  ;;  %v6294_v32 = vrot.slane %v2009_v25, %v191_v42  ;;  %v6299_v34 = vrot.slane %v2009_v25, %v187_v59  ;;  %s3771_s20 = sshll.u32 %s5530_s6, 4  ;;  %s3772_s20 = int_to_ptr.vmem [resolvable:$true] %s3771_s20 }
 0x89f   :  { %v1930_v57 = vadd.f32 %v1929_v2, %v1928_v11  ;;  %s5490_s21 = scalar_lea.vmem %s3772_s20, 1024  ;;  %p5495_p13 = scmp.lt.s32.totalorder %s3772_s20, %s3772_s20 }
 0x8a0   :  { %p5491_p12 = scmp.ne.s32.totalorder %s3772_s20, %s5490_s21  ;;  %p5496_p0 = scmp.lt.s32.totalorder %s5490_s21, %s5490_s21 }
 0x8a1   :  { %5250 = vtanh.f32 %v1930_v57 }
 0x8a2   :  { %p5497_p1 = por %p5496_p0, %p5495_p13 }
 0x8a4   :  { %p5498_p2 = pnand %p5497_p1, %p5491_p12 }
 0x8ab   :  { %v5251_v49 = vpop.eup %5250 }
 0x8ac   :  { %v1932_v33 = vmul.f32 %v5251_v49, %v5249_v1 }
 0x8ae   :  { %2138 = vmatmul.mubr.f32.gmra.mrb[30].mxu0 %v1932_v33  ;;  %2251 = vmatmul.mubr.f32.gmra.mrb[30].mxu1 %v1932_v33 }
 0x8af   :  { %2425 = vmatprep.mubr.f32.mxu0 %v5529_v0  ;;  %2496 = vmatprep.mubr.f32.mxu1 %v5529_v0 }
 0x8b2   :  { %2426 = vmatmul.mubr.f32.vlgmr.msra.gmra.mrb[16].mxu0 %v5529_v0  ;;  %2497 = vmatmul.mubr.f32.vlgmr.msra.gmra.mrb[16].mxu1 %v5529_v0 }
 0x8b3   :  { %4540 = vmatpush1.bf16.msra.mxu0 %v6142_v39  ;;  %4572 = vmatpush1.bf16.msra.mxu1 %v6145_v55 }
 0x8b4   :  { %4542 = vmatprep.subr.bf16.mxu0 %v6150_v61  ;;  %4574 = vmatprep.subr.bf16.mxu1 %v6152_v24 }
 0x8b5   :  { %2600 = vmatprep.mubr.f32.mxu0 %v5529_v0  ;;  %2671 = vmatprep.mubr.f32.mxu1 %v5529_v0 }
 0x8b7   :  { %4544 = vmatpush1.bf16.msra.mxu0 %v6154_v12  ;;  %4576 = vmatpush1.bf16.msra.mxu1 %v6157_v5 }
 0x8b8   :  { %4546 = vmatprep.subr.bf16.mxu0 %v6162_v53  ;;  %4578 = vmatprep.subr.bf16.mxu1 %v6164_v3 }
 0x8bb   :  { %4548 = vmatpush1.bf16.msra.mxu0 %v6166_v6  ;;  %4580 = vmatpush1.bf16.msra.mxu1 %v6169_v16 }
 0x8bc   :  { %4550 = vmatprep.subr.bf16.mxu0 %v6174_v29  ;;  %4582 = vmatprep.subr.bf16.mxu1 %v6176_v44 }
 0x8bf   :  { %4552 = vmatpush1.bf16.msra.mxu0 %v6178_v48  ;;  %4584 = vmatpush1.bf16.msra.mxu1 %v6181_v4 }
 0x8c0   :  { %4554 = vmatprep.subr.bf16.mxu0 %v6185_v22  ;;  %4586 = vmatprep.subr.bf16.mxu1 %v6187_v46 }
 0x8c3   :  { %4556 = vmatpush1.bf16.msra.mxu0 %v6190_v27  ;;  %4588 = vmatpush1.bf16.msra.mxu1 %v6194_v38 }
 0x8c4   :  { %4558 = vmatprep.subr.bf16.mxu0 %v6196_v52  ;;  %4590 = vmatprep.subr.bf16.mxu1 %v6198_v7 }
 0x8c7   :  { %4560 = vmatpush1.bf16.msra.mxu0 %v6201_v47  ;;  %4592 = vmatpush1.bf16.msra.mxu1 %v6205_v63 }
 0x8c8   :  { %4562 = vmatprep.subr.bf16.mxu0 %v6207_v10  ;;  %4594 = vmatprep.subr.bf16.mxu1 %v6210_v26 }
 0x8cb   :  { %4564 = vmatpush1.bf16.msra.mxu0 %v6213_v40  ;;  %4596 = vmatpush1.bf16.msra.mxu1 %v6217_v54 }
 0x8cc   :  { %4566 = vmatprep.subr.bf16.mxu0 %v6222_v14  ;;  %4598 = vmatprep.subr.bf16.mxu1 %v6224_v8 }
 0x8cf   :  { %4568 = vmatpush1.bf16.msra.mxu0 %v6226_v17  ;;  %4600 = vmatpush1.bf16.msra.mxu1 %v6229_v41 }
 0x8d0   :  { %4602 = vmatprep.subr.bf16.mxu0 %v6138_v43  ;;  %4634 = vmatprep.subr.bf16.mxu1 %v6140_v51 }
 0x985   :  { %v2427_v20 = vpop.f32.mrb[16].mxu0  ;;  %v2498_v28 = vpop.f32.mrb[16].mxu1 }
 0x986   :  { %v5017_v50 = vadd.f32 %v2427_v20, %v6284_v45  ;;  %v2429_v56 = vpop.f32.mrb[17].mxu0  ;;  %v2500_v60 = vpop.f32.mrb[17].mxu1  ;;  %v5033_v58 = vadd.f32 %v2498_v28, %v6299_v34 }
 0x987   :  { %v5018_v13 = vadd.f32 %v2429_v56, %v6288_v21  ;;  %v5034_v31 = vadd.f32 %v2500_v60, %v6294_v32 }
 0x988   :  { %v3809_v19 = vmul.f32 -1.442695, %v5017_v50 }
 0x989   :  { %v3810_v23 = vmul.f32 -1.442695, %v5018_v13  ;;  %v3811_v36 = vmul.f32 -1.442695, %v5034_v31 }
 0x98a   :  { %5252 = vpow2.f32 %v3809_v19 }
 0x98b   :  { %5254 = vpow2.f32 %v3810_v23 }
 0x98c   :  { %5256 = vpow2.f32 %v3811_v36 }
 0x98d   :  { %5258 = vtanh.f32 %v5033_v58 }
 0x994   :  { %v5253_v62 = vpop.eup %5252 }
 0x995   :  { %v5255_v35 = vpop.eup %5254  ;;  %v2510_v9 = vadd.f32 1.0, %v5253_v62 }
 0x996   :  { %v2516_v37 = vadd.f32 1.0, %v5255_v35  ;;  %v5257_v42 = vpop.eup %5256 }
 0x997   :  { %5260 = vrcp.f32 %v2510_v9  ;;  %v5259_v18 = vpop.eup %5258  ;;  %v2523_v57 = vadd.f32 1.0, %v5257_v42 }
 0x998   :  { %5262 = vrcp.f32 %v2516_v37 }
 0x999   :  { %5264 = vrcp.f32 %v2523_v57 }
 0x9a1   :  { %v5261_v2 = vpop.eup %5260 }
 0x9a2   :  { %v5263_v15 = vpop.eup %5262  ;;  %v2527_v11 = vmul.f32 %v5261_v2, %v5259_v18 }
 0x9a3   :  { %v2526_v30 = vmul.f32 0.0, %v5263_v15  ;;  %v5265_v1 = vpop.eup %5264 }
 0x9a5   :  { %v6302_v59 = vadd.f32 %v2527_v11, %v2526_v30 }
 0x9a7   :  { %5266 = vtanh.f32 %v6302_v59 }
 0x9b1   :  { %v5267_v49 = vpop.eup %5266 }
 0x9b2   :  { %v2530_v33 = vmul.f32 %v5267_v49, %v5265_v1 }
 0x9b4   :  { %2531 = vst [vmem:[#allocation15] sm:$0xff] %v2530_v33  ;;  %2601 = vmatmul.mubr.f32.vlgmr.msra.gmra.mrb[18].mxu0 %v2530_v33  ;;  %2672 = vmatmul.mubr.f32.vlgmr.msra.gmra.mrb[18].mxu1 %v2530_v33 }
 0x9b5   :  { %4604 = vmatpush1.bf16.msra.mxu0 %v6142_v39  ;;  %4636 = vmatpush1.bf16.msra.mxu1 %v6145_v55 }
 0x9b6   :  { %4606 = vmatprep.subr.bf16.mxu0 %v6150_v61  ;;  %4638 = vmatprep.subr.bf16.mxu1 %v6152_v24 }
 0x9b7   :  { %2776 = vmatprep.mubr.f32.mxu0 %v5529_v0  ;;  %2847 = vmatprep.mubr.f32.mxu1 %v5529_v0 }
 0x9b9   :  { %4608 = vmatpush1.bf16.msra.mxu0 %v6154_v12  ;;  %4640 = vmatpush1.bf16.msra.mxu1 %v6157_v5 }
 0x9ba   :  { %4610 = vmatprep.subr.bf16.mxu0 %v6162_v53  ;;  %4642 = vmatprep.subr.bf16.mxu1 %v6164_v3 }
 0x9bd   :  { %4612 = vmatpush1.bf16.msra.mxu0 %v6166_v6  ;;  %4644 = vmatpush1.bf16.msra.mxu1 %v6169_v16 }
 0x9be   :  { %4614 = vmatprep.subr.bf16.mxu0 %v6174_v29  ;;  %4646 = vmatprep.subr.bf16.mxu1 %v6176_v44 }
 0x9c1   :  { %4616 = vmatpush1.bf16.msra.mxu0 %v6178_v48  ;;  %4648 = vmatpush1.bf16.msra.mxu1 %v6181_v4 }
 0x9c2   :  { %4618 = vmatprep.subr.bf16.mxu0 %v6185_v22  ;;  %4650 = vmatprep.subr.bf16.mxu1 %v6187_v46 }
 0x9c5   :  { %4620 = vmatpush1.bf16.msra.mxu0 %v6190_v27  ;;  %4652 = vmatpush1.bf16.msra.mxu1 %v6194_v38 }
 0x9c6   :  { %4622 = vmatprep.subr.bf16.mxu0 %v6196_v52  ;;  %4654 = vmatprep.subr.bf16.mxu1 %v6198_v7 }
 0x9c9   :  { %4624 = vmatpush1.bf16.msra.mxu0 %v6201_v47  ;;  %4656 = vmatpush1.bf16.msra.mxu1 %v6205_v63 }
 0x9ca   :  { %4626 = vmatprep.subr.bf16.mxu0 %v6207_v10  ;;  %4658 = vmatprep.subr.bf16.mxu1 %v6210_v26 }
 0x9cd   :  { %4628 = vmatpush1.bf16.msra.mxu0 %v6213_v40  ;;  %4660 = vmatpush1.bf16.msra.mxu1 %v6217_v54 }
 0x9ce   :  { %4630 = vmatprep.subr.bf16.mxu0 %v6222_v14  ;;  %4662 = vmatprep.subr.bf16.mxu1 %v6224_v8 }
 0x9d1   :  { %4632 = vmatpush1.bf16.msra.mxu0 %v6226_v17  ;;  %4664 = vmatpush1.bf16.msra.mxu1 %v6229_v41 }
 0x9d2   :  { %4666 = vmatprep.subr.bf16.mxu0 %v6138_v43  ;;  %4698 = vmatprep.subr.bf16.mxu1 %v6140_v51 }
 0xa87   :  { %v2602_v25 = vpop.f32.mrb[18].mxu0  ;;  %v2673_v20 = vpop.f32.mrb[18].mxu1 }
 0xa88   :  { %v5019_v28 = vadd.f32 %v2602_v25, %v6284_v45  ;;  %v2604_v50 = vpop.f32.mrb[19].mxu0  ;;  %v2675_v56 = vpop.f32.mrb[19].mxu1  ;;  %v5035_v36 = vadd.f32 %v2673_v20, %v6299_v34 }
 0xa89   :  { %v5020_v60 = vadd.f32 %v2604_v50, %v6288_v21  ;;  %v5036_v23 = vadd.f32 %v2675_v56, %v6294_v32 }
 0xa8a   :  { %v3812_v13 = vmul.f32 -1.442695, %v5019_v28 }
 0xa8b   :  { %v3813_v19 = vmul.f32 -1.442695, %v5020_v60  ;;  %v3814_v31 = vmul.f32 -1.442695, %v5036_v23 }
 0xa8c   :  { %5268 = vpow2.f32 %v3812_v13 }
 0xa8d   :  { %5270 = vpow2.f32 %v3813_v19 }
 0xa8e   :  { %5272 = vpow2.f32 %v3814_v31 }
 0xa8f   :  { %5274 = vtanh.f32 %v5035_v36 }
 0xa96   :  { %v5269_v58 = vpop.eup %5268 }
 0xa97   :  { %v5271_v62 = vpop.eup %5270  ;;  %v2685_v35 = vadd.f32 1.0, %v5269_v58 }
 0xa98   :  { %v2691_v9 = vadd.f32 1.0, %v5271_v62  ;;  %v5273_v37 = vpop.eup %5272 }
 0xa99   :  { %5276 = vrcp.f32 %v2685_v35  ;;  %v5275_v42 = vpop.eup %5274  ;;  %v2698_v11 = vadd.f32 1.0, %v5273_v37 }
 0xa9a   :  { %5278 = vrcp.f32 %v2691_v9 }
 0xa9b   :  { %5280 = vrcp.f32 %v2698_v11 }
 0xaa3   :  { %v5277_v18 = vpop.eup %5276 }
 0xaa4   :  { %v5279_v2 = vpop.eup %5278  ;;  %v2702_v15 = vmul.f32 %v5277_v18, %v5275_v42 }
 0xaa5   :  { %v2701_v57 = vmul.f32 %v5279_v2, %v6302_v59  ;;  %v5281_v1 = vpop.eup %5280 }
 0xaa7   :  { %v6344_v30 = vadd.f32 %v2702_v15, %v2701_v57 }
 0xaa9   :  { %5282 = vtanh.f32 %v6344_v30 }
 0xab3   :  { %v5283_v49 = vpop.eup %5282 }
 0xab4   :  { %v2705_v33 = vmul.f32 %v5283_v49, %v5281_v1 }
 0xab6   :  { %2707 = vst [vmem:[#allocation15 + $0x8] sm:$0xff] %v2705_v33  ;;  %2777 = vmatmul.mubr.f32.vlgmr.msra.gmra.mrb[20].mxu0 %v2705_v33  ;;  %2848 = vmatmul.mubr.f32.vlgmr.msra.gmra.mrb[20].mxu1 %v2705_v33 }
 0xab7   :  { %4668 = vmatpush1.bf16.msra.mxu0 %v6142_v39  ;;  %4700 = vmatpush1.bf16.msra.mxu1 %v6145_v55 }
 0xab8   :  { %4670 = vmatprep.subr.bf16.mxu0 %v6150_v61  ;;  %4702 = vmatprep.subr.bf16.mxu1 %v6152_v24 }
 0xab9   :  { %2952 = vmatprep.mubr.f32.mxu0 %v5529_v0  ;;  %3023 = vmatprep.mubr.f32.mxu1 %v5529_v0 }
 0xabb   :  { %4672 = vmatpush1.bf16.msra.mxu0 %v6154_v12  ;;  %4704 = vmatpush1.bf16.msra.mxu1 %v6157_v5 }
 0xabc   :  { %4674 = vmatprep.subr.bf16.mxu0 %v6162_v53  ;;  %4706 = vmatprep.subr.bf16.mxu1 %v6164_v3 }
 0xabf   :  { %4676 = vmatpush1.bf16.msra.mxu0 %v6166_v6  ;;  %4708 = vmatpush1.bf16.msra.mxu1 %v6169_v16 }
 0xac0   :  { %4678 = vmatprep.subr.bf16.mxu0 %v6174_v29  ;;  %4710 = vmatprep.subr.bf16.mxu1 %v6176_v44 }
 0xac3   :  { %4680 = vmatpush1.bf16.msra.mxu0 %v6178_v48  ;;  %4712 = vmatpush1.bf16.msra.mxu1 %v6181_v4 }
 0xac4   :  { %4682 = vmatprep.subr.bf16.mxu0 %v6185_v22  ;;  %4714 = vmatprep.subr.bf16.mxu1 %v6187_v46 }
 0xac7   :  { %4684 = vmatpush1.bf16.msra.mxu0 %v6190_v27  ;;  %4716 = vmatpush1.bf16.msra.mxu1 %v6194_v38 }
 0xac8   :  { %4686 = vmatprep.subr.bf16.mxu0 %v6196_v52  ;;  %4718 = vmatprep.subr.bf16.mxu1 %v6198_v7 }
 0xacb   :  { %4688 = vmatpush1.bf16.msra.mxu0 %v6201_v47  ;;  %4720 = vmatpush1.bf16.msra.mxu1 %v6205_v63 }
 0xacc   :  { %4690 = vmatprep.subr.bf16.mxu0 %v6207_v10  ;;  %4722 = vmatprep.subr.bf16.mxu1 %v6210_v26 }
 0xacf   :  { %4692 = vmatpush1.bf16.msra.mxu0 %v6213_v40  ;;  %4724 = vmatpush1.bf16.msra.mxu1 %v6217_v54 }
 0xad0   :  { %4694 = vmatprep.subr.bf16.mxu0 %v6222_v14  ;;  %4726 = vmatprep.subr.bf16.mxu1 %v6224_v8 }
 0xad3   :  { %4696 = vmatpush1.bf16.msra.mxu0 %v6226_v17  ;;  %4728 = vmatpush1.bf16.msra.mxu1 %v6229_v41 }
 0xad4   :  { %4730 = vmatprep.subr.bf16.mxu0 %v6138_v43  ;;  %4762 = vmatprep.subr.bf16.mxu1 %v6140_v51 }
 0xb89   :  { %v2778_v59 = vpop.f32.mrb[20].mxu0  ;;  %v2849_v25 = vpop.f32.mrb[20].mxu1 }
 0xb8a   :  { %v5021_v20 = vadd.f32 %v2778_v59, %v6284_v45  ;;  %v2780_v28 = vpop.f32.mrb[21].mxu0  ;;  %v2851_v50 = vpop.f32.mrb[21].mxu1  ;;  %v5037_v31 = vadd.f32 %v2849_v25, %v6299_v34 }
 0xb8b   :  { %v5022_v56 = vadd.f32 %v2780_v28, %v6288_v21  ;;  %v5038_v19 = vadd.f32 %v2851_v50, %v6294_v32 }
 0xb8c   :  { %v3815_v60 = vmul.f32 -1.442695, %v5021_v20 }
 0xb8d   :  { %v3816_v13 = vmul.f32 -1.442695, %v5022_v56  ;;  %v3817_v23 = vmul.f32 -1.442695, %v5038_v19 }
 0xb8e   :  { %5284 = vpow2.f32 %v3815_v60 }
 0xb8f   :  { %5286 = vpow2.f32 %v3816_v13 }
 0xb90   :  { %5288 = vpow2.f32 %v3817_v23 }
 0xb91   :  { %5290 = vtanh.f32 %v5037_v31 }
 0xb98   :  { %v5285_v36 = vpop.eup %5284 }
 0xb99   :  { %v5287_v58 = vpop.eup %5286  ;;  %v2861_v62 = vadd.f32 1.0, %v5285_v36 }
 0xb9a   :  { %v2867_v35 = vadd.f32 1.0, %v5287_v58  ;;  %v5289_v9 = vpop.eup %5288 }
 0xb9b   :  { %5292 = vrcp.f32 %v2861_v62  ;;  %v5291_v37 = vpop.eup %5290  ;;  %v2874_v15 = vadd.f32 1.0, %v5289_v9 }
 0xb9c   :  { %5294 = vrcp.f32 %v2867_v35 }
 0xb9d   :  { %5296 = vrcp.f32 %v2874_v15 }
 0xba5   :  { %v5293_v42 = vpop.eup %5292 }
 0xba6   :  { %v5295_v18 = vpop.eup %5294  ;;  %v2878_v2 = vmul.f32 %v5293_v42, %v5291_v37 }
 0xba7   :  { %v2877_v11 = vmul.f32 %v5295_v18, %v6344_v30  ;;  %v5297_v1 = vpop.eup %5296 }
 0xba9   :  { %v6386_v57 = vadd.f32 %v2878_v2, %v2877_v11 }
 0xbab   :  { %5298 = vtanh.f32 %v6386_v57 }
 0xbb5   :  { %v5299_v49 = vpop.eup %5298 }
 0xbb6   :  { %v2881_v33 = vmul.f32 %v5299_v49, %v5297_v1 }
 0xbb8   :  { %2883 = vst [vmem:[#allocation15 + $0x10] sm:$0xff] %v2881_v33  ;;  %2953 = vmatmul.mubr.f32.vlgmr.msra.gmra.mrb[22].mxu0 %v2881_v33  ;;  %3024 = vmatmul.mubr.f32.vlgmr.msra.gmra.mrb[22].mxu1 %v2881_v33 }
 0xbb9   :  { %4732 = vmatpush1.bf16.msra.mxu0 %v6142_v39  ;;  %4764 = vmatpush1.bf16.msra.mxu1 %v6145_v55 }
 0xbba   :  { %4734 = vmatprep.subr.bf16.mxu0 %v6150_v61  ;;  %4766 = vmatprep.subr.bf16.mxu1 %v6152_v24 }
 0xbbb   :  { %3128 = vmatprep.mubr.f32.mxu0 %v5529_v0  ;;  %3199 = vmatprep.mubr.f32.mxu1 %v5529_v0 }
 0xbbd   :  { %4736 = vmatpush1.bf16.msra.mxu0 %v6154_v12  ;;  %4768 = vmatpush1.bf16.msra.mxu1 %v6157_v5 }
 0xbbe   :  { %4738 = vmatprep.subr.bf16.mxu0 %v6162_v53  ;;  %4770 = vmatprep.subr.bf16.mxu1 %v6164_v3 }
 0xbc1   :  { %4740 = vmatpush1.bf16.msra.mxu0 %v6166_v6  ;;  %4772 = vmatpush1.bf16.msra.mxu1 %v6169_v16 }
 0xbc2   :  { %4742 = vmatprep.subr.bf16.mxu0 %v6174_v29  ;;  %4774 = vmatprep.subr.bf16.mxu1 %v6176_v44 }
 0xbc5   :  { %4744 = vmatpush1.bf16.msra.mxu0 %v6178_v48  ;;  %4776 = vmatpush1.bf16.msra.mxu1 %v6181_v4 }
 0xbc6   :  { %4746 = vmatprep.subr.bf16.mxu0 %v6185_v22  ;;  %4778 = vmatprep.subr.bf16.mxu1 %v6187_v46 }
 0xbc9   :  { %4748 = vmatpush1.bf16.msra.mxu0 %v6190_v27  ;;  %4780 = vmatpush1.bf16.msra.mxu1 %v6194_v38 }
 0xbca   :  { %4750 = vmatprep.subr.bf16.mxu0 %v6196_v52  ;;  %4782 = vmatprep.subr.bf16.mxu1 %v6198_v7 }
 0xbcd   :  { %4752 = vmatpush1.bf16.msra.mxu0 %v6201_v47  ;;  %4784 = vmatpush1.bf16.msra.mxu1 %v6205_v63 }
 0xbce   :  { %4754 = vmatprep.subr.bf16.mxu0 %v6207_v10  ;;  %4786 = vmatprep.subr.bf16.mxu1 %v6210_v26 }
 0xbd1   :  { %4756 = vmatpush1.bf16.msra.mxu0 %v6213_v40  ;;  %4788 = vmatpush1.bf16.msra.mxu1 %v6217_v54 }
 0xbd2   :  { %4758 = vmatprep.subr.bf16.mxu0 %v6222_v14  ;;  %4790 = vmatprep.subr.bf16.mxu1 %v6224_v8 }
 0xbd5   :  { %4760 = vmatpush1.bf16.msra.mxu0 %v6226_v17  ;;  %4792 = vmatpush1.bf16.msra.mxu1 %v6229_v41 }
 0xbd6   :  { %4794 = vmatprep.subr.bf16.mxu0 %v6138_v43  ;;  %4826 = vmatprep.subr.bf16.mxu1 %v6140_v51 }
 0xc8b   :  { %v2954_v30 = vpop.f32.mrb[22].mxu0  ;;  %v3025_v59 = vpop.f32.mrb[22].mxu1 }
 0xc8c   :  { %v5023_v25 = vadd.f32 %v2954_v30, %v6284_v45  ;;  %v2956_v20 = vpop.f32.mrb[23].mxu0  ;;  %v3027_v28 = vpop.f32.mrb[23].mxu1  ;;  %v5039_v23 = vadd.f32 %v3025_v59, %v6299_v34 }
 0xc8d   :  { %v5024_v50 = vadd.f32 %v2956_v20, %v6288_v21  ;;  %v5040_v13 = vadd.f32 %v3027_v28, %v6294_v32 }
 0xc8e   :  { %v3818_v56 = vmul.f32 -1.442695, %v5023_v25 }
 0xc8f   :  { %v3819_v60 = vmul.f32 -1.442695, %v5024_v50  ;;  %v3820_v19 = vmul.f32 -1.442695, %v5040_v13 }
 0xc90   :  { %5300 = vpow2.f32 %v3818_v56 }
 0xc91   :  { %5302 = vpow2.f32 %v3819_v60 }
 0xc92   :  { %5304 = vpow2.f32 %v3820_v19 }
 0xc93   :  { %5306 = vtanh.f32 %v5039_v23 }
 0xc9a   :  { %v5301_v31 = vpop.eup %5300 }
 0xc9b   :  { %v5303_v36 = vpop.eup %5302  ;;  %v3037_v58 = vadd.f32 1.0, %v5301_v31 }
 0xc9c   :  { %v3043_v62 = vadd.f32 1.0, %v5303_v36  ;;  %v5305_v35 = vpop.eup %5304 }
 0xc9d   :  { %5308 = vrcp.f32 %v3037_v58  ;;  %v5307_v9 = vpop.eup %5306  ;;  %v3050_v2 = vadd.f32 1.0, %v5305_v35 }
 0xc9e   :  { %5310 = vrcp.f32 %v3043_v62 }
 0xc9f   :  { %5312 = vrcp.f32 %v3050_v2 }
 0xca7   :  { %v5309_v37 = vpop.eup %5308 }
 0xca8   :  { %v5311_v42 = vpop.eup %5310  ;;  %v3054_v18 = vmul.f32 %v5309_v37, %v5307_v9 }
 0xca9   :  { %v3053_v15 = vmul.f32 %v5311_v42, %v6386_v57  ;;  %v5313_v1 = vpop.eup %5312 }
 0xcab   :  { %v6428_v11 = vadd.f32 %v3054_v18, %v3053_v15 }
 0xcad   :  { %5314 = vtanh.f32 %v6428_v11 }
 0xcb7   :  { %v5315_v49 = vpop.eup %5314 }
 0xcb8   :  { %v3057_v33 = vmul.f32 %v5315_v49, %v5313_v1 }
 0xcba   :  { %3059 = vst [vmem:[#allocation15 + $0x18] sm:$0xff] %v3057_v33  ;;  %3129 = vmatmul.mubr.f32.vlgmr.msra.gmra.mrb[24].mxu0 %v3057_v33  ;;  %3200 = vmatmul.mubr.f32.vlgmr.msra.gmra.mrb[24].mxu1 %v3057_v33 }
 0xcbb   :  { %4796 = vmatpush1.bf16.msra.mxu0 %v6142_v39  ;;  %4828 = vmatpush1.bf16.msra.mxu1 %v6145_v55 }
 0xcbc   :  { %4798 = vmatprep.subr.bf16.mxu0 %v6150_v61  ;;  %4830 = vmatprep.subr.bf16.mxu1 %v6152_v24 }
 0xcbd   :  { %3304 = vmatprep.mubr.f32.mxu0 %v5529_v0  ;;  %3375 = vmatprep.mubr.f32.mxu1 %v5529_v0 }
 0xcbf   :  { %4800 = vmatpush1.bf16.msra.mxu0 %v6154_v12  ;;  %4832 = vmatpush1.bf16.msra.mxu1 %v6157_v5 }
 0xcc0   :  { %4802 = vmatprep.subr.bf16.mxu0 %v6162_v53  ;;  %4834 = vmatprep.subr.bf16.mxu1 %v6164_v3 }
 0xcc3   :  { %4804 = vmatpush1.bf16.msra.mxu0 %v6166_v6  ;;  %4836 = vmatpush1.bf16.msra.mxu1 %v6169_v16 }
 0xcc4   :  { %4806 = vmatprep.subr.bf16.mxu0 %v6174_v29  ;;  %4838 = vmatprep.subr.bf16.mxu1 %v6176_v44 }
 0xcc7   :  { %4808 = vmatpush1.bf16.msra.mxu0 %v6178_v48  ;;  %4840 = vmatpush1.bf16.msra.mxu1 %v6181_v4 }
 0xcc8   :  { %4810 = vmatprep.subr.bf16.mxu0 %v6185_v22  ;;  %4842 = vmatprep.subr.bf16.mxu1 %v6187_v46 }
 0xccb   :  { %4812 = vmatpush1.bf16.msra.mxu0 %v6190_v27  ;;  %4844 = vmatpush1.bf16.msra.mxu1 %v6194_v38 }
 0xccc   :  { %4814 = vmatprep.subr.bf16.mxu0 %v6196_v52  ;;  %4846 = vmatprep.subr.bf16.mxu1 %v6198_v7 }
 0xccf   :  { %4816 = vmatpush1.bf16.msra.mxu0 %v6201_v47  ;;  %4848 = vmatpush1.bf16.msra.mxu1 %v6205_v63 }
 0xcd0   :  { %4818 = vmatprep.subr.bf16.mxu0 %v6207_v10  ;;  %4850 = vmatprep.subr.bf16.mxu1 %v6210_v26 }
 0xcd3   :  { %4820 = vmatpush1.bf16.msra.mxu0 %v6213_v40  ;;  %4852 = vmatpush1.bf16.msra.mxu1 %v6217_v54 }
 0xcd4   :  { %4822 = vmatprep.subr.bf16.mxu0 %v6222_v14  ;;  %4854 = vmatprep.subr.bf16.mxu1 %v6224_v8 }
 0xcd7   :  { %4824 = vmatpush1.bf16.msra.mxu0 %v6226_v17  ;;  %4856 = vmatpush1.bf16.msra.mxu1 %v6229_v41 }
 0xcd8   :  { %4858 = vmatprep.subr.bf16.mxu0 %v6138_v43  ;;  %4890 = vmatprep.subr.bf16.mxu1 %v6140_v51 }
 0xd8d   :  { %v3130_v57 = vpop.f32.mrb[24].mxu0  ;;  %v3201_v30 = vpop.f32.mrb[24].mxu1 }
 0xd8e   :  { %v5025_v59 = vadd.f32 %v3130_v57, %v6284_v45  ;;  %v3132_v25 = vpop.f32.mrb[25].mxu0  ;;  %v3203_v20 = vpop.f32.mrb[25].mxu1  ;;  %v5041_v19 = vadd.f32 %v3201_v30, %v6299_v34 }
 0xd8f   :  { %v5026_v28 = vadd.f32 %v3132_v25, %v6288_v21  ;;  %v5042_v60 = vadd.f32 %v3203_v20, %v6294_v32 }
 0xd90   :  { %v3821_v50 = vmul.f32 -1.442695, %v5025_v59 }
 0xd91   :  { %v3822_v56 = vmul.f32 -1.442695, %v5026_v28  ;;  %v3823_v13 = vmul.f32 -1.442695, %v5042_v60 }
 0xd92   :  { %5316 = vpow2.f32 %v3821_v50 }
 0xd93   :  { %5318 = vpow2.f32 %v3822_v56 }
 0xd94   :  { %5320 = vpow2.f32 %v3823_v13 }
 0xd95   :  { %5322 = vtanh.f32 %v5041_v19 }
 0xd9c   :  { %v5317_v23 = vpop.eup %5316 }
 0xd9d   :  { %v5319_v31 = vpop.eup %5318  ;;  %v3213_v36 = vadd.f32 1.0, %v5317_v23 }
 0xd9e   :  { %v3219_v58 = vadd.f32 1.0, %v5319_v31  ;;  %v5321_v62 = vpop.eup %5320 }
 0xd9f   :  { %5324 = vrcp.f32 %v3213_v36  ;;  %v5323_v35 = vpop.eup %5322  ;;  %v3226_v18 = vadd.f32 1.0, %v5321_v62 }
 0xda0   :  { %5326 = vrcp.f32 %v3219_v58 }
 0xda1   :  { %5328 = vrcp.f32 %v3226_v18 }
 0xda9   :  { %v5325_v9 = vpop.eup %5324 }
 0xdaa   :  { %v5327_v37 = vpop.eup %5326  ;;  %v3230_v42 = vmul.f32 %v5325_v9, %v5323_v35 }
 0xdab   :  { %v3229_v2 = vmul.f32 %v5327_v37, %v6428_v11  ;;  %v5329_v1 = vpop.eup %5328 }
 0xdad   :  { %v6470_v15 = vadd.f32 %v3230_v42, %v3229_v2 }
 0xdaf   :  { %5330 = vtanh.f32 %v6470_v15 }
 0xdb9   :  { %v5331_v49 = vpop.eup %5330 }
 0xdba   :  { %v3233_v33 = vmul.f32 %v5331_v49, %v5329_v1 }
 0xdbc   :  { %3235 = vst [vmem:[#allocation15 + $0x20] sm:$0xff] %v3233_v33  ;;  %3305 = vmatmul.mubr.f32.vlgmr.msra.gmra.mrb[26].mxu0 %v3233_v33  ;;  %3376 = vmatmul.mubr.f32.vlgmr.msra.gmra.mrb[26].mxu1 %v3233_v33 }
 0xdbd   :  { %4860 = vmatpush1.bf16.msra.mxu0 %v6142_v39  ;;  %4892 = vmatpush1.bf16.msra.mxu1 %v6145_v55 }
 0xdbe   :  { %4862 = vmatprep.subr.bf16.mxu0 %v6150_v61  ;;  %4894 = vmatprep.subr.bf16.mxu1 %v6152_v24 }
 0xdbf   :  { %3480 = vmatprep.mubr.f32.mxu0 %v5529_v0  ;;  %3551 = vmatprep.mubr.f32.mxu1 %v5529_v0 }
 0xdc1   :  { %4864 = vmatpush1.bf16.msra.mxu0 %v6154_v12  ;;  %4896 = vmatpush1.bf16.msra.mxu1 %v6157_v5 }
 0xdc2   :  { %4866 = vmatprep.subr.bf16.mxu0 %v6162_v53  ;;  %4898 = vmatprep.subr.bf16.mxu1 %v6164_v3 }
 0xdc5   :  { %4868 = vmatpush1.bf16.msra.mxu0 %v6166_v6  ;;  %4900 = vmatpush1.bf16.msra.mxu1 %v6169_v16 }
 0xdc6   :  { %4870 = vmatprep.subr.bf16.mxu0 %v6174_v29  ;;  %4902 = vmatprep.subr.bf16.mxu1 %v6176_v44 }
 0xdc9   :  { %4872 = vmatpush1.bf16.msra.mxu0 %v6178_v48  ;;  %4904 = vmatpush1.bf16.msra.mxu1 %v6181_v4 }
 0xdca   :  { %4874 = vmatprep.subr.bf16.mxu0 %v6185_v22  ;;  %4906 = vmatprep.subr.bf16.mxu1 %v6187_v46 }
 0xdcd   :  { %4876 = vmatpush1.bf16.msra.mxu0 %v6190_v27  ;;  %4908 = vmatpush1.bf16.msra.mxu1 %v6194_v38 }
 0xdce   :  { %4878 = vmatprep.subr.bf16.mxu0 %v6196_v52  ;;  %4910 = vmatprep.subr.bf16.mxu1 %v6198_v7 }
 0xdd1   :  { %4880 = vmatpush1.bf16.msra.mxu0 %v6201_v47  ;;  %4912 = vmatpush1.bf16.msra.mxu1 %v6205_v63 }
 0xdd2   :  { %4882 = vmatprep.subr.bf16.mxu0 %v6207_v10  ;;  %4914 = vmatprep.subr.bf16.mxu1 %v6210_v26 }
 0xdd5   :  { %4884 = vmatpush1.bf16.msra.mxu0 %v6213_v40  ;;  %4916 = vmatpush1.bf16.msra.mxu1 %v6217_v54 }
 0xdd6   :  { %4886 = vmatprep.subr.bf16.mxu0 %v6222_v14  ;;  %4918 = vmatprep.subr.bf16.mxu1 %v6224_v8 }
 0xdd9   :  { %4888 = vmatpush1.bf16.msra.mxu0 %v6226_v17  ;;  %4920 = vmatpush1.bf16.msra.mxu1 %v6229_v41 }
 0xdda   :  { %4922 = vmatprep.subr.bf16.mxu0 %v6138_v43  ;;  %4954 = vmatprep.subr.bf16.mxu1 %v6140_v51 }
 0xe8f   :  { %v3306_v11 = vpop.f32.mrb[26].mxu0  ;;  %v3377_v57 = vpop.f32.mrb[26].mxu1 }
 0xe90   :  { %v5027_v30 = vadd.f32 %v3306_v11, %v6284_v45  ;;  %v3308_v59 = vpop.f32.mrb[27].mxu0  ;;  %v3379_v25 = vpop.f32.mrb[27].mxu1  ;;  %v5043_v13 = vadd.f32 %v3377_v57, %v6299_v34 }
 0xe91   :  { %v5028_v20 = vadd.f32 %v3308_v59, %v6288_v21  ;;  %v5044_v56 = vadd.f32 %v3379_v25, %v6294_v32 }
 0xe92   :  { %v3824_v28 = vmul.f32 -1.442695, %v5027_v30 }
 0xe93   :  { %v3825_v50 = vmul.f32 -1.442695, %v5028_v20  ;;  %v3826_v60 = vmul.f32 -1.442695, %v5044_v56 }
 0xe94   :  { %5332 = vpow2.f32 %v3824_v28 }
 0xe95   :  { %5334 = vpow2.f32 %v3825_v50 }
 0xe96   :  { %5336 = vpow2.f32 %v3826_v60 }
 0xe97   :  { %5338 = vtanh.f32 %v5043_v13 }
 0xe9e   :  { %v5333_v43 = vpop.eup %5332 }
 0xe9f   :  { %v5335_v19 = vpop.eup %5334  ;;  %v3389_v51 = vadd.f32 1.0, %v5333_v43 }
 0xea0   :  { %v3395_v23 = vadd.f32 1.0, %v5335_v19  ;;  %v5337_v31 = vpop.eup %5336 }
 0xea1   :  { %5340 = vrcp.f32 %v3389_v51  ;;  %v5339_v36 = vpop.eup %5338  ;;  %v3402_v9 = vadd.f32 1.0, %v5337_v31 }
 0xea2   :  { %5342 = vrcp.f32 %v3395_v23 }
 0xea3   :  { %5344 = vrcp.f32 %v3402_v9 }
 0xeab   :  { %v5341_v58 = vpop.eup %5340 }
 0xeac   :  { %v5343_v62 = vpop.eup %5342  ;;  %v3406_v35 = vmul.f32 %v5341_v58, %v5339_v36 }
 0xead   :  { %v3405_v37 = vmul.f32 %v5343_v62, %v6470_v15  ;;  %v5345_v18 = vpop.eup %5344 }
 0xeaf   :  { %v6512_v42 = vadd.f32 %v3406_v35, %v3405_v37 }
 0xeb1   :  { %5346 = vtanh.f32 %v6512_v42 }
 0xebb   :  { %v5347_v2 = vpop.eup %5346 }
 0xebc   :  { %v3409_v1 = vmul.f32 %v5347_v2, %v5345_v18 }
 0xebe   :  { %3411 = vst [vmem:[#allocation15 + $0x28] sm:$0xff] %v3409_v1  ;;  %3481 = vmatmul.mubr.f32.vlgmr.msra.gmra.mrb[28].mxu0 %v3409_v1  ;;  %3552 = vmatmul.mubr.f32.vlgmr.msra.gmra.mrb[28].mxu1 %v3409_v1 }
 0xebf   :  { %4924 = vmatpush1.bf16.msra.mxu0 %v6142_v39  ;;  %4956 = vmatpush1.bf16.msra.mxu1 %v6145_v55 }
 0xec0   :  { %4926 = vmatprep.subr.bf16.mxu0 %v6150_v61  ;;  %4958 = vmatprep.subr.bf16.mxu1 %v6152_v24 }
 0xec1   :  { %3656 = vmatprep.mubr.f32.mxu0 %v5529_v0  ;;  %3727 = vmatprep.mubr.f32.mxu1 %v5529_v0 }
 0xec3   :  { %4928 = vmatpush1.bf16.msra.mxu0 %v6154_v12  ;;  %4960 = vmatpush1.bf16.msra.mxu1 %v6157_v5 }
 0xec4   :  { %4930 = vmatprep.subr.bf16.mxu0 %v6162_v53  ;;  %4962 = vmatprep.subr.bf16.mxu1 %v6164_v3 }
 0xec7   :  { %4932 = vmatpush1.bf16.msra.mxu0 %v6166_v6  ;;  %4964 = vmatpush1.bf16.msra.mxu1 %v6169_v16 }
 0xec8   :  { %4934 = vmatprep.subr.bf16.mxu0 %v6174_v29  ;;  %4966 = vmatprep.subr.bf16.mxu1 %v6176_v44 }
 0xecb   :  { %4936 = vmatpush1.bf16.msra.mxu0 %v6178_v48  ;;  %4968 = vmatpush1.bf16.msra.mxu1 %v6181_v4 }
 0xecc   :  { %4938 = vmatprep.subr.bf16.mxu0 %v6185_v22  ;;  %4970 = vmatprep.subr.bf16.mxu1 %v6187_v46 }
 0xecf   :  { %4940 = vmatpush1.bf16.msra.mxu0 %v6190_v27  ;;  %4972 = vmatpush1.bf16.msra.mxu1 %v6194_v38 }
 0xed0   :  { %4942 = vmatprep.subr.bf16.mxu0 %v6196_v52  ;;  %4974 = vmatprep.subr.bf16.mxu1 %v6198_v7 }
 0xed3   :  { %4944 = vmatpush1.bf16.msra.mxu0 %v6201_v47  ;;  %4976 = vmatpush1.bf16.msra.mxu1 %v6205_v63 }
 0xed4   :  { %4946 = vmatprep.subr.bf16.mxu0 %v6207_v10  ;;  %4978 = vmatprep.subr.bf16.mxu1 %v6210_v26 }
 0xed7   :  { %4948 = vmatpush1.bf16.msra.mxu0 %v6213_v40  ;;  %4980 = vmatpush1.bf16.msra.mxu1 %v6217_v54 }
 0xed8   :  { %4950 = vmatprep.subr.bf16.mxu0 %v6222_v14  ;;  %4982 = vmatprep.subr.bf16.mxu1 %v6224_v8 }
 0xedb   :  { %4952 = vmatpush1.bf16.msra.mxu0 %v6226_v17  ;;  %4984 = vmatpush1.bf16.msra.mxu1 %v6229_v41 }
 0xf91   :  { %v3482_v0 = vpop.f32.mrb[28].mxu0  ;;  %v3553_v39 = vpop.f32.mrb[28].mxu1 }
 0xf92   :  { %v5029_v55 = vadd.f32 %v3482_v0, %v6284_v45  ;;  %v3484_v61 = vpop.f32.mrb[29].mxu0  ;;  %v3555_v24 = vpop.f32.mrb[29].mxu1  ;;  %v5045_v16 = vadd.f32 %v3553_v39, %v6299_v34 }
 0xf93   :  { %v5030_v12 = vadd.f32 %v3484_v61, %v6288_v21  ;;  %v5046_v3 = vadd.f32 %v3555_v24, %v6294_v32 }
 0xf94   :  { %v3827_v5 = vmul.f32 -1.442695, %v5029_v55 }
 0xf95   :  { %v3828_v53 = vmul.f32 -1.442695, %v5030_v12  ;;  %v3829_v6 = vmul.f32 -1.442695, %v5046_v3 }
 0xf96   :  { %5348 = vpow2.f32 %v3827_v5 }
 0xf97   :  { %5350 = vpow2.f32 %v3828_v53 }
 0xf98   :  { %5352 = vpow2.f32 %v3829_v6 }
 0xf99   :  { %5354 = vtanh.f32 %v5045_v16 }
 0xfa0   :  { %v5349_v29 = vpop.eup %5348 }
 0xfa1   :  { %v5351_v44 = vpop.eup %5350  ;;  %v3565_v48 = vadd.f32 1.0, %v5349_v29 }
 0xfa2   :  { %v3571_v4 = vadd.f32 1.0, %v5351_v44  ;;  %v5353_v22 = vpop.eup %5352 }
 0xfa3   :  { %5356 = vrcp.f32 %v3565_v48  ;;  %v5355_v46 = vpop.eup %5354  ;;  %v3578_v7 = vadd.f32 1.0, %v5353_v22 }
 0xfa4   :  { %5358 = vrcp.f32 %v3571_v4 }
 0xfa5   :  { %5360 = vrcp.f32 %v3578_v7 }
 0xfad   :  { %v5357_v27 = vpop.eup %5356 }
 0xfae   :  { %v5359_v38 = vpop.eup %5358  ;;  %v3582_v52 = vmul.f32 %v5357_v27, %v5355_v46 }
 0xfaf   :  { %v3581_v47 = vmul.f32 %v5359_v38, %v6512_v42  ;;  %v5361_v10 = vpop.eup %5360 }
 0xfb1   :  { %v3583_v63 = vadd.f32 %v3582_v52, %v3581_v47 }
 0xfb3   :  { %5362 = vtanh.f32 %v3583_v63 }
 0xfbd   :  { %v5363_v26 = vpop.eup %5362 }
 0xfbe   :  { %v3585_v40 = vmul.f32 %v5363_v26, %v5361_v10 }
 0xfc0   :  { %3587 = vst [vmem:[#allocation15 + $0x30] sm:$0xff] %v3585_v40  ;;  %3657 = vmatmul.mubr.f32.vlgmr.msra.gmra.mrb[30].mxu0 %v3585_v40  ;;  %3728 = vmatmul.mubr.f32.vlgmr.msra.gmra.mrb[30].mxu1 %v3585_v40 }
0x1093   :  { %v3658_v54 = vpop.f32.mrb[30].mxu0  ;;  %v3729_v14 = vpop.f32.mrb[30].mxu1 }
0x1094   :  { %v5031_v8 = vadd.f32 %v3658_v54, %v6284_v45  ;;  %v3660_v17 = vpop.f32.mrb[31].mxu0  ;;  %v3731_v41 = vpop.f32.mrb[31].mxu1  ;;  %v5047_v30 = vadd.f32 %v3729_v14, %v6299_v34 }
0x1095   :  { %v5032_v15 = vadd.f32 %v3660_v17, %v6288_v21  ;;  %v5048_v11 = vadd.f32 %v3731_v41, %v6294_v32 }
0x1096   :  { %v3830_v49 = vmul.f32 -1.442695, %v5031_v8 }
0x1097   :  { %v3831_v33 = vmul.f32 -1.442695, %v5032_v15  ;;  %v3832_v57 = vmul.f32 -1.442695, %v5048_v11 }
0x1098   :  { %5364 = vpow2.f32 %v3830_v49 }
0x1099   :  { %5366 = vpow2.f32 %v3831_v33 }
0x109a   :  { %5368 = vpow2.f32 %v3832_v57 }
0x109b   :  { %5370 = vtanh.f32 %v5047_v30 }
0x10a2   :  { %v5365_v59 = vpop.eup %5364 }
0x10a3   :  { %v5367_v25 = vpop.eup %5366  ;;  %v3741_v20 = vadd.f32 1.0, %v5365_v59 }
0x10a4   :  { %v3747_v28 = vadd.f32 1.0, %v5367_v25  ;;  %v5369_v45 = vpop.eup %5368 }
0x10a5   :  { %5372 = vrcp.f32 %v3741_v20  ;;  %v5371_v50 = vpop.eup %5370  ;;  %v3754_v13 = vadd.f32 1.0, %v5369_v45 }
0x10a6   :  { %5374 = vrcp.f32 %v3747_v28 }
0x10a7   :  { %5376 = vrcp.f32 %v3754_v13 }
0x10af   :  { %v5373_v21 = vpop.eup %5372 }
0x10b0   :  { %v5375_v56 = vpop.eup %5374  ;;  %v3758_v60 = vmul.f32 %v5373_v21, %v5371_v50 }
0x10b1   :  { %v3757_v43 = vmul.f32 %v5375_v56, %v3583_v63  ;;  %v5377_v32 = vpop.eup %5376 }
0x10b3   :  { %v3759_v19 = vadd.f32 %v3758_v60, %v3757_v43 }
0x10b5   :  { %5378 = vtanh.f32 %v3759_v19 }
0x10bf   :  { %v5379_v34 = vpop.eup %5378 }
0x10c0   :  { %v3761_v51 = vmul.f32 %v5379_v34, %v5377_v32 }
0x10c2   :  { %3763 = vst [vmem:[#allocation15 + $0x38] sm:$0xff] %v3761_v51 }
0x10c3   :  { %5501 = shalt.err (!%p5498_p2)
}
0x10c4   :  { %s5502_s24 = scalar_lea.hbm %s6578_s7, 1024 }
0x10c5   :  { %p5503_p3 = scmp.ne.s32.totalorder %s6578_s7, %s5502_s24  ;;  %p5506_p4 = scmp.lt.u32.totalorder %s5502_s24, %s6578_s7 }
0x10c7   :  { %p5508_p5 = pnand %p5506_p4, %p5503_p3 }
0x10c9   :  { %5511 = shalt.err (!%p5508_p5)
}
0x10ca   :  { %3777 = dma.vmem_to_hbm [thread:$0]  %s3772_s20, 1024, %s6578_s7, [#allocation8], %s5525_s4, %s5525_s4, %s5526_s15  }
0x10cb   :  { %5518 = dma.done.wait [#allocation8], 1024  }
0x10cc   :  { %5519 = vsyncadd [#allocation8], 4294966272 }
0x10cd   :  { %3781 = vsyncpa [#allocation7], 1 }
0x10ce   :  { %3782 = vsyncpa [#allocation10], 1 }
0x10cf   :  { %3783 = vsyncpa [#allocation13], 1 }
0x10d0   :  { %3784 = vsyncpa [#allocation8], 1 }

</bundles_post_ra>
